<compile_context>
chip_gen: v5e
topology: v5e:2x2
jax: 0.10.0
libtpu: 0.0.40
codegen_flags: <defaults>
</compile_context>

<pallas_src>
import jax
import jax.numpy as jnp
from jax.experimental import pallas as pl
from jax.experimental.pallas import tpu as pltpu

NUM_UNITS = 4
# (in_features, out_features) of the 5 Maxout layers, then the final Linear.
MAXOUT_DIMS = [(28 * 28, 256), (256, 128), (128, 64), (64, 32), (32, 16)]
FINAL_DIM = (16, 10)

# Lane-aligned padded (in, per-unit-out) sizes used inside the kernel.
PAD_SIZES = [(784, 256), (256, 128), (128, 128), (128, 128), (128, 128)]

# Small-weight slab layout (rows = input features of each layer, bf16, 512 columns).
W2_OFF = 0      # (256, 512)
W3_OFF = 256    # (128, 512)
W4_OFF = 384    # (128, 512)
W5_OFF = 512    # (128, 512)
W6_OFF = 640    # (128, 512); only the first 128 columns are used (10 real logits)
WSLAB_ROWS = 768
WSLAB_COLS = 512

# Bias slab: rows 0..5 hold b1..b6 (zero padded to 1024 lanes); rows 6..7 are padding.
BSLAB_ROWS = 8
BSLAB_COLS = 1024


def maxout_net_kernel(x_ref, w1_ref, ws_ref, bs_ref, o_ref):
    """Whole MaxoutNet forward in VMEM (all dims are tiny)."""

    def maxout(y, width):
        # All slice starts are multiples of 128 -> lane-aligned VPU max.
        m = y[:, 0:width]
        for u in range(1, NUM_UNITS):
            m = jnp.maximum(m, y[:, u * width:(u + 1) * width])
        return m

    def layer(h, w, b, width):
        y = jnp.dot(h, w, preferred_element_type=jnp.float32) + b
        return maxout(y, width).astype(jnp.bfloat16)

    h = x_ref[...]                                                       # (TB, 784) bf16
    h = layer(h, w1_ref[...],                    bs_ref[0:1, :],      256)
    h = layer(h, ws_ref[W2_OFF:W2_OFF + 256, :], bs_ref[1:2, 0:512], 128)
    h = layer(h, ws_ref[W3_OFF:W3_OFF + 128, :], bs_ref[2:3, 0:512], 128)
    h = layer(h, ws_ref[W4_OFF:W4_OFF + 128, :], bs_ref[3:4, 0:512], 128)
    h = layer(h, ws_ref[W5_OFF:W5_OFF + 128, :], bs_ref[4:5, 0:512], 128)
    # Final Linear(16 -> 10), padded to 128 -> 128 (lane-dense store).
    o_ref[...] = (jnp.dot(h, ws_ref[W6_OFF:W6_OFF + 128, 0:128],
                          preferred_element_type=jnp.float32)
                  + bs_ref[5:6, 0:128])


def init_pt_params(key):
    """PyTorch-layout params matching MaxoutNet.init_weights:
    weight ~ N(0, 0.05), bias = 0.01 (nn.Linear weight shape is (out, in))."""
    params = []
    for (fin, fout) in MAXOUT_DIMS:
        key, kw = jax.random.split(key)
        w_pt = 0.05 * jax.random.normal(kw, (fout * NUM_UNITS, fin), jnp.float32)
        b_pt = jnp.full((fout * NUM_UNITS,), 0.01, jnp.float32)
        params.append((w_pt, b_pt))
    fin, fout = FINAL_DIM
    key, kw = jax.random.split(key)
    w6_pt = 0.05 * jax.random.normal(kw, (fout, fin), jnp.float32)
    b6_pt = jnp.full((fout,), 0.01, jnp.float32)
    params.append((w6_pt, b6_pt))
    return params


def _pack_maxout(w_pt, b_pt, fin, fout, in_pad, out_pad):
    """PyTorch lin(x)[:, o*U + u] -> column u*out_pad + o (unit-major, lane aligned)."""
    w = w_pt.reshape(fout, NUM_UNITS, fin).transpose(2, 1, 0)            # (fin, U, fout)
    w = jnp.pad(w, ((0, in_pad - fin), (0, 0), (0, out_pad - fout)))
    w = w.reshape(in_pad, NUM_UNITS * out_pad)
    b = b_pt.reshape(fout, NUM_UNITS).transpose(1, 0)                    # (U, fout)
    b = jnp.pad(b, ((0, 0), (0, out_pad - fout))).reshape(NUM_UNITS * out_pad)
    return w, b


def pack_params(pt_params):
    """Pack params into: w1 (784,1024) bf16, small-weight slab (768,512) bf16,
    bias slab (8,1024) f32."""
    ws, bs = [], []
    for (w_pt, b_pt), (fin, fout), (ip, op) in zip(pt_params[:-1], MAXOUT_DIMS, PAD_SIZES):
        w, b = _pack_maxout(w_pt, b_pt, fin, fout, ip, op)
        ws.append(w)
        bs.append(b)

    # Final Linear(16, 10) padded to (128, 128), then to slab width 512.
    w6_pt, b6_pt = pt_params[-1]
    w6 = jnp.pad(w6_pt.T, ((0, 128 - 16), (0, 128 - 10)))                # (128, 128)
    b6 = jnp.pad(b6_pt, (0, 128 - 10))                                   # (128,)

    w1 = ws[0].astype(jnp.bfloat16)                                      # (784, 1024)
    wslab = jnp.concatenate(
        [ws[1], ws[2], ws[3], ws[4],
         jnp.pad(w6, ((0, 0), (0, WSLAB_COLS - 128)))], axis=0
    ).astype(jnp.bfloat16)                                               # (768, 512)

    bslab = jnp.zeros((BSLAB_ROWS, BSLAB_COLS), jnp.float32)
    bslab = bslab.at[0, :1024].set(bs[0])
    bslab = bslab.at[1, :512].set(bs[1])
    bslab = bslab.at[2, :512].set(bs[2])
    bslab = bslab.at[3, :512].set(bs[3])
    bslab = bslab.at[4, :512].set(bs[4])
    bslab = bslab.at[5, :128].set(b6)
    return w1, wslab, bslab


def _round_up(x, m):
    return (x + m - 1) // m * m


@jax.jit
def maxout_net_forward(x, w1, wslab, bslab):
    B = x.shape[0]
    x2 = x.reshape(B, 28 * 28).astype(jnp.bfloat16)

    B_pad = _round_up(max(B, 8), 8)
    TB = min(B_pad, 512)                       # batch tile (rows per grid step)
    B_pad = _round_up(B_pad, TB)
    if B_pad != B:
        x2 = jnp.pad(x2, ((0, B_pad - B), (0, 0)))

    out = pl.pallas_call(
        maxout_net_kernel,
        grid=(B_pad // TB,),
        in_specs=[
            pl.BlockSpec((TB, 28 * 28), lambda i: (i, 0)),
            pl.BlockSpec(w1.shape, lambda i: (0, 0)),      # constant -> stays VMEM-resident
            pl.BlockSpec(wslab.shape, lambda i: (0, 0)),
            pl.BlockSpec(bslab.shape, lambda i: (0, 0)),
        ],
        out_specs=pl.BlockSpec((TB, 128), lambda i: (i, 0)),
        out_shape=jax.ShapeDtypeStruct((B_pad, 128), jnp.float32),
        compiler_params=pltpu.CompilerParams(
            dimension_semantics=("parallel",),
            vmem_limit_bytes=64 << 20),
    )(x2, w1, wslab, bslab)
    return out[:B, :10]


def reference_forward(x, pt_params):
    """Pure-JAX reference with the same bf16-weight / f32-accumulate numerics."""
    B = x.shape[0]
    h = x.reshape(B, 28 * 28).astype(jnp.float32)
    for (w_pt, b_pt), (fin, fout) in zip(pt_params[:-1], MAXOUT_DIMS):
        y = jnp.dot(h.astype(jnp.bfloat16), w_pt.T.astype(jnp.bfloat16),
                    preferred_element_type=jnp.float32) + b_pt
        h = jnp.max(y.reshape(B, fout, NUM_UNITS), axis=-1)
    w6_pt, b6_pt = pt_params[-1]
    return jnp.dot(h.astype(jnp.bfloat16), w6_pt.T.astype(jnp.bfloat16),
                   preferred_element_type=jnp.float32) + b6_pt


if __name__ == "__main__":
    key = jax.random.PRNGKey(0)
    key, kx = jax.random.split(key)

    pt_params = init_pt_params(key)
    w1, wslab, bslab = pack_params(pt_params)

    # MNIST-like NCHW input at small batch.
    x = jax.random.normal(kx, (8, 1, 28, 28), jnp.float32)

    out = maxout_net_forward(x, w1, wslab, bslab)
    out = jax.block_until_ready(out)

    ref = reference_forward(x, pt_params)
    assert out.shape == (8, 10)
    assert jnp.allclose(out, ref, atol=1e-2, rtol=1e-2), "mismatch vs reference"

    print("KERNEL_OK")
</pallas_src>

<mosaic_0001>
module attributes {stable_mosaic.version = 11 : i64} {
  func.func @maxout_net_kernel(%arg0: i32, %arg1: memref<8x784xbf16, #tpu.memory_space<vmem>>, %arg2: memref<784x1024xbf16, #tpu.memory_space<vmem>>, %arg3: memref<768x512xbf16, #tpu.memory_space<vmem>>, %arg4: memref<8x1024xf32, #tpu.memory_space<vmem>>, %arg5: memref<8x128xf32, #tpu.memory_space<vmem>>) attributes {dimension_semantics = [#tpu.dimension_semantics<parallel>], iteration_bounds = array<i64: 1>, scalar_prefetch = 0 : i64, scratch_operands = 0 : i64, tpu.core_type = #tpu.core_type<tc>, window_params = [{transform_indices = @transform_0, window_bounds = array<i64: 8, 784>}, {pipeline_mode = #tpu.pipeline_mode<synchronous>, transform_indices = @transform_1, window_bounds = array<i64: 784, 1024>}, {pipeline_mode = #tpu.pipeline_mode<synchronous>, transform_indices = @transform_2, window_bounds = array<i64: 768, 512>}, {pipeline_mode = #tpu.pipeline_mode<synchronous>, transform_indices = @transform_3, window_bounds = array<i64: 8, 1024>}, {transform_indices = @transform_4, window_bounds = array<i64: 8, 128>}]} {
    %c0 = arith.constant 0 : index
    %c0_0 = arith.constant 0 : index
    %0 = vector.load %arg1[%c0, %c0_0] : memref<8x784xbf16, #tpu.memory_space<vmem>>, vector<8x784xbf16>
    %c0_1 = arith.constant 0 : index
    %c0_2 = arith.constant 0 : index
    %1 = vector.load %arg2[%c0_1, %c0_2] : memref<784x1024xbf16, #tpu.memory_space<vmem>>, vector<784x1024xbf16>
    %c0_3 = arith.constant 0 : index
    %c0_4 = arith.constant 0 : index
    %2 = vector.load %arg4[%c0_3, %c0_4] : memref<8x1024xf32, #tpu.memory_space<vmem>>, vector<1x1024xf32>
    %cst = arith.constant dense<0.000000e+00> : vector<8x1024xf32>
    %3 = tpu.matmul %0, %1, %cst {dimension_numbers = #tpu.dot_dimension_numbers<[1], [0], [0], [1], [0, 0, 1, 1], [], []>} : vector<8x784xbf16>, vector<784x1024xbf16>, vector<8x1024xf32> -> vector<8x1024xf32>
    %4 = vector.broadcast %2 : vector<1x1024xf32> to vector<8x1024xf32>
    %5 = arith.addf %3, %4 : vector<8x1024xf32>
    %6 = vector.extract_strided_slice %5 {offsets = [0, 0], sizes = [8, 256], strides = [1, 1]} : vector<8x1024xf32> to vector<8x256xf32>
    %7 = vector.extract_strided_slice %5 {offsets = [0, 256], sizes = [8, 256], strides = [1, 1]} : vector<8x1024xf32> to vector<8x256xf32>
    %8 = arith.maximumf %6, %7 : vector<8x256xf32>
    %9 = vector.extract_strided_slice %5 {offsets = [0, 512], sizes = [8, 256], strides = [1, 1]} : vector<8x1024xf32> to vector<8x256xf32>
    %10 = arith.maximumf %8, %9 : vector<8x256xf32>
    %11 = vector.extract_strided_slice %5 {offsets = [0, 768], sizes = [8, 256], strides = [1, 1]} : vector<8x1024xf32> to vector<8x256xf32>
    %12 = arith.maximumf %10, %11 : vector<8x256xf32>
    %13 = arith.truncf %12 : vector<8x256xf32> to vector<8x256xbf16>
    %c0_5 = arith.constant 0 : index
    %c0_6 = arith.constant 0 : index
    %14 = vector.load %arg3[%c0_5, %c0_6] : memref<768x512xbf16, #tpu.memory_space<vmem>>, vector<256x512xbf16>
    %c1 = arith.constant 1 : index
    %c0_7 = arith.constant 0 : index
    %15 = vector.load %arg4[%c1, %c0_7] : memref<8x1024xf32, #tpu.memory_space<vmem>>, vector<1x512xf32>
    %cst_8 = arith.constant dense<0.000000e+00> : vector<8x512xf32>
    %16 = tpu.matmul %13, %14, %cst_8 {dimension_numbers = #tpu.dot_dimension_numbers<[1], [0], [0], [1], [0, 0, 1, 1], [], []>} : vector<8x256xbf16>, vector<256x512xbf16>, vector<8x512xf32> -> vector<8x512xf32>
    %17 = vector.broadcast %15 : vector<1x512xf32> to vector<8x512xf32>
    %18 = arith.addf %16, %17 : vector<8x512xf32>
    %19 = vector.extract_strided_slice %18 {offsets = [0, 0], sizes = [8, 128], strides = [1, 1]} : vector<8x512xf32> to vector<8x128xf32>
    %20 = vector.extract_strided_slice %18 {offsets = [0, 128], sizes = [8, 128], strides = [1, 1]} : vector<8x512xf32> to vector<8x128xf32>
    %21 = arith.maximumf %19, %20 : vector<8x128xf32>
    %22 = vector.extract_strided_slice %18 {offsets = [0, 256], sizes = [8, 128], strides = [1, 1]} : vector<8x512xf32> to vector<8x128xf32>
    %23 = arith.maximumf %21, %22 : vector<8x128xf32>
    %24 = vector.extract_strided_slice %18 {offsets = [0, 384], sizes = [8, 128], strides = [1, 1]} : vector<8x512xf32> to vector<8x128xf32>
    %25 = arith.maximumf %23, %24 : vector<8x128xf32>
    %26 = arith.truncf %25 : vector<8x128xf32> to vector<8x128xbf16>
    %c256 = arith.constant 256 : index
    %c0_9 = arith.constant 0 : index
    %27 = vector.load %arg3[%c256, %c0_9] : memref<768x512xbf16, #tpu.memory_space<vmem>>, vector<128x512xbf16>
    %c2 = arith.constant 2 : index
    %c0_10 = arith.constant 0 : index
    %28 = vector.load %arg4[%c2, %c0_10] : memref<8x1024xf32, #tpu.memory_space<vmem>>, vector<1x512xf32>
    %cst_11 = arith.constant dense<0.000000e+00> : vector<8x512xf32>
    %29 = tpu.matmul %26, %27, %cst_11 {dimension_numbers = #tpu.dot_dimension_numbers<[1], [0], [0], [1], [0, 0, 1, 1], [], []>} : vector<8x128xbf16>, vector<128x512xbf16>, vector<8x512xf32> -> vector<8x512xf32>
    %30 = vector.broadcast %28 : vector<1x512xf32> to vector<8x512xf32>
    %31 = arith.addf %29, %30 : vector<8x512xf32>
    %32 = vector.extract_strided_slice %31 {offsets = [0, 0], sizes = [8, 128], strides = [1, 1]} : vector<8x512xf32> to vector<8x128xf32>
    %33 = vector.extract_strided_slice %31 {offsets = [0, 128], sizes = [8, 128], strides = [1, 1]} : vector<8x512xf32> to vector<8x128xf32>
    %34 = arith.maximumf %32, %33 : vector<8x128xf32>
    %35 = vector.extract_strided_slice %31 {offsets = [0, 256], sizes = [8, 128], strides = [1, 1]} : vector<8x512xf32> to vector<8x128xf32>
    %36 = arith.maximumf %34, %35 : vector<8x128xf32>
    %37 = vector.extract_strided_slice %31 {offsets = [0, 384], sizes = [8, 128], strides = [1, 1]} : vector<8x512xf32> to vector<8x128xf32>
    %38 = arith.maximumf %36, %37 : vector<8x128xf32>
    %39 = arith.truncf %38 : vector<8x128xf32> to vector<8x128xbf16>
    %c384 = arith.constant 384 : index
    %c0_12 = arith.constant 0 : index
    %40 = vector.load %arg3[%c384, %c0_12] : memref<768x512xbf16, #tpu.memory_space<vmem>>, vector<128x512xbf16>
    %c3 = arith.constant 3 : index
    %c0_13 = arith.constant 0 : index
    %41 = vector.load %arg4[%c3, %c0_13] : memref<8x1024xf32, #tpu.memory_space<vmem>>, vector<1x512xf32>
    %cst_14 = arith.constant dense<0.000000e+00> : vector<8x512xf32>
    %42 = tpu.matmul %39, %40, %cst_14 {dimension_numbers = #tpu.dot_dimension_numbers<[1], [0], [0], [1], [0, 0, 1, 1], [], []>} : vector<8x128xbf16>, vector<128x512xbf16>, vector<8x512xf32> -> vector<8x512xf32>
    %43 = vector.broadcast %41 : vector<1x512xf32> to vector<8x512xf32>
    %44 = arith.addf %42, %43 : vector<8x512xf32>
    %45 = vector.extract_strided_slice %44 {offsets = [0, 0], sizes = [8, 128], strides = [1, 1]} : vector<8x512xf32> to vector<8x128xf32>
    %46 = vector.extract_strided_slice %44 {offsets = [0, 128], sizes = [8, 128], strides = [1, 1]} : vector<8x512xf32> to vector<8x128xf32>
    %47 = arith.maximumf %45, %46 : vector<8x128xf32>
    %48 = vector.extract_strided_slice %44 {offsets = [0, 256], sizes = [8, 128], strides = [1, 1]} : vector<8x512xf32> to vector<8x128xf32>
    %49 = arith.maximumf %47, %48 : vector<8x128xf32>
    %50 = vector.extract_strided_slice %44 {offsets = [0, 384], sizes = [8, 128], strides = [1, 1]} : vector<8x512xf32> to vector<8x128xf32>
    %51 = arith.maximumf %49, %50 : vector<8x128xf32>
    %52 = arith.truncf %51 : vector<8x128xf32> to vector<8x128xbf16>
    %c512 = arith.constant 512 : index
    %c0_15 = arith.constant 0 : index
    %53 = vector.load %arg3[%c512, %c0_15] : memref<768x512xbf16, #tpu.memory_space<vmem>>, vector<128x512xbf16>
    %c4 = arith.constant 4 : index
    %c0_16 = arith.constant 0 : index
    %54 = vector.load %arg4[%c4, %c0_16] : memref<8x1024xf32, #tpu.memory_space<vmem>>, vector<1x512xf32>
    %cst_17 = arith.constant dense<0.000000e+00> : vector<8x512xf32>
    %55 = tpu.matmul %52, %53, %cst_17 {dimension_numbers = #tpu.dot_dimension_numbers<[1], [0], [0], [1], [0, 0, 1, 1], [], []>} : vector<8x128xbf16>, vector<128x512xbf16>, vector<8x512xf32> -> vector<8x512xf32>
    %56 = vector.broadcast %54 : vector<1x512xf32> to vector<8x512xf32>
    %57 = arith.addf %55, %56 : vector<8x512xf32>
    %58 = vector.extract_strided_slice %57 {offsets = [0, 0], sizes = [8, 128], strides = [1, 1]} : vector<8x512xf32> to vector<8x128xf32>
    %59 = vector.extract_strided_slice %57 {offsets = [0, 128], sizes = [8, 128], strides = [1, 1]} : vector<8x512xf32> to vector<8x128xf32>
    %60 = arith.maximumf %58, %59 : vector<8x128xf32>
    %61 = vector.extract_strided_slice %57 {offsets = [0, 256], sizes = [8, 128], strides = [1, 1]} : vector<8x512xf32> to vector<8x128xf32>
    %62 = arith.maximumf %60, %61 : vector<8x128xf32>
    %63 = vector.extract_strided_slice %57 {offsets = [0, 384], sizes = [8, 128], strides = [1, 1]} : vector<8x512xf32> to vector<8x128xf32>
    %64 = arith.maximumf %62, %63 : vector<8x128xf32>
    %65 = arith.truncf %64 : vector<8x128xf32> to vector<8x128xbf16>
    %c640 = arith.constant 640 : index
    %c0_18 = arith.constant 0 : index
    %66 = vector.load %arg3[%c640, %c0_18] : memref<768x512xbf16, #tpu.memory_space<vmem>>, vector<128x128xbf16>
    %cst_19 = arith.constant dense<0.000000e+00> : vector<8x128xf32>
    %67 = tpu.matmul %65, %66, %cst_19 {dimension_numbers = #tpu.dot_dimension_numbers<[1], [0], [0], [1], [0, 0, 1, 1], [], []>} : vector<8x128xbf16>, vector<128x128xbf16>, vector<8x128xf32> -> vector<8x128xf32>
    %c5 = arith.constant 5 : index
    %c0_20 = arith.constant 0 : index
    %68 = vector.load %arg4[%c5, %c0_20] : memref<8x1024xf32, #tpu.memory_space<vmem>>, vector<1x128xf32>
    %69 = vector.broadcast %68 : vector<1x128xf32> to vector<8x128xf32>
    %70 = arith.addf %67, %69 : vector<8x128xf32>
    %c0_21 = arith.constant 0 : index
    %c0_22 = arith.constant 0 : index
    %71 = vector.load %arg5[%c0_21, %c0_22] : memref<8x128xf32, #tpu.memory_space<vmem>>, vector<8x128xf32>
    tpu.vector_store %arg5[%c0_21, %c0_22], %70 {strides = array<i32>} : memref<8x128xf32, #tpu.memory_space<vmem>>, vector<8x128xf32>,
    return
  }
  func.func @transform_0(%arg0: i32) -> (i32, i32) {
    %c0_i32 = arith.constant 0 : i32
    %c0_i32_0 = arith.constant 0 : i32
    return %arg0, %c0_i32 : i32, i32
  }
  func.func @transform_1(%arg0: i32) -> (i32, i32) {
    %c0_i32 = arith.constant 0 : i32
    %c0_i32_0 = arith.constant 0 : i32
    %c0_i32_1 = arith.constant 0 : i32
    return %c0_i32, %c0_i32_0 : i32, i32
  }
  func.func @transform_2(%arg0: i32) -> (i32, i32) {
    %c0_i32 = arith.constant 0 : i32
    %c0_i32_0 = arith.constant 0 : i32
    %c0_i32_1 = arith.constant 0 : i32
    return %c0_i32, %c0_i32_0 : i32, i32
  }
  func.func @transform_3(%arg0: i32) -> (i32, i32) {
    %c0_i32 = arith.constant 0 : i32
    %c0_i32_0 = arith.constant 0 : i32
    %c0_i32_1 = arith.constant 0 : i32
    return %c0_i32, %c0_i32_0 : i32, i32
  }
  func.func @transform_4(%arg0: i32) -> (i32, i32) {
    %c0_i32 = arith.constant 0 : i32
    %c0_i32_0 = arith.constant 0 : i32
    return %arg0, %c0_i32 : i32, i32
  }
}

</mosaic_0001>

<bundles_post_ra>
// kernel: maxout_net_forward.1
= control target key start
LH: loop header
LB: loop body
LE: loop exit
PB: predicated region body
PF: predicated region fallthrough
CT: control target
= control target key end

     0   :  { %9 = vsyncpa [#allocation3], 0  ;;  %s7713_s0 = inlined_call_operand.vmem [shape: bf16[8,784], index: 0, kind: input, shape index: {}]   ;;  %s7714_s1 = inlined_call_operand.hbm [shape: bf16[784,1024], index: 1, kind: input, shape index: {}]   ;;  %s7715_s2 = inlined_call_operand.hbm [shape: bf16[768,512], index: 2, kind: input, shape index: {}]   ;;  %s7716_s3 = inlined_call_operand.hbm [shape: f32[8,1024], index: 3, kind: input, shape index: {}]   ;;  %s7717_s4 = inlined_call_operand.hbm [shape: f32[8,128], index: 4, kind: output, shape index: {}]  }
   0x1   :  { %10 = vsyncpa [#allocation6], 0  ;;  %s31_s17 = sshll.u32 %s7715_s2, 4  ;;  %s32_s17 = int_to_ptr.hbm [resolvable:$true] %s31_s17 }
   0x2   :  { %11 = vsyncpa [#allocation4], 0  ;;  %s7499_s18 = smov [#allocation5]   ;;  %s18_s22 = sshll.u32 %s7714_s1, 4  ;;  %s19_s22 = int_to_ptr.hbm [resolvable:$true] %s18_s22 }
   0x3   :  { %s33_s19 = sshll.u32 %s7499_s18, 4  ;;  %s7500_s23 = smov 256   ;;  %s34_s19 = int_to_ptr.vmem [resolvable:$true] %s33_s19 }
   0x4   :  { %s7501_s24 = smov 16   ;;  %s7502_s25 = smov [#allocation2]  }
   0x5   :  { %39 = dma.hbm_to_vmem [thread:$0]  %s32_s17, 24576, %s34_s19, [#allocation6], %s7500_s23, %s7500_s23, %s7501_s24  }
   0x6   :  { %s20_s26 = sshll.u32 %s7502_s25, 4  ;;  %s7503_s27 = smov 512   ;;  %s21_s26 = int_to_ptr.vmem [resolvable:$true] %s20_s26 }
   0x7   :  { %s7504_s28 = smov 32   ;;  %s45_s30 = sshll.u32 %s7716_s3, 4  ;;  %s46_s30 = int_to_ptr.hbm [resolvable:$true] %s45_s30 }
   0x8   :  { %26 = dma.hbm_to_vmem [thread:$0]  %s19_s22, 50176, %s21_s26, [#allocation3], %s7503_s27, %s7503_s27, %s7504_s28  }
   0x9   :  { %s7505_s5 = smov [#allocation7]  }
   0xa   :  { %s47_s6 = sshll.u32 %s7505_s5, 4  ;;  %s48_s6 = int_to_ptr.vmem [resolvable:$true] %s47_s6 }
   0xb   :  { %50 = dma.hbm_to_vmem [thread:$0]  %s46_s30, 1024, %s48_s6, [#allocation6]  }
   0xc   :  { %7493 = dma.done.wait [#allocation3], 50176  }
   0xd   :  { %7494 = vsyncadd [#allocation3], 4294917120 }
   0xe   :  { %7495 = dma.done.wait [#allocation6], 25600  }
   0xf   :  { %7496 = vsyncadd [#allocation6], 4294941696  ;;  %v4807_v0 = vld [vmem:[#allocation2 + $0x1c0] sm:$0xf]  ;;  %vm2464_vm0 = vcmask 130048   ;;  %s4570_s16 = sshll.u32 %s7717_s4, 4  ;;  %s4571_s16 = int_to_ptr.hbm [resolvable:$true] %s4570_s16 }
  0x10   :  { %v6889_v1 = vld [vmem:[#allocation2 + $0x1dc] sm:$0xf0] }
  0x11   :  { %v5063_v2 = vld [vmem:[#allocation2 + $0x3c0] sm:$0xf]  ;;  %v4808_v3 = vor.u32 %v6889_v1, %v4807_v0 }
  0x12   :  { %v6953_v4 = vld [vmem:[#allocation2 + $0x3dc] sm:$0xf0] }
  0x13   :  { %v5319_v5 = vld [vmem:[#allocation2 + $0x5c0] sm:$0xf]  ;;  %v5064_v7 = vor.u32 %v6953_v4, %v5063_v2  ;;  %2468 = vmatpush.bf16.msra.mxu0 %v4808_v3 }
  0x14   :  { %v7017_v6 = vld [vmem:[#allocation2 + $0x5dc] sm:$0xf0] }
  0x15   :  { %v5320_v8 = vor.u32 %v7017_v6, %v5319_v5  ;;  %v5575_v9 = vld [vmem:[#allocation2 + $0x7c0] sm:$0xf]  ;;  %2481 = vmatpush.bf16.msra.mxu1 %v5064_v7 }
  0x16   :  { %v7081_v10 = vld [vmem:[#allocation2 + $0x7dc] sm:$0xf0] }
  0x17   :  { %v4775_v11 = vld [vmem:[#allocation2 + $0x180] sm:$0xf]  ;;  %v5576_v12 = vor.u32 %v7081_v10, %v5575_v9  ;;  %2494 = vmatpush.bf16.msra.mxu2 %v5320_v8 }
  0x18   :  { %v6881_v13 = vld [vmem:[#allocation2 + $0x19c] sm:$0xf0] }
  0x19   :  { %v5031_v14 = vld [vmem:[#allocation2 + $0x380] sm:$0xf]  ;;  %v4776_v16 = vor.u32 %v6881_v13, %v4775_v11  ;;  %2507 = vmatpush.bf16.msra.mxu3 %v5576_v12 }
  0x1a   :  { %v6945_v15 = vld [vmem:[#allocation2 + $0x39c] sm:$0xf0] }
  0x1b   :  { %v5032_v17 = vor.u32 %v6945_v15, %v5031_v14  ;;  %v5287_v18 = vld [vmem:[#allocation2 + $0x580] sm:$0xf]  ;;  %2469 = vmatpush.bf16.msra.mxu0 %v4776_v16 }
  0x1c   :  { %v7009_v19 = vld [vmem:[#allocation2 + $0x59c] sm:$0xf0] }
  0x1d   :  { %v5543_v20 = vld [vmem:[#allocation2 + $0x780] sm:$0xf]  ;;  %v5288_v21 = vor.u32 %v7009_v19, %v5287_v18  ;;  %2482 = vmatpush.bf16.msra.mxu1 %v5032_v17 }
  0x1e   :  { %v7073_v22 = vld [vmem:[#allocation2 + $0x79c] sm:$0xf0] }
  0x1f   :  { %v4743_v23 = vld [vmem:[#allocation2 + $0x140] sm:$0xf]  ;;  %v5544_v25 = vor.u32 %v7073_v22, %v5543_v20  ;;  %2495 = vmatpush.bf16.msra.mxu2 %v5288_v21 }
  0x20   :  { %v6873_v24 = vld [vmem:[#allocation2 + $0x15c] sm:$0xf0] }
  0x21   :  { %v4999_v26 = vld [vmem:[#allocation2 + $0x340] sm:$0xf]  ;;  %v4744_v29 = vor.u32 %v6873_v24, %v4743_v23  ;;  %2508 = vmatpush.bf16.msra.mxu3 %v5544_v25  ;;  %v65_v25 = vld [vmem:[%s7713_s0 + $0x8] sm:$0xff] }
  0x22   :  { %v6937_v27 = vld [vmem:[#allocation2 + $0x35c] sm:$0xf0] }
  0x23   :  { %v5255_v28 = vld [vmem:[#allocation2 + $0x540] sm:$0xf]  ;;  %v5000_v33 = vor.u32 %v6937_v27, %v4999_v26  ;;  %2470 = vmatpush.bf16.msra.mxu0 %v4744_v29 }
  0x24   :  { %v7001_v30 = vld [vmem:[#allocation2 + $0x55c] sm:$0xf0] }
  0x25   :  { %v5511_v31 = vld [vmem:[#allocation2 + $0x740] sm:$0xf]  ;;  %v5256_v34 = vor.u32 %v7001_v30, %v5255_v28  ;;  %2483 = vmatpush.bf16.msra.mxu1 %v5000_v33 }
  0x26   :  { %v7065_v32 = vld [vmem:[#allocation2 + $0x75c] sm:$0xf0] }
  0x27   :  { %v4711_v35 = vld [vmem:[#allocation2 + $0x100] sm:$0xf]  ;;  %v5512_v38 = vor.u32 %v7065_v32, %v5511_v31  ;;  %2496 = vmatpush.bf16.msra.mxu2 %v5256_v34  ;;  %v6885_v34 = vld [vmem:[#allocation2 + $0x1c4] sm:$0xf] }
  0x28   :  { %v6865_v36 = vld [vmem:[#allocation2 + $0x11c] sm:$0xf0] }
  0x29   :  { %v4967_v37 = vld [vmem:[#allocation2 + $0x300] sm:$0xf]  ;;  %v4712_v44 = vor.u32 %v6865_v36, %v4711_v35  ;;  %2509 = vmatpush.bf16.msra.mxu3 %v5512_v38  ;;  %v4809_v35 = vld [vmem:[#allocation2 + $0x1e0] sm:$0xf0]  ;;  %v486_v36 = vunpack.c.l.b16 %v65_v25 }
  0x2a   :  { %v6929_v39 = vld [vmem:[#allocation2 + $0x31c] sm:$0xf0] }
  0x2b   :  { %v5223_v40 = vld [vmem:[#allocation2 + $0x500] sm:$0xf]  ;;  %v4968_v45 = vor.u32 %v6929_v39, %v4967_v37  ;;  %2471 = vmatpush.bf16.msra.mxu0 %v4712_v44 }
  0x2c   :  { %v6993_v41 = vld [vmem:[#allocation2 + $0x51c] sm:$0xf0] }
  0x2d   :  { %v5479_v42 = vld [vmem:[#allocation2 + $0x700] sm:$0xf]  ;;  %v5224_v46 = vor.u32 %v6993_v41, %v5223_v40  ;;  %2484 = vmatpush.bf16.msra.mxu1 %v4968_v45 }
  0x2e   :  { %v7057_v43 = vld [vmem:[#allocation2 + $0x71c] sm:$0xf0] }
  0x2f   :  { %v4679_v47 = vld [vmem:[#allocation2 + $0xc0] sm:$0xf]  ;;  %v5480_v50 = vor.u32 %v7057_v43, %v5479_v42  ;;  %2497 = vmatpush.bf16.msra.mxu2 %v5224_v46  ;;  %v487_v42 = vunpack.c.h.b16 %v65_v25  ;;  %v6949_v46 = vld [vmem:[#allocation2 + $0x3c4] sm:$0xf] }
  0x30   :  { %v6857_v48 = vld [vmem:[#allocation2 + $0xdc] sm:$0xf0]  ;;  %v6925_v25 = vld [vmem:[#allocation2 + $0x304] sm:$0xf] }
  0x31   :  { %v4935_v49 = vld [vmem:[#allocation2 + $0x2c0] sm:$0xf]  ;;  %v4680_v56 = vor.u32 %v6857_v48, %v4679_v47  ;;  %2510 = vmatpush.bf16.msra.mxu3 %v5480_v50  ;;  %v5065_v47 = vld [vmem:[#allocation2 + $0x3e0] sm:$0xf0] }
  0x32   :  { %v6921_v51 = vld [vmem:[#allocation2 + $0x2dc] sm:$0xf0] }
  0x33   :  { %v5191_v52 = vld [vmem:[#allocation2 + $0x4c0] sm:$0xf]  ;;  %v4936_v57 = vor.u32 %v6921_v51, %v4935_v49  ;;  %2472 = vmatpush.bf16.msra.mxu0 %v4680_v56  ;;  %v4812_v49 = vor.u32 %v6885_v34, %v4809_v35  ;;  %v4777_v56 = vld [vmem:[#allocation2 + $0x1a0] sm:$0xf0] }
  0x34   :  { %v6985_v53 = vld [vmem:[#allocation2 + $0x4dc] sm:$0xf0]  ;;  %v4681_v34 = vld [vmem:[#allocation2 + $0xe0] sm:$0xf0] }
  0x35   :  { %v5447_v54 = vld [vmem:[#allocation2 + $0x6c0] sm:$0xf]  ;;  %v5192_v58 = vor.u32 %v6985_v53, %v5191_v52  ;;  %2485 = vmatpush.bf16.msra.mxu1 %v4936_v57  ;;  %v7547_v53 = vpack.c.b16 %v486_v36, %v486_v36 }
  0x36   :  { %v7049_v55 = vld [vmem:[#allocation2 + $0x6dc] sm:$0xf0] }
  0x37   :  { %v4647_v59 = vld [vmem:[#allocation2 + $0x80] sm:$0xf]  ;;  %v5448_v62 = vor.u32 %v7049_v55, %v5447_v54  ;;  %2498 = vmatpush.bf16.msra.mxu2 %v5192_v58  ;;  %v6877_v55 = vld [vmem:[#allocation2 + $0x184] sm:$0xf] }
  0x38   :  { %v6849_v60 = vld [vmem:[#allocation2 + $0x9c] sm:$0xf0] }
  0x39   :  { %v4903_v61 = vld [vmem:[#allocation2 + $0x280] sm:$0xf]  ;;  %v4648_v4 = vor.u32 %v6849_v60, %v4647_v59  ;;  %2511 = vmatpush.bf16.msra.mxu3 %v5448_v62  ;;  %v7551_v60 = vpack.c.b16 %v487_v42, %v487_v42 }
  0x3a   :  { %v6913_v63 = vld [vmem:[#allocation2 + $0x29c] sm:$0xf0] }
  0x3b   :  { %v5159_v0 = vld [vmem:[#allocation2 + $0x480] sm:$0xf]  ;;  %v4904_v5 = vor.u32 %v6913_v63, %v4903_v61  ;;  %2473 = vmatpush.bf16.msra.mxu0 %v4648_v4  ;;  %v5068_v61 = vor.u32 %v6949_v46, %v5065_v47  ;;  %v6941_v63 = vld [vmem:[#allocation2 + $0x384] sm:$0xf] }
  0x3c   :  { %v6977_v1 = vld [vmem:[#allocation2 + $0x49c] sm:$0xf0]  ;;  %v6845_v46 = vld [vmem:[#allocation2 + $0x84] sm:$0xf] }
  0x3d   :  { %v5415_v2 = vld [vmem:[#allocation2 + $0x680] sm:$0xf]  ;;  %v5160_v6 = vor.u32 %v6977_v1, %v5159_v0  ;;  %2486 = vmatpush.bf16.msra.mxu1 %v4904_v5  ;;  %v5033_v0 = vld [vmem:[#allocation2 + $0x3a0] sm:$0xf0] }
  0x3e   :  { %v7041_v3 = vld [vmem:[#allocation2 + $0x69c] sm:$0xf0]  ;;  %v4649_v47 = vld [vmem:[#allocation2 + $0xa0] sm:$0xf0] }
  0x3f   :  { %v4615_v7 = vld [vmem:[#allocation2 + $0x40] sm:$0xf]  ;;  %v5416_v10 = vor.u32 %v7041_v3, %v5415_v2  ;;  %2499 = vmatpush.bf16.msra.mxu2 %v5160_v6  ;;  %v4780_v2 = vor.u32 %v6877_v55, %v4777_v56  ;;  %v4652_v55 = vor.u32 %v6845_v46, %v4649_v47  ;;  %v6057_v46 = vld [vmem:[#allocation2 + $0xba0] sm:$0xf0] }
  0x40   :  { %v6841_v8 = vld [vmem:[#allocation2 + $0x5c] sm:$0xf0]  ;;  %v6997_v47 = vld [vmem:[#allocation2 + $0x544] sm:$0xf] }
  0x41   :  { %v4871_v9 = vld [vmem:[#allocation2 + $0x240] sm:$0xf]  ;;  %v4616_v17 = vor.u32 %v6841_v8, %v4615_v7  ;;  %2512 = vmatpush.bf16.msra.mxu3 %v5416_v10  ;;  %v6869_v7 = vld [vmem:[#allocation2 + $0x144] sm:$0xf]  ;;  %v5036_v10 = vor.u32 %v6941_v63, %v5033_v0 }
  0x42   :  { %v6905_v11 = vld [vmem:[#allocation2 + $0x25c] sm:$0xf0]  ;;  %v4745_v8 = vld [vmem:[#allocation2 + $0x160] sm:$0xf0] }
  0x43   :  { %v5127_v12 = vld [vmem:[#allocation2 + $0x440] sm:$0xf]  ;;  %v4872_v21 = vor.u32 %v6905_v11, %v4871_v9  ;;  %2474 = vmatpush.bf16.msra.mxu0 %v4616_v17  ;;  %v4617_v63 = vld [vmem:[#allocation2 + $0x60] sm:$0xf0] }
  0x44   :  { %v6969_v13 = vld [vmem:[#allocation2 + $0x45c] sm:$0xf0]  ;;  %v6901_v0 = vld [vmem:[#allocation2 + $0x244] sm:$0xf] }
  0x45   :  { %v5383_v14 = vld [vmem:[#allocation2 + $0x640] sm:$0xf]  ;;  %v5128_v22 = vor.u32 %v6969_v13, %v5127_v12  ;;  %2487 = vmatpush.bf16.msra.mxu1 %v4872_v21  ;;  %v6933_v12 = vld [vmem:[#allocation2 + $0x344] sm:$0xf] }
  0x46   :  { %v7033_v15 = vld [vmem:[#allocation2 + $0x65c] sm:$0xf0]  ;;  %v5001_v13 = vld [vmem:[#allocation2 + $0x360] sm:$0xf0] }
  0x47   :  { %v4583_v16 = vld [vmem:[#allocation2] sm:$0xf]  ;;  %v5384_v26 = vor.u32 %v7033_v15, %v5383_v14  ;;  %2500 = vmatpush.bf16.msra.mxu2 %v5128_v22  ;;  %v4748_v15 = vor.u32 %v6869_v7, %v4745_v8  ;;  %v4713_v21 = vld [vmem:[#allocation2 + $0x120] sm:$0xf0]  ;;  %v67_v22 = vld [vmem:[%s7713_s0 + $0x18] sm:$0xf] }
  0x48   :  { %v6833_v18 = vld [vmem:[#allocation2 + $0x1c] sm:$0xf0]  ;;  %v490_v35 = vunpack.c.l.b16 %v67_v22  ;;  %v5833_v22 = vld [vmem:[#allocation2 + $0x9e0] sm:$0xf0] }
  0x49   :  { %v4839_v19 = vld [vmem:[#allocation2 + $0x200] sm:$0xf]  ;;  %v4584_v33 = vor.u32 %v6833_v18, %v4583_v16  ;;  %2513 = vmatpush.bf16.msra.mxu3 %v5384_v26  ;;  %v4969_v26 = vld [vmem:[#allocation2 + $0x320] sm:$0xf0] }
  0x4a   :  { %v6897_v20 = vld [vmem:[#allocation2 + $0x21c] sm:$0xf0]  ;;  %v4972_v36 = vor.u32 %v6925_v25, %v4969_v26  ;;  %v6893_v26 = vld [vmem:[#allocation2 + $0x204] sm:$0xf] }
  0x4b   :  { %v5095_v23 = vld [vmem:[#allocation2 + $0x400] sm:$0xf]  ;;  %v4840_v38 = vor.u32 %v6897_v20, %v4839_v19  ;;  %2475 = vmatpush.bf16.msra.mxu0 %v4584_v33  ;;  %v6861_v20 = vld [vmem:[#allocation2 + $0x104] sm:$0xf] }
  0x4c   :  { %v6961_v24 = vld [vmem:[#allocation2 + $0x41c] sm:$0xf0]  ;;  %v6853_v33 = vld [vmem:[#allocation2 + $0xc4] sm:$0xf] }
  0x4d   :  { %v5351_v27 = vld [vmem:[#allocation2 + $0x600] sm:$0xf]  ;;  %v5096_v39 = vor.u32 %v6961_v24, %v5095_v23  ;;  %2488 = vmatpush.bf16.msra.mxu1 %v4840_v38  ;;  %v5004_v23 = vor.u32 %v6933_v12, %v5001_v13  ;;  %v6917_v38 = vld [vmem:[#allocation2 + $0x2c4] sm:$0xf] }
  0x4e   :  { %v7025_v28 = vld [vmem:[#allocation2 + $0x61c] sm:$0xf0]  ;;  %v6829_v12 = vld [vmem:[#allocation2 + $0x4] sm:$0xf] }
  0x4f   :  { %v5831_v29 = vld [vmem:[#allocation2 + $0x9c0] sm:$0xf]  ;;  %v5352_v43 = vor.u32 %v7025_v28, %v5351_v27  ;;  %2501 = vmatpush.bf16.msra.mxu2 %v5096_v39  ;;  %v4716_v28 = vor.u32 %v6861_v20, %v4713_v21  ;;  %v4937_v39 = vld [vmem:[#allocation2 + $0x2e0] sm:$0xf0] }
  0x50   :  { %v7145_v30 = vld [vmem:[#allocation2 + $0x9dc] sm:$0xf0]  ;;  %v4585_v13 = vld [vmem:[#allocation2 + $0x20] sm:$0xf0] }
  0x51   :  { %v6087_v31 = vld [vmem:[#allocation2 + $0xbc0] sm:$0xf]  ;;  %v5832_v44 = vor.u32 %v7145_v30, %v5831_v29  ;;  %2514 = vmatpush.bf16.msra.mxu3 %v5352_v43  ;;  %v7141_v21 = vld [vmem:[#allocation2 + $0x9c4] sm:$0xf]  ;;  %v4588_v25 = vor.u32 %v6829_v12, %v4585_v13 }
  0x52   :  { %v7209_v32 = vld [vmem:[#allocation2 + $0xbdc] sm:$0xf0]  ;;  %2502 = vmatmul.bf16.vlgmr.msra.gmra.mxu2 %v7547_v53  ;;  %v6981_v12 = vld [vmem:[#allocation2 + $0x4c4] sm:$0xf] }
  0x53   :  { %v64_v37 = vld [vmem:[%s7713_s0] sm:$0xff]  ;;  %v6088_v48 = vor.u32 %v7209_v32, %v6087_v31  ;;  %2520 = vmatpush.bf16.msrb.mxu0 %v5832_v44 }
  0x54   :  { %v6119_v40 = vld [vmem:[#allocation2 + $0xc00] sm:$0xf]  ;;  %v484_v41 = vunpack.c.l.b16 %v64_v37  ;;  %v485_v58 = vunpack.c.h.b16 %v64_v37  ;;  %2515 = vmatmul.bf16.vlgmr.msra.gmra.mxu3 %v7551_v60 }
  0x55   :  { %v7217_v45 = vld [vmem:[#allocation2 + $0xc1c] sm:$0xf0]  ;;  %2533 = vmatpush.bf16.msrb.mxu1 %v6088_v48  ;;  %2559 = vmatpush.bf16.msrb.mxu3 %v4812_v49  ;;  %v7562_v48 = vpack.c.b16 %v490_v35, %v490_v35  ;;  %v4940_v49 = vor.u32 %v6917_v38, %v4937_v39  ;;  %v5289_v35 = vld [vmem:[#allocation2 + $0x5a0] sm:$0xf0] }
  0x56   :  { %v5799_v50 = vld [vmem:[#allocation2 + $0x980] sm:$0xf]  ;;  %v7549_v57 = vpack.c.b16 %v484_v41, %v484_v41  ;;  %v6120_v59 = vor.u32 %v7217_v45, %v6119_v40  ;;  %v7555_v9 = vpack.c.b16 %v485_v58, %v485_v58  ;;  %v4684_v41 = vor.u32 %v6853_v33, %v4681_v34 }
  0x57   :  { %v7137_v51 = vld [vmem:[#allocation2 + $0x99c] sm:$0xf0]  ;;  %v5836_v33 = vor.u32 %v7141_v21, %v5833_v22  ;;  %v7173_v22 = vld [vmem:[#allocation2 + $0xac4] sm:$0xf] }
  0x58   :  { %v6055_v52 = vld [vmem:[#allocation2 + $0xb80] sm:$0xf]  ;;  %v5800_v62 = vor.u32 %v7137_v51, %v5799_v50  ;;  %2476 = vmatmul.bf16.vlgmr.msra.gmra.mxu0 %v7549_v57  ;;  %2553 = vmatpush.bf16.msrb.mxu2 %v6120_v59  ;;  %v6909_v51 = vld [vmem:[#allocation2 + $0x284] sm:$0xf] }
  0x59   :  { %v7201_v54 = vld [vmem:[#allocation2 + $0xb9c] sm:$0xf0]  ;;  %2560 = vmatpush.bf16.msrb.mxu3 %v4780_v2  ;;  %2489 = vmatmul.bf16.vlgmr.msra.gmra.mxu1 %v7555_v9 }
  0x5a   :  { %v6056_v1 = vor.u32 %v7201_v54, %v6055_v52  ;;  %v5767_v3 = vld [vmem:[#allocation2 + $0x940] sm:$0xf]  ;;  %2521 = vmatpush.bf16.msrb.mxu0 %v5800_v62  ;;  %v4905_v52 = vld [vmem:[#allocation2 + $0x2a0] sm:$0xf0] }
  0x5b   :  { %v7129_v4 = vld [vmem:[#allocation2 + $0x95c] sm:$0xf0]  ;;  %v6837_v62 = vld [vmem:[#allocation2 + $0x44] sm:$0xf] }
  0x5c   :  { %v6023_v5 = vld [vmem:[#allocation2 + $0xb40] sm:$0xf]  ;;  %2572 = vmatpush.bf16.msra.mxu2 %v5068_v61  ;;  %v5768_v11 = vor.u32 %v7129_v4, %v5767_v3  ;;  %2534 = vmatpush.bf16.msrb.mxu1 %v6056_v1  ;;  %v4908_v1 = vor.u32 %v6909_v51, %v4905_v52  ;;  %v4873_v3 = vld [vmem:[#allocation2 + $0x260] sm:$0xf0]  ;;  %v4620_v7 = vor.u32 %v6837_v62, %v4617_v63 }
  0x5d   :  { %v7193_v6 = vld [vmem:[#allocation2 + $0xb5c] sm:$0xf0]  ;;  %2561 = vmatpush.bf16.msrb.mxu3 %v4748_v15  ;;  %v5321_v15 = vld [vmem:[#allocation2 + $0x5e0] sm:$0xf0] }
  0x5e   :  { %v6024_v14 = vor.u32 %v7193_v6, %v6023_v5  ;;  %v5735_v16 = vld [vmem:[#allocation2 + $0x900] sm:$0xf]  ;;  %2522 = vmatpush.bf16.msrb.mxu0 %v5768_v11  ;;  %v66_v5 = vld [vmem:[%s7713_s0 + $0x10] sm:$0xff]  ;;  %v7061_v51 = vld [vmem:[#allocation2 + $0x744] sm:$0xf]  ;;  %s7506_s0 = smov [#allocation8]  }
  0x5f   :  { %v7121_v17 = vld [vmem:[#allocation2 + $0x91c] sm:$0xf0]  ;;  %v5513_v52 = vld [vmem:[#allocation2 + $0x760] sm:$0xf0]  ;;  %s4568_s13 = sshll.u32 %s7506_s0, 4  ;;  %s4569_s13 = int_to_ptr.vmem [resolvable:$true] %s4568_s13 }
  0x60   :  { %v5991_v18 = vld [vmem:[#allocation2 + $0xb00] sm:$0xf]  ;;  %2573 = vmatpush.bf16.msra.mxu2 %v5036_v10  ;;  %v5736_v24 = vor.u32 %v7121_v17, %v5735_v16  ;;  %2535 = vmatpush.bf16.msrb.mxu1 %v6024_v14  ;;  %v7013_v14 = vld [vmem:[#allocation2 + $0x5c4] sm:$0xf] }
  0x61   :  { %v7185_v19 = vld [vmem:[#allocation2 + $0xb1c] sm:$0xf0]  ;;  %2562 = vmatpush.bf16.msrb.mxu3 %v4716_v28  ;;  %v7077_v16 = vld [vmem:[#allocation2 + $0x7c4] sm:$0xf]  ;;  %v5324_v28 = vor.u32 %v7013_v14, %v5321_v15 }
  0x62   :  { %v5992_v27 = vor.u32 %v7185_v19, %v5991_v18  ;;  %v5703_v29 = vld [vmem:[#allocation2 + $0x8c0] sm:$0xf]  ;;  %2523 = vmatpush.bf16.msrb.mxu0 %v5736_v24  ;;  %6149 = vmatmul.msk.bf16.vlgmr.msrb.gmra.mxu2 %vm2464_vm0, %v7562_v48  ;;  %v5577_v17 = vld [vmem:[#allocation2 + $0x7e0] sm:$0xf0]  ;;  %v488_v18 = vunpack.c.l.b16 %v66_v5  ;;  %v4876_v19 = vor.u32 %v6901_v0, %v4873_v3 }
  0x63   :  { %v7113_v30 = vld [vmem:[#allocation2 + $0x8dc] sm:$0xf0]  ;;  %v6025_v62 = vld [vmem:[#allocation2 + $0xb60] sm:$0xf0] }
  0x64   :  { %v5959_v31 = vld [vmem:[#allocation2 + $0xac0] sm:$0xf]  ;;  %2574 = vmatpush.bf16.msra.mxu2 %v5004_v23  ;;  %v5704_v37 = vor.u32 %v7113_v30, %v5703_v29  ;;  %2536 = vmatpush.bf16.msrb.mxu1 %v5992_v27  ;;  %v489_v23 = vunpack.c.h.b16 %v66_v5  ;;  %v4841_v27 = vld [vmem:[#allocation2 + $0x220] sm:$0xf0]  ;;  %v5580_v29 = vor.u32 %v7077_v16, %v5577_v17  ;;  %v7569_v34 = vpack.c.b16 %v488_v18, %v488_v18 }
  0x65   :  { %v7177_v32 = vld [vmem:[#allocation2 + $0xadc] sm:$0xf0]  ;;  %2563 = vmatpush.bf16.msrb.mxu3 %v4684_v41  ;;  %v7205_v30 = vld [vmem:[#allocation2 + $0xbc4] sm:$0xf]  ;;  %v4844_v38 = vor.u32 %v6893_v26, %v4841_v27 }
  0x66   :  { %v5960_v40 = vor.u32 %v7177_v32, %v5959_v31  ;;  %v5671_v42 = vld [vmem:[#allocation2 + $0x880] sm:$0xf]  ;;  %2524 = vmatpush.bf16.msrb.mxu0 %v5704_v37  ;;  %v6089_v31 = vld [vmem:[#allocation2 + $0xbe0] sm:$0xf0]  ;;  %v7571_v39 = vpack.c.b16 %v489_v23, %v489_v23 }
  0x67   :  { %v7105_v43 = vld [vmem:[#allocation2 + $0x89c] sm:$0xf0]  ;;  %v7005_v32 = vld [vmem:[#allocation2 + $0x584] sm:$0xf] }
  0x68   :  { %v5927_v44 = vld [vmem:[#allocation2 + $0xa80] sm:$0xf]  ;;  %2575 = vmatpush.bf16.msra.mxu2 %v4972_v36  ;;  %v5672_v50 = vor.u32 %v7105_v43, %v5671_v42  ;;  %2537 = vmatpush.bf16.msrb.mxu1 %v5960_v40  ;;  %v7069_v36 = vld [vmem:[#allocation2 + $0x784] sm:$0xf]  ;;  %v6092_v42 = vor.u32 %v7205_v30, %v6089_v31  ;;  %v5292_v43 = vor.u32 %v7005_v32, %v5289_v35 }
  0x69   :  { %v7169_v45 = vld [vmem:[#allocation2 + $0xa9c] sm:$0xf0]  ;;  %2564 = vmatpush.bf16.msrb.mxu3 %v4652_v55  ;;  %v5545_v37 = vld [vmem:[#allocation2 + $0x7a0] sm:$0xf0] }
  0x6a   :  { %v5928_v54 = vor.u32 %v7169_v45, %v5927_v44  ;;  %v5639_v56 = vld [vmem:[#allocation2 + $0x840] sm:$0xf]  ;;  %2525 = vmatpush.bf16.msrb.mxu0 %v5672_v50  ;;  %v7133_v40 = vld [vmem:[#allocation2 + $0x984] sm:$0xf]  ;;  %v5548_v44 = vor.u32 %v7069_v36, %v5545_v37 }
  0x6b   :  { %v7097_v58 = vld [vmem:[#allocation2 + $0x85c] sm:$0xf0]  ;;  %v5801_v41 = vld [vmem:[#allocation2 + $0x9a0] sm:$0xf0] }
  0x6c   :  { %v5895_v59 = vld [vmem:[#allocation2 + $0xa40] sm:$0xf]  ;;  %2576 = vmatpush.bf16.msra.mxu2 %v4940_v49  ;;  %v5640_v2 = vor.u32 %v7097_v58, %v5639_v56  ;;  %2538 = vmatpush.bf16.msrb.mxu1 %v5928_v54  ;;  %v7197_v45 = vld [vmem:[#allocation2 + $0xb84] sm:$0xf]  ;;  %v5804_v49 = vor.u32 %v7133_v40, %v5801_v41 }
  0x6d   :  { %v7161_v61 = vld [vmem:[#allocation2 + $0xa5c] sm:$0xf0]  ;;  %2565 = vmatpush.bf16.msrb.mxu3 %v4620_v7  ;;  %v5257_v50 = vld [vmem:[#allocation2 + $0x560] sm:$0xf0]  ;;  %v6060_v56 = vor.u32 %v7197_v45, %v6057_v46 }
  0x6e   :  { %v5607_v4 = vld [vmem:[#allocation2 + $0x800] sm:$0xf]  ;;  %v5896_v6 = vor.u32 %v7161_v61, %v5895_v59  ;;  %2526 = vmatpush.bf16.msrb.mxu0 %v5640_v2  ;;  %v7125_v54 = vld [vmem:[#allocation2 + $0x944] sm:$0xf]  ;;  %v5260_v58 = vor.u32 %v6997_v47, %v5257_v50  ;;  %v5516_v59 = vor.u32 %v7061_v51, %v5513_v52 }
  0x6f   :  { %v7089_v8 = vld [vmem:[#allocation2 + $0x81c] sm:$0xf0]  ;;  %v5769_v55 = vld [vmem:[#allocation2 + $0x960] sm:$0xf0] }
  0x70   :  { %v5863_v10 = vld [vmem:[#allocation2 + $0xa00] sm:$0xf]  ;;  %2577 = vmatpush.bf16.msra.mxu2 %v4908_v1  ;;  %v5608_v20 = vor.u32 %v7089_v8, %v5607_v4  ;;  %2539 = vmatpush.bf16.msrb.mxu1 %v5896_v6  ;;  %v7189_v61 = vld [vmem:[#allocation2 + $0xb44] sm:$0xf]  ;;  %v5772_v0 = vor.u32 %v7125_v54, %v5769_v55 }
  0x71   :  { %v7153_v11 = vld [vmem:[#allocation2 + $0xa1c] sm:$0xf0]  ;;  %2566 = vmatpush.bf16.msrb.mxu3 %v4588_v25  ;;  %v6989_v63 = vld [vmem:[#allocation2 + $0x504] sm:$0xf]  ;;  %v6028_v6 = vor.u32 %v7189_v61, %v6025_v62  ;;  %v4815_v61 = vld [vmem:[#allocation2 + $0x1c8] sm:$0xf] }
  0x72   :  { %v5864_v24 = vor.u32 %v7153_v11, %v5863_v10  ;;  %2527 = vmatpush.bf16.msrb.mxu0 %v5608_v20  ;;  %v5225_v1 = vld [vmem:[#allocation2 + $0x520] sm:$0xf0]  ;;  %v6890_v62 = vld [vmem:[#allocation2 + $0x1e4] sm:$0xf0] }
  0x73   :  { %v7053_v2 = vld [vmem:[#allocation2 + $0x704] sm:$0xf]  ;;  %v5228_v7 = vor.u32 %v6989_v63, %v5225_v1  ;;  %v5071_v63 = vld [vmem:[#allocation2 + $0x3c8] sm:$0xf] }
  0x74   :  { %2578 = vmatpush.bf16.msra.mxu2 %v4876_v19  ;;  %2540 = vmatpush.bf16.msrb.mxu1 %v5864_v24  ;;  %v5481_v3 = vld [vmem:[#allocation2 + $0x720] sm:$0xf0]  ;;  %v6954_v1 = vld [vmem:[#allocation2 + $0x3e4] sm:$0xf0] }
  0x75   :  { %2611 = vmatpush.bf16.msra.mxu3 %v5836_v33  ;;  %2528 = vmatmul.bf16.vlgmr.msrb.gmra.mxu0 %v7569_v34  ;;  %v7117_v4 = vld [vmem:[#allocation2 + $0x904] sm:$0xf]  ;;  %v5484_v8 = vor.u32 %v7053_v2, %v5481_v3 }
  0x76   :  { %2585 = vmatpush.bf16.msra.mxu0 %v5324_v28  ;;  %2567 = vmatmul.bf16.vlgmr.msrb.gmra.mxu3 %v7549_v57  ;;  %v5737_v5 = vld [vmem:[#allocation2 + $0x920] sm:$0xf0] }
  0x77   :  { %2541 = vmatmul.bf16.vlgmr.msrb.gmra.mxu1 %v7571_v39  ;;  %v7181_v10 = vld [vmem:[#allocation2 + $0xb04] sm:$0xf]  ;;  %v5740_v13 = vor.u32 %v7117_v4, %v5737_v5 }
  0x78   :  { %2598 = vmatpush.bf16.msra.mxu1 %v5580_v29  ;;  %2579 = vmatpush.bf16.msra.mxu2 %v4844_v38  ;;  %v5993_v11 = vld [vmem:[#allocation2 + $0xb20] sm:$0xf0] }
  0x79   :  { %2612 = vmatpush.bf16.msra.mxu3 %v5804_v49  ;;  %v5193_v14 = vld [vmem:[#allocation2 + $0x4e0] sm:$0xf0]  ;;  %v5996_v19 = vor.u32 %v7181_v10, %v5993_v11  ;;  %v4816_v11 = vor.u32 %v6890_v62, %v4815_v61  ;;  %v6858_v61 = vld [vmem:[#allocation2 + $0xe4] sm:$0xf0] }
  0x7a   :  { %2586 = vmatpush.bf16.msra.mxu0 %v5292_v43  ;;  %v7045_v15 = vld [vmem:[#allocation2 + $0x6c4] sm:$0xf]  ;;  %v5196_v20 = vor.u32 %v6981_v12, %v5193_v14  ;;  %v7018_v12 = vld [vmem:[#allocation2 + $0x5e4] sm:$0xf0] }
  0x7b   :  { %2580 = vmatmul.bf16.vlgmr.msra.gmra.mxu2 %v7555_v9  ;;  %v5449_v16 = vld [vmem:[#allocation2 + $0x6e0] sm:$0xf0]  ;;  %v7082_v14 = vld [vmem:[#allocation2 + $0x7e4] sm:$0xf0] }
  0x7c   :  { %2624 = vmatpush.bf16.msrb.mxu2 %v6092_v42  ;;  %2599 = vmatpush.bf16.msra.mxu1 %v5548_v44  ;;  %v7109_v17 = vld [vmem:[#allocation2 + $0x8c4] sm:$0xf]  ;;  %v5452_v21 = vor.u32 %v7045_v15, %v5449_v16  ;;  %v5072_v15 = vor.u32 %v6954_v1, %v5071_v63  ;;  %v4943_v62 = vld [vmem:[#allocation2 + $0x2c8] sm:$0xf] }
  0x7d   :  { %2613 = vmatpush.bf16.msra.mxu3 %v5772_v0  ;;  %v5705_v18 = vld [vmem:[#allocation2 + $0x8e0] sm:$0xf0]  ;;  %v6922_v63 = vld [vmem:[#allocation2 + $0x2e4] sm:$0xf0] }
  0x7e   :  { %2587 = vmatpush.bf16.msra.mxu0 %v5260_v58  ;;  %v5961_v23 = vld [vmem:[#allocation2 + $0xae0] sm:$0xf0]  ;;  %v5708_v25 = vor.u32 %v7109_v17, %v5705_v18  ;;  %v4783_v17 = vld [vmem:[#allocation2 + $0x188] sm:$0xf] }
  0x7f   :  { %v6973_v24 = vld [vmem:[#allocation2 + $0x484] sm:$0xf]  ;;  %v5964_v31 = vor.u32 %v7173_v22, %v5961_v23  ;;  %v6882_v18 = vld [vmem:[#allocation2 + $0x1a4] sm:$0xf0] }
  0x80   :  { %2625 = vmatpush.bf16.msrb.mxu2 %v6060_v56  ;;  %2600 = vmatpush.bf16.msra.mxu1 %v5516_v59  ;;  %v5161_v26 = vld [vmem:[#allocation2 + $0x4a0] sm:$0xf0] }
  0x81   :  { %2614 = vmatpush.bf16.msra.mxu3 %v5740_v13  ;;  %v7037_v27 = vld [vmem:[#allocation2 + $0x684] sm:$0xf]  ;;  %v5164_v32 = vor.u32 %v6973_v24, %v5161_v26  ;;  %v5583_v13 = vld [vmem:[#allocation2 + $0x7c8] sm:$0xf] }
  0x82   :  { %2588 = vmatpush.bf16.msra.mxu0 %v5228_v7  ;;  %v5417_v28 = vld [vmem:[#allocation2 + $0x6a0] sm:$0xf0]  ;;  %v5584_v23 = vor.u32 %v7082_v14, %v5583_v13  ;;  %v5295_v24 = vld [vmem:[#allocation2 + $0x588] sm:$0xf] }
  0x83   :  { %v7101_v29 = vld [vmem:[#allocation2 + $0x884] sm:$0xf]  ;;  %v5420_v33 = vor.u32 %v7037_v27, %v5417_v28  ;;  %v7010_v26 = vld [vmem:[#allocation2 + $0x5a4] sm:$0xf0] }
  0x84   :  { %2626 = vmatpush.bf16.msrb.mxu2 %v6028_v6  ;;  %2601 = vmatpush.bf16.msra.mxu1 %v5484_v8  ;;  %v5673_v30 = vld [vmem:[#allocation2 + $0x8a0] sm:$0xf0]  ;;  %v5327_v8 = vld [vmem:[#allocation2 + $0x5c8] sm:$0xf] }
  0x85   :  { %v7165_v35 = vld [vmem:[#allocation2 + $0xa84] sm:$0xf]  ;;  %2615 = vmatpush.bf16.msra.mxu3 %v5708_v25  ;;  %v5676_v38 = vor.u32 %v7101_v29, %v5673_v30  ;;  %v5328_v22 = vor.u32 %v7018_v12, %v5327_v8  ;;  %v4784_v25 = vor.u32 %v6882_v18, %v4783_v17  ;;  %v5551_v27 = vld [vmem:[#allocation2 + $0x788] sm:$0xf] }
  0x86   :  { %2589 = vmatpush.bf16.msra.mxu0 %v5196_v20  ;;  %v5929_v36 = vld [vmem:[#allocation2 + $0xaa0] sm:$0xf0]  ;;  %v5039_v20 = vld [vmem:[#allocation2 + $0x388] sm:$0xf] }
  0x87   :  { %v6965_v37 = vld [vmem:[#allocation2 + $0x444] sm:$0xf]  ;;  %v5932_v45 = vor.u32 %v7165_v35, %v5929_v36  ;;  %v7074_v28 = vld [vmem:[#allocation2 + $0x7a4] sm:$0xf0]  ;;  %v5296_v35 = vor.u32 %v7010_v26, %v5295_v24 }
  0x88   :  { %2627 = vmatpush.bf16.msrb.mxu2 %v5996_v19  ;;  %2602 = vmatpush.bf16.msra.mxu1 %v5452_v21  ;;  %v5129_v40 = vld [vmem:[#allocation2 + $0x460] sm:$0xf0]  ;;  %v6946_v21 = vld [vmem:[#allocation2 + $0x3a4] sm:$0xf0]  ;;  %v5552_v36 = vor.u32 %v7074_v28, %v5551_v27 }
  0x89   :  { %v7029_v41 = vld [vmem:[#allocation2 + $0x644] sm:$0xf]  ;;  %v5132_v49 = vor.u32 %v6965_v37, %v5129_v40  ;;  %2616 = vmatpush.bf16.msra.mxu3 %v5676_v38  ;;  %v5040_v29 = vor.u32 %v6946_v21, %v5039_v20  ;;  %v4751_v30 = vld [vmem:[#allocation2 + $0x148] sm:$0xf] }
  0x8a   :  { %v5385_v42 = vld [vmem:[#allocation2 + $0x660] sm:$0xf0]  ;;  %2590 = vmatpush.bf16.msra.mxu0 %v5164_v32  ;;  %v5007_v32 = vld [vmem:[#allocation2 + $0x348] sm:$0xf] }
  0x8b   :  { %v7093_v43 = vld [vmem:[#allocation2 + $0x844] sm:$0xf]  ;;  %v5388_v50 = vor.u32 %v7029_v41, %v5385_v42  ;;  %v5263_v37 = vld [vmem:[#allocation2 + $0x548] sm:$0xf] }
  0x8c   :  { %v5641_v44 = vld [vmem:[#allocation2 + $0x860] sm:$0xf0]  ;;  %2628 = vmatpush.bf16.msrb.mxu2 %v5964_v31  ;;  %2603 = vmatpush.bf16.msra.mxu1 %v5420_v33  ;;  %v6874_v31 = vld [vmem:[#allocation2 + $0x164] sm:$0xf0] }
  0x8d   :  { %v7157_v46 = vld [vmem:[#allocation2 + $0xa44] sm:$0xf]  ;;  %v5644_v55 = vor.u32 %v7093_v43, %v5641_v44  ;;  %v6938_v33 = vld [vmem:[#allocation2 + $0x364] sm:$0xf0]  ;;  %v4752_v38 = vor.u32 %v6874_v31, %v4751_v30 }
  0x8e   :  { %v5897_v47 = vld [vmem:[#allocation2 + $0xa60] sm:$0xf0]  ;;  %2591 = vmatpush.bf16.msra.mxu0 %v5132_v49  ;;  %v7002_v40 = vld [vmem:[#allocation2 + $0x564] sm:$0xf0]  ;;  %v5008_v43 = vor.u32 %v6938_v33, %v5007_v32 }
  0x8f   :  { %v6957_v51 = vld [vmem:[#allocation2 + $0x404] sm:$0xf]  ;;  %v5900_v0 = vor.u32 %v7157_v46, %v5897_v47  ;;  %2617 = vmatpush.bf16.msra.mxu3 %v5644_v55  ;;  %v5519_v41 = vld [vmem:[#allocation2 + $0x748] sm:$0xf]  ;;  %v5264_v49 = vor.u32 %v7002_v40, %v5263_v37 }
  0x90   :  { %v5097_v52 = vld [vmem:[#allocation2 + $0x420] sm:$0xf0]  ;;  %2629 = vmatpush.bf16.msrb.mxu2 %v5932_v45  ;;  %2604 = vmatpush.bf16.msra.mxu1 %v5388_v50  ;;  %v7066_v42 = vld [vmem:[#allocation2 + $0x764] sm:$0xf0] }
  0x91   :  { %v7021_v54 = vld [vmem:[#allocation2 + $0x604] sm:$0xf]  ;;  %v5100_v4 = vor.u32 %v6957_v51, %v5097_v52  ;;  %v4719_v44 = vld [vmem:[#allocation2 + $0x108] sm:$0xf]  ;;  %v5520_v50 = vor.u32 %v7066_v42, %v5519_v41 }
  0x92   :  { %v5353_v56 = vld [vmem:[#allocation2 + $0x620] sm:$0xf0]  ;;  %v6866_v45 = vld [vmem:[#allocation2 + $0x124] sm:$0xf0] }
  0x93   :  { %v7085_v58 = vld [vmem:[#allocation2 + $0x804] sm:$0xf]  ;;  %v5356_v5 = vor.u32 %v7021_v54, %v5353_v56  ;;  %2592 = vmatpush.bf16.msra.mxu0 %v5100_v4  ;;  %v4975_v46 = vld [vmem:[#allocation2 + $0x308] sm:$0xf]  ;;  %v4720_v52 = vor.u32 %v6866_v45, %v4719_v44 }
  0x94   :  { %v5609_v59 = vld [vmem:[#allocation2 + $0x820] sm:$0xf0]  ;;  %2630 = vmatpush.bf16.msrb.mxu2 %v5900_v0  ;;  %v6930_v47 = vld [vmem:[#allocation2 + $0x324] sm:$0xf0] }
  0x95   :  { %v7213_v2 = vld [vmem:[#allocation2 + $0xc04] sm:$0xf]  ;;  %v5612_v10 = vor.u32 %v7085_v58, %v5609_v59  ;;  %2605 = vmatpush.bf16.msra.mxu1 %v5356_v5  ;;  %v5231_v51 = vld [vmem:[#allocation2 + $0x508] sm:$0xf]  ;;  %v4976_v58 = vor.u32 %v6930_v47, %v4975_v46 }
  0x96   :  { %v6121_v3 = vld [vmem:[#allocation2 + $0xc20] sm:$0xf0]  ;;  %2593 = vmatmul.bf16.vlgmr.msra.gmra.mxu0 %v7547_v53  ;;  %v6994_v54 = vld [vmem:[#allocation2 + $0x524] sm:$0xf0] }
  0x97   :  { %v7149_v6 = vld [vmem:[#allocation2 + $0xa04] sm:$0xf]  ;;  %v6124_v16 = vor.u32 %v7213_v2, %v6121_v3  ;;  %2618 = vmatpush.bf16.msra.mxu3 %v5612_v10  ;;  %v5487_v55 = vld [vmem:[#allocation2 + $0x708] sm:$0xf]  ;;  %v5232_v0 = vor.u32 %v6994_v54, %v5231_v51  ;;  %v6886_v51 = vld [vmem:[#allocation2 + $0x1cc] sm:$0xf] }
  0x98   :  { %v5865_v7 = vld [vmem:[#allocation2 + $0xa20] sm:$0xf0]  ;;  %2606 = vmatmul.bf16.vlgmr.msra.gmra.mxu1 %v7551_v60  ;;  %v7058_v56 = vld [vmem:[#allocation2 + $0x724] sm:$0xf0] }
  0x99   :  { %v5868_v19 = vor.u32 %v7149_v6, %v5865_v7  ;;  %2650 = vmatpush.bf16.msrb.mxu1 %v4816_v11  ;;  %2644 = vmatpush.bf16.msrb.mxu0 %v6124_v16  ;;  %v4687_v59 = vld [vmem:[#allocation2 + $0xc8] sm:$0xf]  ;;  %v5488_v1 = vor.u32 %v7058_v56, %v5487_v55  ;;  %v4944_v7 = vor.u32 %v6922_v63, %v4943_v62  ;;  %v4817_v55 = vld [vmem:[#allocation2 + $0x1e8] sm:$0xf0] }
  0x9a   :  { %2619 = vmatmul.bf16.vlgmr.msra.gmra.mxu3 %v7569_v34  ;;  %v5199_v2 = vld [vmem:[#allocation2 + $0x4c8] sm:$0xf]  ;;  %v4688_v3 = vor.u32 %v6858_v61, %v4687_v59 }
  0x9b   :  { %2663 = vmatpush.bf16.msrb.mxu3 %v5072_v15  ;;  %2631 = vmatpush.bf16.msrb.mxu2 %v5868_v19  ;;  %v6986_v4 = vld [vmem:[#allocation2 + $0x4e4] sm:$0xf0] }
  0x9c   :  { %v5455_v5 = vld [vmem:[#allocation2 + $0x6c8] sm:$0xf]  ;;  %v5200_v13 = vor.u32 %v6986_v4, %v5199_v2 }
  0x9d   :  { %2676 = vmatpush.bf16.msra.mxu0 %v5328_v22  ;;  %2651 = vmatpush.bf16.msrb.mxu1 %v4784_v25  ;;  %v7050_v6 = vld [vmem:[#allocation2 + $0x6e4] sm:$0xf0] }
  0x9e   :  { %2632 = vmatmul.bf16.vlgmr.msrb.gmra.mxu2 %v7571_v39  ;;  %v4655_v8 = vld [vmem:[#allocation2 + $0x88] sm:$0xf]  ;;  %v5456_v14 = vor.u32 %v7050_v6, %v5455_v5  ;;  %v6950_v5 = vld [vmem:[#allocation2 + $0x3cc] sm:$0xf] }
  0x9f   :  { %2689 = vmatpush.bf16.msra.mxu2 %v5584_v23  ;;  %2664 = vmatpush.bf16.msrb.mxu3 %v5040_v29  ;;  %v6850_v10 = vld [vmem:[#allocation2 + $0xa4] sm:$0xf0]  ;;  %v5073_v6 = vld [vmem:[#allocation2 + $0x3e8] sm:$0xf0] }
  0xa0   :  { %v4911_v11 = vld [vmem:[#allocation2 + $0x288] sm:$0xf]  ;;  %v4656_v16 = vor.u32 %v6850_v10, %v4655_v8  ;;  %v6878_v8 = vld [vmem:[#allocation2 + $0x18c] sm:$0xf] }
  0xa1   :  { %2677 = vmatpush.bf16.msra.mxu0 %v5296_v35  ;;  %2652 = vmatpush.bf16.msrb.mxu1 %v4752_v38  ;;  %v6914_v12 = vld [vmem:[#allocation2 + $0x2a4] sm:$0xf0]  ;;  %v4785_v10 = vld [vmem:[#allocation2 + $0x1a8] sm:$0xf0] }
  0xa2   :  { %v5167_v15 = vld [vmem:[#allocation2 + $0x488] sm:$0xf]  ;;  %v4912_v20 = vor.u32 %v6914_v12, %v4911_v11 }
  0xa3   :  { %2690 = vmatpush.bf16.msra.mxu2 %v5552_v36  ;;  %2665 = vmatpush.bf16.msrb.mxu3 %v5008_v43  ;;  %v6978_v17 = vld [vmem:[#allocation2 + $0x4a4] sm:$0xf0] }
  0xa4   :  { %v5423_v18 = vld [vmem:[#allocation2 + $0x688] sm:$0xf]  ;;  %v5168_v25 = vor.u32 %v6978_v17, %v5167_v15  ;;  %v4788_v17 = vor.u32 %v6878_v8, %v4785_v10  ;;  %v6910_v8 = vld [vmem:[#allocation2 + $0x28c] sm:$0xf] }
  0xa5   :  { %2678 = vmatpush.bf16.msra.mxu0 %v5264_v49  ;;  %2653 = vmatpush.bf16.msrb.mxu1 %v4720_v52  ;;  %v7042_v19 = vld [vmem:[#allocation2 + $0x6a4] sm:$0xf0]  ;;  %v4913_v10 = vld [vmem:[#allocation2 + $0x2a8] sm:$0xf0] }
  0xa6   :  { %v4623_v21 = vld [vmem:[#allocation2 + $0x48] sm:$0xf]  ;;  %6150 = vmatmul.msk.bf16.vlgmr.msrb.gmra.mxu0 %vm2464_vm0, %v7562_v48  ;;  %v5424_v26 = vor.u32 %v7042_v19, %v5423_v18  ;;  %v6942_v18 = vld [vmem:[#allocation2 + $0x38c] sm:$0xf] }
  0xa7   :  { %2691 = vmatpush.bf16.msra.mxu2 %v5520_v50  ;;  %2666 = vmatpush.bf16.msrb.mxu3 %v4976_v58  ;;  %v6842_v22 = vld [vmem:[#allocation2 + $0x64] sm:$0xf0]  ;;  %v5041_v19 = vld [vmem:[#allocation2 + $0x3a8] sm:$0xf0] }
  0xa8   :  { %v4879_v23 = vld [vmem:[#allocation2 + $0x248] sm:$0xf]  ;;  %v4624_v29 = vor.u32 %v6842_v22, %v4623_v21  ;;  %v6870_v21 = vld [vmem:[#allocation2 + $0x14c] sm:$0xf] }
  0xa9   :  { %2679 = vmatpush.bf16.msra.mxu0 %v5232_v0  ;;  %2654 = vmatpush.bf16.msrb.mxu1 %v4688_v3  ;;  %v6906_v24 = vld [vmem:[#allocation2 + $0x264] sm:$0xf0]  ;;  %v4820_v3 = vor.u32 %v6886_v51, %v4817_v55  ;;  %v4753_v22 = vld [vmem:[#allocation2 + $0x168] sm:$0xf0] }
  0xaa   :  { %v5135_v27 = vld [vmem:[#allocation2 + $0x448] sm:$0xf]  ;;  %v4880_v33 = vor.u32 %v6906_v24, %v4879_v23 }
  0xab   :  { %2692 = vmatpush.bf16.msra.mxu2 %v5488_v1  ;;  %2667 = vmatpush.bf16.msrb.mxu3 %v4944_v7  ;;  %v6970_v28 = vld [vmem:[#allocation2 + $0x464] sm:$0xf0] }
  0xac   :  { %v5391_v30 = vld [vmem:[#allocation2 + $0x648] sm:$0xf]  ;;  %v5136_v42 = vor.u32 %v6970_v28, %v5135_v27 }
  0xad   :  { %2680 = vmatpush.bf16.msra.mxu0 %v5200_v13  ;;  %2655 = vmatpush.bf16.msrb.mxu1 %v4656_v16  ;;  %v7034_v31 = vld [vmem:[#allocation2 + $0x664] sm:$0xf0] }
  0xae   :  { %v4591_v32 = vld [vmem:[#allocation2 + $0x8] sm:$0xf]  ;;  %v5392_v43 = vor.u32 %v7034_v31, %v5391_v30  ;;  %v6934_v30 = vld [vmem:[#allocation2 + $0x34c] sm:$0xf] }
  0xaf   :  { %2693 = vmatpush.bf16.msra.mxu2 %v5456_v14  ;;  %2668 = vmatpush.bf16.msrb.mxu3 %v4912_v20  ;;  %v6834_v35 = vld [vmem:[#allocation2 + $0x24] sm:$0xf0]  ;;  %v5076_v14 = vor.u32 %v6950_v5, %v5073_v6  ;;  %v5009_v31 = vld [vmem:[#allocation2 + $0x368] sm:$0xf0] }
  0xb0   :  { %v4847_v36 = vld [vmem:[#allocation2 + $0x208] sm:$0xf]  ;;  %v4592_v47 = vor.u32 %v6834_v35, %v4591_v32  ;;  %v4721_v35 = vld [vmem:[#allocation2 + $0x128] sm:$0xf0] }
  0xb1   :  { %v6898_v37 = vld [vmem:[#allocation2 + $0x224] sm:$0xf0]  ;;  %2681 = vmatpush.bf16.msra.mxu0 %v5168_v25  ;;  %2656 = vmatpush.bf16.msrb.mxu1 %v4624_v29  ;;  %v4756_v29 = vor.u32 %v6870_v21, %v4753_v22  ;;  %v5329_v21 = vld [vmem:[#allocation2 + $0x5e8] sm:$0xf0] }
  0xb2   :  { %v5839_v38 = vld [vmem:[#allocation2 + $0x9c8] sm:$0xf]  ;;  %v4848_v52 = vor.u32 %v6898_v37, %v4847_v36  ;;  %v7078_v22 = vld [vmem:[#allocation2 + $0x7cc] sm:$0xf] }
  0xb3   :  { %v7146_v40 = vld [vmem:[#allocation2 + $0x9e4] sm:$0xf0]  ;;  %2694 = vmatpush.bf16.msra.mxu2 %v5424_v26  ;;  %2669 = vmatpush.bf16.msrb.mxu3 %v4880_v33  ;;  %v5044_v26 = vor.u32 %v6942_v18, %v5041_v19  ;;  %v6862_v33 = vld [vmem:[#allocation2 + $0x10c] sm:$0xf]  ;;  %v4916_v19 = vor.u32 %v6910_v8, %v4913_v10 }
  0xb4   :  { %v6095_v41 = vld [vmem:[#allocation2 + $0xbc8] sm:$0xf]  ;;  %v5840_v54 = vor.u32 %v7146_v40, %v5839_v38  ;;  %v5012_v40 = vor.u32 %v6934_v30, %v5009_v31  ;;  %v6990_v8 = vld [vmem:[#allocation2 + $0x50c] sm:$0xf] }
  0xb5   :  { %v7210_v44 = vld [vmem:[#allocation2 + $0xbe4] sm:$0xf0]  ;;  %2682 = vmatpush.bf16.msra.mxu0 %v5136_v42  ;;  %2657 = vmatpush.bf16.msrb.mxu1 %v4592_v47  ;;  %v6854_v47 = vld [vmem:[#allocation2 + $0xcc] sm:$0xf] }
  0xb6   :  { %v5103_v45 = vld [vmem:[#allocation2 + $0x408] sm:$0xf]  ;;  %v6096_v59 = vor.u32 %v7210_v44, %v6095_v41  ;;  %v6926_v44 = vld [vmem:[#allocation2 + $0x30c] sm:$0xf] }
  0xb7   :  { %v6962_v46 = vld [vmem:[#allocation2 + $0x424] sm:$0xf0]  ;;  %2695 = vmatpush.bf16.msra.mxu2 %v5392_v43  ;;  %2670 = vmatpush.bf16.msrb.mxu3 %v4848_v52  ;;  %v4724_v43 = vor.u32 %v6862_v33, %v4721_v35  ;;  %v5841_v33 = vld [vmem:[#allocation2 + $0x9e8] sm:$0xf0] }
  0xb8   :  { %v5359_v49 = vld [vmem:[#allocation2 + $0x608] sm:$0xf]  ;;  %v5104_v63 = vor.u32 %v6962_v46, %v5103_v45  ;;  %2658 = vmatmul.bf16.vlgmr.msrb.gmra.mxu1 %v7549_v57  ;;  %v4977_v45 = vld [vmem:[#allocation2 + $0x328] sm:$0xf0] }
  0xb9   :  { %v7026_v50 = vld [vmem:[#allocation2 + $0x624] sm:$0xf0]  ;;  %2702 = vmatpush.bf16.msra.mxu1 %v5840_v54  ;;  %v4980_v54 = vor.u32 %v6926_v44, %v4977_v45  ;;  %v7006_v35 = vld [vmem:[#allocation2 + $0x58c] sm:$0xf] }
  0xba   :  { %v6127_v56 = vld [vmem:[#allocation2 + $0xc08] sm:$0xf]  ;;  %v5360_v0 = vor.u32 %v7026_v50, %v5359_v49  ;;  %2683 = vmatpush.bf16.msra.mxu0 %v5104_v63  ;;  %2671 = vmatmul.bf16.vlgmr.msrb.gmra.mxu3 %v7555_v9  ;;  %v4689_v49 = vld [vmem:[#allocation2 + $0xe8] sm:$0xf0] }
  0xbb   :  { %v7218_v58 = vld [vmem:[#allocation2 + $0xc24] sm:$0xf0]  ;;  %2715 = vmatpush.bf16.msra.mxu3 %v6096_v59  ;;  %v6918_v59 = vld [vmem:[#allocation2 + $0x2cc] sm:$0xf] }
  0xbc   :  { %v5807_v61 = vld [vmem:[#allocation2 + $0x988] sm:$0xf]  ;;  %v6128_v4 = vor.u32 %v7218_v58, %v6127_v56  ;;  %2696 = vmatpush.bf16.msra.mxu2 %v5360_v0  ;;  %v4692_v58 = vor.u32 %v6854_v47, %v4689_v49  ;;  %v6846_v63 = vld [vmem:[#allocation2 + $0x8c] sm:$0xf] }
  0xbd   :  { %v7138_v62 = vld [vmem:[#allocation2 + $0x9a4] sm:$0xf0]  ;;  %2684 = vmatmul.bf16.vlgmr.msra.gmra.mxu0 %v7547_v53  ;;  %v4657_v0 = vld [vmem:[#allocation2 + $0xa8] sm:$0xf0] }
  0xbe   :  { %v6063_v1 = vld [vmem:[#allocation2 + $0xb88] sm:$0xf]  ;;  %v5808_v7 = vor.u32 %v7138_v62, %v5807_v61  ;;  %2735 = vmatpush.bf16.msrb.mxu0 %v6128_v4  ;;  %v4945_v61 = vld [vmem:[#allocation2 + $0x2e8] sm:$0xf0] }
  0xbf   :  { %v7202_v2 = vld [vmem:[#allocation2 + $0xba4] sm:$0xf0]  ;;  %2697 = vmatmul.bf16.vlgmr.msra.gmra.mxu2 %v7551_v60  ;;  %v4948_v4 = vor.u32 %v6918_v59, %v4945_v61  ;;  %v4849_v44 = vld [vmem:[#allocation2 + $0x228] sm:$0xf0] }
  0xc0   :  { %v6064_v11 = vor.u32 %v7202_v2, %v6063_v1  ;;  %v5775_v12 = vld [vmem:[#allocation2 + $0x948] sm:$0xf]  ;;  %2741 = vmatpush.bf16.msrb.mxu2 %v4820_v3  ;;  %2703 = vmatpush.bf16.msra.mxu1 %v5808_v7  ;;  %v4660_v7 = vor.u32 %v6846_v63, %v4657_v0  ;;  %v7206_v45 = vld [vmem:[#allocation2 + $0xbcc] sm:$0xf] }
  0xc1   :  { %v7130_v13 = vld [vmem:[#allocation2 + $0x964] sm:$0xf0]  ;;  %v6097_v47 = vld [vmem:[#allocation2 + $0xbe8] sm:$0xf0] }
  0xc2   :  { %v6031_v15 = vld [vmem:[#allocation2 + $0xb48] sm:$0xf]  ;;  %v5776_v20 = vor.u32 %v7130_v13, %v5775_v12  ;;  %2716 = vmatpush.bf16.msra.mxu3 %v6064_v11  ;;  %2754 = vmatpush.bf16.msra.mxu0 %v5076_v14  ;;  %v6838_v12 = vld [vmem:[#allocation2 + $0x4c] sm:$0xf]  ;;  %v6100_v61 = vor.u32 %v7206_v45, %v6097_v47 }
  0xc3   :  { %v7194_v16 = vld [vmem:[#allocation2 + $0xb64] sm:$0xf0]  ;;  %v4625_v13 = vld [vmem:[#allocation2 + $0x68] sm:$0xf0] }
  0xc4   :  { %v6032_v23 = vor.u32 %v7194_v16, %v6031_v15  ;;  %v5743_v24 = vld [vmem:[#allocation2 + $0x908] sm:$0xf]  ;;  %2742 = vmatpush.bf16.msrb.mxu2 %v4788_v17  ;;  %2704 = vmatpush.bf16.msra.mxu1 %v5776_v20  ;;  %v7014_v20 = vld [vmem:[#allocation2 + $0x5cc] sm:$0xf] }
  0xc5   :  { %v7122_v25 = vld [vmem:[#allocation2 + $0x924] sm:$0xf0]  ;;  %v5332_v31 = vor.u32 %v7014_v20, %v5329_v21  ;;  %v7134_v49 = vld [vmem:[#allocation2 + $0x98c] sm:$0xf] }
  0xc6   :  { %v5999_v27 = vld [vmem:[#allocation2 + $0xb08] sm:$0xf]  ;;  %v5744_v32 = vor.u32 %v7122_v25, %v5743_v24  ;;  %2717 = vmatpush.bf16.msra.mxu3 %v6032_v23  ;;  %2755 = vmatpush.bf16.msra.mxu0 %v5044_v26  ;;  %v4628_v23 = vor.u32 %v6838_v12, %v4625_v13  ;;  %v5585_v24 = vld [vmem:[#allocation2 + $0x7e8] sm:$0xf0] }
  0xc7   :  { %v7186_v28 = vld [vmem:[#allocation2 + $0xb24] sm:$0xf0]  ;;  %v6902_v25 = vld [vmem:[#allocation2 + $0x24c] sm:$0xf] }
  0xc8   :  { %v6000_v36 = vor.u32 %v7186_v28, %v5999_v27  ;;  %v5711_v37 = vld [vmem:[#allocation2 + $0x8c8] sm:$0xf]  ;;  %2743 = vmatpush.bf16.msrb.mxu2 %v4756_v29  ;;  %2705 = vmatpush.bf16.msra.mxu1 %v5744_v32  ;;  %v4881_v26 = vld [vmem:[#allocation2 + $0x268] sm:$0xf0] }
  0xc9   :  { %v7114_v38 = vld [vmem:[#allocation2 + $0x8e4] sm:$0xf0]  ;;  %v6830_v28 = vld [vmem:[#allocation2 + $0xc] sm:$0xf] }
  0xca   :  { %v5967_v41 = vld [vmem:[#allocation2 + $0xac8] sm:$0xf]  ;;  %v5712_v46 = vor.u32 %v7114_v38, %v5711_v37  ;;  %2718 = vmatpush.bf16.msra.mxu3 %v6000_v36  ;;  %2756 = vmatpush.bf16.msra.mxu0 %v5012_v40  ;;  %v4593_v29 = vld [vmem:[#allocation2 + $0x28] sm:$0xf0]  ;;  %v5588_v36 = vor.u32 %v7078_v22, %v5585_v24  ;;  %v4884_v37 = vor.u32 %v6902_v25, %v4881_v26 }
  0xcb   :  { %v7178_v42 = vld [vmem:[#allocation2 + $0xae4] sm:$0xf0]  ;;  %v7142_v32 = vld [vmem:[#allocation2 + $0x9cc] sm:$0xf] }
  0xcc   :  { %v5968_v50 = vor.u32 %v7178_v42, %v5967_v41  ;;  %v5679_v51 = vld [vmem:[#allocation2 + $0x888] sm:$0xf]  ;;  %2744 = vmatpush.bf16.msrb.mxu2 %v4724_v43  ;;  %2706 = vmatpush.bf16.msra.mxu1 %v5712_v46  ;;  %v5297_v38 = vld [vmem:[#allocation2 + $0x5a8] sm:$0xf0]  ;;  %v4596_v42 = vor.u32 %v6830_v28, %v4593_v29  ;;  %v5844_v46 = vor.u32 %v7142_v32, %v5841_v33 }
  0xcd   :  { %v7106_v52 = vld [vmem:[#allocation2 + $0x8a4] sm:$0xf0]  ;;  %6151 = vmatmul.msk.bf16.vlgmr.msrb.gmra.mxu0 %vm2464_vm0, %v7562_v48  ;;  %v7070_v40 = vld [vmem:[#allocation2 + $0x78c] sm:$0xf] }
  0xce   :  { %v5935_v55 = vld [vmem:[#allocation2 + $0xa88] sm:$0xf]  ;;  %v5680_v62 = vor.u32 %v7106_v52, %v5679_v51  ;;  %2719 = vmatpush.bf16.msra.mxu3 %v5968_v50  ;;  %2757 = vmatpush.bf16.msra.mxu0 %v4980_v54  ;;  %v5553_v41 = vld [vmem:[#allocation2 + $0x7a8] sm:$0xf0]  ;;  %v5300_v51 = vor.u32 %v7006_v35, %v5297_v38 }
  0xcf   :  { %v7170_v56 = vld [vmem:[#allocation2 + $0xaa4] sm:$0xf0]  ;;  %v6894_v43 = vld [vmem:[#allocation2 + $0x20c] sm:$0xf] }
  0xd0   :  { %v5936_v1 = vor.u32 %v7170_v56, %v5935_v55  ;;  %v5647_v2 = vld [vmem:[#allocation2 + $0x848] sm:$0xf]  ;;  %2745 = vmatpush.bf16.msrb.mxu2 %v4692_v58  ;;  %2707 = vmatpush.bf16.msra.mxu1 %v5680_v62  ;;  %v5809_v50 = vld [vmem:[#allocation2 + $0x9a8] sm:$0xf0]  ;;  %v5556_v55 = vor.u32 %v7070_v40, %v5553_v41  ;;  %v4852_v56 = vor.u32 %v6894_v43, %v4849_v44 }
  0xd1   :  { %v7098_v3 = vld [vmem:[#allocation2 + $0x864] sm:$0xf0]  ;;  %v6998_v58 = vld [vmem:[#allocation2 + $0x54c] sm:$0xf]  ;;  %v5812_v0 = vor.u32 %v7134_v49, %v5809_v50 }
  0xd2   :  { %v5903_v5 = vld [vmem:[#allocation2 + $0xa48] sm:$0xf]  ;;  %v5648_v11 = vor.u32 %v7098_v3, %v5647_v2  ;;  %2720 = vmatpush.bf16.msra.mxu3 %v5936_v1  ;;  %2758 = vmatpush.bf16.msra.mxu0 %v4948_v4  ;;  %v5265_v59 = vld [vmem:[#allocation2 + $0x568] sm:$0xf0] }
  0xd3   :  { %v7162_v6 = vld [vmem:[#allocation2 + $0xa64] sm:$0xf0]  ;;  %v7062_v62 = vld [vmem:[#allocation2 + $0x74c] sm:$0xf]  ;;  %v5268_v4 = vor.u32 %v6998_v58, %v5265_v59 }
  0xd4   :  { %v5615_v14 = vld [vmem:[#allocation2 + $0x808] sm:$0xf]  ;;  %v5904_v15 = vor.u32 %v7162_v6, %v5903_v5  ;;  %2746 = vmatpush.bf16.msrb.mxu2 %v4660_v7  ;;  %2708 = vmatpush.bf16.msra.mxu1 %v5648_v11  ;;  %v5521_v63 = vld [vmem:[#allocation2 + $0x768] sm:$0xf0] }
  0xd5   :  { %v7090_v16 = vld [vmem:[#allocation2 + $0x824] sm:$0xf0]  ;;  %v7198_v1 = vld [vmem:[#allocation2 + $0xb8c] sm:$0xf]  ;;  %v5524_v7 = vor.u32 %v7062_v62, %v5521_v63  ;;  %v2503_v49 = vpop.f32.mrf.mxu2 }
  0xd6   :  { %v5871_v17 = vld [vmem:[#allocation2 + $0xa08] sm:$0xf]  ;;  %v5616_v27 = vor.u32 %v7090_v16, %v5615_v14  ;;  %2721 = vmatpush.bf16.msra.mxu3 %v5904_v15  ;;  %2759 = vmatpush.bf16.msra.mxu0 %v4916_v19  ;;  %v6065_v2 = vld [vmem:[#allocation2 + $0xba8] sm:$0xf0]  ;;  %v2490_v41 = vpop.f32.mrf.mxu1 }
  0xd7   :  { %v7154_v18 = vld [vmem:[#allocation2 + $0xa24] sm:$0xf0]  ;;  %v7126_v5 = vld [vmem:[#allocation2 + $0x94c] sm:$0xf]  ;;  %v6068_v11 = vor.u32 %v7198_v1, %v6065_v2 }
  0xd8   :  { %v5872_v30 = vor.u32 %v7154_v18, %v5871_v17  ;;  %2747 = vmatpush.bf16.msrb.mxu2 %v4628_v23  ;;  %2709 = vmatpush.bf16.msra.mxu1 %v5616_v27  ;;  %v460_v52 = vld [vmem:[#allocation7] ss:$8 sm:$0xf]  ;;  %v5777_v6 = vld [vmem:[#allocation2 + $0x968] sm:$0xf0]  ;;  %v2477_v27 = vpop.f32.mrf.mxu0 }
  0xd9   :  { %v461_v54 = vld [vmem:[#allocation7] ss:$8 sm:$0xf0]  ;;  %v5233_v10 = vld [vmem:[#allocation2 + $0x528] sm:$0xf0]  ;;  %v5780_v14 = vor.u32 %v7126_v5, %v5777_v6 }
  0xda   :  { %2722 = vmatpush.bf16.msra.mxu3 %v5872_v30  ;;  %2760 = vmatpush.bf16.msra.mxu0 %v4884_v37  ;;  %v7591_v3 = vor.u32 %v461_v54, %v460_v52  ;;  %v7054_v12 = vld [vmem:[#allocation2 + $0x70c] sm:$0xf]  ;;  %v5236_v18 = vor.u32 %v6990_v8, %v5233_v10 }
  0xdb   :  { %2710 = vmatmul.bf16.vlgmr.msra.gmra.mxu1 %v7569_v34  ;;  %v5489_v13 = vld [vmem:[#allocation2 + $0x728] sm:$0xf0] }
  0xdc   :  { %2767 = vmatpush.bf16.msrb.mxu1 %v5332_v31  ;;  %2748 = vmatpush.bf16.msrb.mxu2 %v4596_v42  ;;  %v7190_v15 = vld [vmem:[#allocation2 + $0xb4c] sm:$0xf]  ;;  %v464_v17 = vperm.slane %v7591_v3, 0  ;;  %v5492_v21 = vor.u32 %v7054_v12, %v5489_v13 }
  0xdd   :  { %2723 = vmatmul.bf16.vlgmr.msra.gmra.mxu3 %v7571_v39  ;;  %v6033_v16 = vld [vmem:[#allocation2 + $0xb68] sm:$0xf0] }
  0xde   :  { %2780 = vmatpush.bf16.msrb.mxu3 %v5588_v36  ;;  %2761 = vmatpush.bf16.msra.mxu0 %v4852_v56  ;;  %v7118_v19 = vld [vmem:[#allocation2 + $0x90c] sm:$0xf]  ;;  %v6036_v24 = vor.u32 %v7190_v15, %v6033_v16  ;;  %v2478_v29 = vadd.f32 %v2477_v27, %v464_v17  ;;  %v2516_v56 = vpop.f32.mrf.mxu3  ;;  %v4823_v16 = vld [vmem:[#allocation2 + $0x1d0] sm:$0xf] }
  0xdf   :  { %2749 = vmatmul.bf16.vlgmr.msrb.gmra.mxu2 %v7549_v57  ;;  %v5745_v20 = vld [vmem:[#allocation2 + $0x928] sm:$0xf0] }
  0xe0   :  { %2793 = vmatpush.bf16.msra.mxu2 %v5844_v46  ;;  %2768 = vmatpush.bf16.msrb.mxu1 %v5300_v51  ;;  %v6982_v22 = vld [vmem:[#allocation2 + $0x4cc] sm:$0xf]  ;;  %v5748_v28 = vor.u32 %v7118_v19, %v5745_v20  ;;  %v2491_v44 = vadd.f32 %v2490_v41, %v2478_v29  ;;  %v2492_v19 = vpop.f32.mrf.mxu1  ;;  %v6883_v41 = vld [vmem:[#allocation2 + $0x1ac] sm:$0xf0] }
  0xe1   :  { %2762 = vmatmul.bf16.vlgmr.msra.gmra.mxu0 %v7555_v9  ;;  %v5201_v23 = vld [vmem:[#allocation2 + $0x4e8] sm:$0xf0] }
  0xe2   :  { %2781 = vmatpush.bf16.msrb.mxu3 %v5556_v55  ;;  %2806 = vmatpush.bf16.msrb.mxu0 %v6100_v61  ;;  %v7046_v25 = vld [vmem:[#allocation2 + $0x6cc] sm:$0xf]  ;;  %v5204_v32 = vor.u32 %v6982_v22, %v5201_v23  ;;  %v2504_v55 = vadd.f32 %v2503_v49, %v2491_v44  ;;  %v5047_v49 = vld [vmem:[#allocation2 + $0x390] sm:$0xf] }
  0xe3   :  { %v5457_v26 = vld [vmem:[#allocation2 + $0x6e8] sm:$0xf0] }
  0xe4   :  { %2794 = vmatpush.bf16.msra.mxu2 %v5812_v0  ;;  %2769 = vmatpush.bf16.msrb.mxu1 %v5268_v4  ;;  %v7182_v30 = vld [vmem:[#allocation2 + $0xb0c] sm:$0xf]  ;;  %v5460_v36 = vor.u32 %v7046_v25, %v5457_v26  ;;  %v2479_v0 = vpop.f32.mrf.mxu0  ;;  %v7596_v1 = vadd.f32 %v2516_v56, %v2504_v55  ;;  %v4759_v56 = vld [vmem:[#allocation2 + $0x150] sm:$0xf] }
  0xe5   :  { %v6001_v31 = vld [vmem:[#allocation2 + $0xb28] sm:$0xf0] }
  0xe6   :  { %2782 = vmatpush.bf16.msrb.mxu3 %v5524_v7  ;;  %2807 = vmatpush.bf16.msrb.mxu0 %v6068_v11  ;;  %v7110_v33 = vld [vmem:[#allocation2 + $0x8cc] sm:$0xf]  ;;  %v6004_v40 = vor.u32 %v7182_v30, %v6001_v31  ;;  %v5079_v30 = vld [vmem:[#allocation2 + $0x3d0] sm:$0xf] }
  0xe7   :  { %v5713_v35 = vld [vmem:[#allocation2 + $0x8e8] sm:$0xf0]  ;;  %v6955_v31 = vld [vmem:[#allocation2 + $0x3ec] sm:$0xf0] }
  0xe8   :  { %2795 = vmatpush.bf16.msra.mxu2 %v5780_v14  ;;  %2770 = vmatpush.bf16.msrb.mxu1 %v5236_v18  ;;  %v6974_v37 = vld [vmem:[#allocation2 + $0x48c] sm:$0xf]  ;;  %v5716_v45 = vor.u32 %v7110_v33, %v5713_v35 }
  0xe9   :  { %v5169_v38 = vld [vmem:[#allocation2 + $0x4a8] sm:$0xf0] }
  0xea   :  { %2783 = vmatpush.bf16.msrb.mxu3 %v5492_v21  ;;  %2808 = vmatpush.bf16.msrb.mxu0 %v6036_v24  ;;  %v7038_v42 = vld [vmem:[#allocation2 + $0x68c] sm:$0xf]  ;;  %v5172_v50 = vor.u32 %v6974_v37, %v5169_v38  ;;  %v6891_v21 = vld [vmem:[#allocation2 + $0x1ec] sm:$0xf0]  ;;  %v2505_v24 = vpop.f32.mrf.mxu2 }
  0xeb   :  { %v5425_v43 = vld [vmem:[#allocation2 + $0x6a8] sm:$0xf0]  ;;  %v4824_v33 = vor.u32 %v6891_v21, %v4823_v16  ;;  %v7019_v37 = vld [vmem:[#allocation2 + $0x5ec] sm:$0xf0] }
  0xec   :  { %2796 = vmatpush.bf16.msra.mxu2 %v5748_v28  ;;  %v7174_v46 = vld [vmem:[#allocation2 + $0xacc] sm:$0xf]  ;;  %2771 = vmatpush.bf16.msrb.mxu1 %v5204_v32  ;;  %v5428_v54 = vor.u32 %v7038_v42, %v5425_v43  ;;  %v2518_v32 = vpop.f32.mrf.mxu3  ;;  %v5080_v42 = vor.u32 %v6955_v31, %v5079_v30  ;;  %v7067_v16 = vld [vmem:[#allocation2 + $0x76c] sm:$0xf0] }
  0xed   :  { %v5969_v47 = vld [vmem:[#allocation2 + $0xae8] sm:$0xf0]  ;;  %v6995_v21 = vld [vmem:[#allocation2 + $0x52c] sm:$0xf0] }
  0xee   :  { %v7102_v51 = vld [vmem:[#allocation2 + $0x88c] sm:$0xf]  ;;  %2784 = vmatpush.bf16.msrb.mxu3 %v5460_v36  ;;  %2809 = vmatpush.bf16.msrb.mxu0 %v6004_v40  ;;  %v5972_v61 = vor.u32 %v7174_v46, %v5969_v47  ;;  %v5335_v36 = vld [vmem:[#allocation2 + $0x5d0] sm:$0xf] }
  0xef   :  { %v5681_v52 = vld [vmem:[#allocation2 + $0x8a8] sm:$0xf0]  ;;  %v4791_v40 = vld [vmem:[#allocation2 + $0x190] sm:$0xf]  ;;  %v5336_v46 = vor.u32 %v7019_v37, %v5335_v36 }
  0xf0   :  { %v6966_v58 = vld [vmem:[#allocation2 + $0x44c] sm:$0xf]  ;;  %2797 = vmatpush.bf16.msra.mxu2 %v5716_v45  ;;  %v5684_v2 = vor.u32 %v7102_v51, %v5681_v52  ;;  %2772 = vmatpush.bf16.msrb.mxu1 %v5172_v50  ;;  %v5591_v45 = vld [vmem:[#allocation2 + $0x7d0] sm:$0xf]  ;;  %v4792_v51 = vor.u32 %v6883_v41, %v4791_v40 }
  0xf1   :  { %v5137_v59 = vld [vmem:[#allocation2 + $0x468] sm:$0xf0]  ;;  %v7083_v47 = vld [vmem:[#allocation2 + $0x7ec] sm:$0xf0] }
  0xf2   :  { %v7030_v62 = vld [vmem:[#allocation2 + $0x64c] sm:$0xf]  ;;  %v5140_v6 = vor.u32 %v6966_v58, %v5137_v59  ;;  %2785 = vmatpush.bf16.msrb.mxu3 %v5428_v54  ;;  %2810 = vmatpush.bf16.msrb.mxu0 %v5972_v61  ;;  %v6947_v50 = vld [vmem:[#allocation2 + $0x3ac] sm:$0xf0]  ;;  %v5592_v59 = vor.u32 %v7083_v47, %v5591_v45 }
  0xf3   :  { %v5393_v63 = vld [vmem:[#allocation2 + $0x668] sm:$0xf0]  ;;  %v5303_v52 = vld [vmem:[#allocation2 + $0x590] sm:$0xf]  ;;  %v5048_v61 = vor.u32 %v6947_v50, %v5047_v49 }
  0xf4   :  { %v7166_v4 = vld [vmem:[#allocation2 + $0xa8c] sm:$0xf]  ;;  %v5396_v11 = vor.u32 %v7030_v62, %v5393_v63  ;;  %2798 = vmatpush.bf16.msra.mxu2 %v5684_v2  ;;  %2773 = vmatpush.bf16.msrb.mxu1 %v5140_v6  ;;  %v7011_v54 = vld [vmem:[#allocation2 + $0x5ac] sm:$0xf0]  ;;  %v2555_v63 = vpop.f32.mrf.mxu2 }
  0xf5   :  { %v5937_v5 = vld [vmem:[#allocation2 + $0xaa8] sm:$0xf0]  ;;  %v6875_v58 = vld [vmem:[#allocation2 + $0x16c] sm:$0xf0]  ;;  %v5304_v0 = vor.u32 %v7011_v54, %v5303_v52 }
  0xf6   :  { %v7094_v7 = vld [vmem:[#allocation2 + $0x84c] sm:$0xf]  ;;  %v5940_v15 = vor.u32 %v7166_v4, %v5937_v5  ;;  %2786 = vmatpush.bf16.msrb.mxu3 %v5396_v11  ;;  %v5559_v62 = vld [vmem:[#allocation2 + $0x790] sm:$0xf]  ;;  %v4760_v6 = vor.u32 %v6875_v58, %v4759_v56 }
  0xf7   :  { %v5649_v8 = vld [vmem:[#allocation2 + $0x868] sm:$0xf0]  ;;  %v7075_v2 = vld [vmem:[#allocation2 + $0x7ac] sm:$0xf0] }
  0xf8   :  { %v6958_v10 = vld [vmem:[#allocation2 + $0x40c] sm:$0xf]  ;;  %v5652_v20 = vor.u32 %v7094_v7, %v5649_v8  ;;  %2811 = vmatpush.bf16.msrb.mxu0 %v5940_v15  ;;  %v5015_v4 = vld [vmem:[#allocation2 + $0x350] sm:$0xf] }
  0xf9   :  { %v5105_v12 = vld [vmem:[#allocation2 + $0x428] sm:$0xf0]  ;;  %v6939_v5 = vld [vmem:[#allocation2 + $0x36c] sm:$0xf0] }
  0xfa   :  { %v7022_v13 = vld [vmem:[#allocation2 + $0x60c] sm:$0xf]  ;;  %v5108_v25 = vor.u32 %v6958_v10, %v5105_v12  ;;  %2799 = vmatpush.bf16.msra.mxu2 %v5652_v20  ;;  %v5271_v7 = vld [vmem:[#allocation2 + $0x550] sm:$0xf]  ;;  %v5560_v12 = vor.u32 %v7075_v2, %v5559_v62 }
  0xfb   :  { %v5361_v14 = vld [vmem:[#allocation2 + $0x628] sm:$0xf0]  ;;  %v7003_v8 = vld [vmem:[#allocation2 + $0x56c] sm:$0xf0] }
  0xfc   :  { %v7214_v17 = vld [vmem:[#allocation2 + $0xc0c] sm:$0xf]  ;;  %v5364_v28 = vor.u32 %v7022_v13, %v5361_v14  ;;  %2774 = vmatpush.bf16.msrb.mxu1 %v5108_v25  ;;  %v4727_v10 = vld [vmem:[#allocation2 + $0x110] sm:$0xf]  ;;  %v5016_v13 = vor.u32 %v6939_v5, %v5015_v4  ;;  %v5272_v15 = vor.u32 %v7003_v8, %v5271_v7  ;;  %v2557_v30 = vpop.f32.mrf.mxu2 }
  0xfd   :  { %v6129_v18 = vld [vmem:[#allocation2 + $0xc28] sm:$0xf0]  ;;  %v6867_v11 = vld [vmem:[#allocation2 + $0x12c] sm:$0xf0] }
  0xfe   :  { %v7158_v22 = vld [vmem:[#allocation2 + $0xa4c] sm:$0xf]  ;;  %v6132_v29 = vor.u32 %v7214_v17, %v6129_v18  ;;  %2787 = vmatpush.bf16.msrb.mxu3 %v5364_v28  ;;  %v5527_v14 = vld [vmem:[#allocation2 + $0x750] sm:$0xf]  ;;  %v4728_v19 = vor.u32 %v6867_v11, %v4727_v10 }
  0xff   :  { %v5905_v23 = vld [vmem:[#allocation2 + $0xa68] sm:$0xf0]  ;;  %2775 = vmatmul.bf16.vlgmr.msrb.gmra.mxu1 %v7547_v53  ;;  %v4983_v17 = vld [vmem:[#allocation2 + $0x310] sm:$0xf] }
 0x100   :  { %v7086_v26 = vld [vmem:[#allocation2 + $0x80c] sm:$0xf]  ;;  %v5908_v35 = vor.u32 %v7158_v22, %v5905_v23  ;;  %2826 = vmatpush.bf16.msra.mxu1 %v6132_v29  ;;  %v6931_v18 = vld [vmem:[#allocation2 + $0x32c] sm:$0xf0]  ;;  %v2529_v22 = vpop.f32.mrf.mxu0 }
 0x101   :  { %v5617_v27 = vld [vmem:[#allocation2 + $0x828] sm:$0xf0]  ;;  %2788 = vmatmul.bf16.vlgmr.msrb.gmra.mxu3 %v7551_v60  ;;  %v5239_v20 = vld [vmem:[#allocation2 + $0x510] sm:$0xf]  ;;  %v2530_v25 = vadd.f32 %v2529_v22, %v7596_v1  ;;  %v4984_v28 = vor.u32 %v6931_v18, %v4983_v17 }
 0x102   :  { %v5620_v38 = vor.u32 %v7086_v26, %v5617_v27  ;;  %v7150_v43 = vld [vmem:[#allocation2 + $0xa0c] sm:$0xf]  ;;  %2832 = vmatpush.bf16.msra.mxu3 %v4824_v33  ;;  %2812 = vmatpush.bf16.msrb.mxu0 %v5908_v35  ;;  %v4695_v23 = vld [vmem:[#allocation2 + $0xd0] sm:$0xf]  ;;  %v2542_v26 = vpop.f32.mrf.mxu1  ;;  %v5528_v27 = vor.u32 %v7067_v16, %v5527_v14  ;;  %v5240_v31 = vor.u32 %v6995_v21, %v5239_v20 }
 0x103   :  { %v5873_v44 = vld [vmem:[#allocation2 + $0xa28] sm:$0xf0]  ;;  %v6859_v24 = vld [vmem:[#allocation2 + $0xec] sm:$0xf0]  ;;  %v2543_v36 = vadd.f32 %v2542_v26, %v2530_v25 }
 0x104   :  { %2800 = vmatpush.bf16.msra.mxu2 %v5620_v38  ;;  %v5876_v55 = vor.u32 %v7150_v43, %v5873_v44  ;;  %2845 = vmatpush.bf16.msrb.mxu1 %v5080_v42  ;;  %v5495_v29 = vld [vmem:[#allocation2 + $0x710] sm:$0xf]  ;;  %v4696_v37 = vor.u32 %v6859_v24, %v4695_v23  ;;  %v2581_v10 = vpop.f32.mrf.mxu2 }
 0x105   :  { %v7059_v32 = vld [vmem:[#allocation2 + $0x72c] sm:$0xf0]  ;;  %v7603_v43 = vadd.f32 %v2555_v63, %v2543_v36 }
 0x106   :  { %2833 = vmatpush.bf16.msra.mxu3 %v4792_v51  ;;  %2813 = vmatpush.bf16.msrb.mxu0 %v5876_v55  ;;  %v4951_v33 = vld [vmem:[#allocation2 + $0x2d0] sm:$0xf]  ;;  %v5496_v1 = vor.u32 %v7059_v32, %v5495_v29 }
 0x107   :  { %2801 = vmatmul.bf16.vlgmr.msra.gmra.mxu2 %v7569_v34  ;;  %v6923_v35 = vld [vmem:[#allocation2 + $0x2ec] sm:$0xf0] }
 0x108   :  { %2858 = vmatpush.bf16.msrb.mxu2 %v5336_v46  ;;  %2846 = vmatpush.bf16.msrb.mxu1 %v5048_v61  ;;  %v5207_v38 = vld [vmem:[#allocation2 + $0x4d0] sm:$0xf]  ;;  %v4952_v44 = vor.u32 %v6923_v35, %v4951_v33  ;;  %v465_v46 = vperm.slane %v7591_v3, 1  ;;  %v2568_v61 = vpop.f32.mrf.mxu3 }
 0x109   :  { %2814 = vmatmul.bf16.vlgmr.msrb.gmra.mxu0 %v7571_v39  ;;  %v6987_v40 = vld [vmem:[#allocation2 + $0x4ec] sm:$0xf0] }
 0x10a   :  { %2871 = vmatpush.bf16.msra.mxu0 %v5592_v59  ;;  %2834 = vmatpush.bf16.msra.mxu3 %v4760_v6  ;;  %v4663_v41 = vld [vmem:[#allocation2 + $0x90] sm:$0xf]  ;;  %v5208_v47 = vor.u32 %v6987_v40, %v5207_v38  ;;  %v2531_v59 = vpop.f32.mrf.mxu0  ;;  %v2569_v2 = vadd.f32 %v2568_v61, %v465_v46  ;;  %v2544_v4 = vpop.f32.mrf.mxu1 }
 0x10b   :  { %v6851_v42 = vld [vmem:[#allocation2 + $0xac] sm:$0xf0]  ;;  %v6943_v4 = vld [vmem:[#allocation2 + $0x394] sm:$0xf] }
 0x10c   :  { %2859 = vmatpush.bf16.msrb.mxu2 %v5304_v0  ;;  %2847 = vmatpush.bf16.msrb.mxu1 %v5016_v13  ;;  %v5463_v45 = vld [vmem:[#allocation2 + $0x6d0] sm:$0xf]  ;;  %v4664_v52 = vor.u32 %v6851_v42, %v4663_v41  ;;  %v7608_v14 = vadd.f32 %v2581_v10, %v2569_v2  ;;  %v2583_v46 = vpop.f32.mrf.mxu2  ;;  %v4793_v2 = vld [vmem:[#allocation2 + $0x1b0] sm:$0xf0] }
 0x10d   :  { %v7051_v49 = vld [vmem:[#allocation2 + $0x6ec] sm:$0xf0] }
 0x10e   :  { %2872 = vmatpush.bf16.msra.mxu0 %v5560_v12  ;;  %2835 = vmatpush.bf16.msra.mxu3 %v4728_v19  ;;  %v4919_v50 = vld [vmem:[#allocation2 + $0x290] sm:$0xf]  ;;  %v5464_v62 = vor.u32 %v7051_v49, %v5463_v45  ;;  %v6887_v45 = vld [vmem:[#allocation2 + $0x1d4] sm:$0xf] }
 0x10f   :  { %v6915_v51 = vld [vmem:[#allocation2 + $0x2ac] sm:$0xf0]  ;;  %6152 = vmatmul.msk.bf16.vlgmr.msra.gmra.mxu1 %vm2464_vm0, %v7562_v48  ;;  %v4825_v49 = vld [vmem:[#allocation2 + $0x1f0] sm:$0xf0] }
 0x110   :  { %2860 = vmatpush.bf16.msrb.mxu2 %v5272_v15  ;;  %2848 = vmatpush.bf16.msrb.mxu1 %v4984_v28  ;;  %v5175_v54 = vld [vmem:[#allocation2 + $0x490] sm:$0xf]  ;;  %v4920_v63 = vor.u32 %v6915_v51, %v4919_v50  ;;  %v2570_v35 = vpop.f32.mrf.mxu3  ;;  %v6951_v50 = vld [vmem:[#allocation2 + $0x3d4] sm:$0xf]  ;;  %v4828_v61 = vor.u32 %v6887_v45, %v4825_v49 }
 0x111   :  { %v6979_v55 = vld [vmem:[#allocation2 + $0x4ac] sm:$0xf0]  ;;  %v5081_v51 = vld [vmem:[#allocation2 + $0x3f0] sm:$0xf0] }
 0x112   :  { %2873 = vmatpush.bf16.msra.mxu0 %v5528_v27  ;;  %2836 = vmatpush.bf16.msra.mxu3 %v4696_v37  ;;  %v4631_v56 = vld [vmem:[#allocation2 + $0x50] sm:$0xf]  ;;  %v5176_v5 = vor.u32 %v6979_v55, %v5175_v54  ;;  %v4953_v49 = vld [vmem:[#allocation2 + $0x2f0] sm:$0xf0] }
 0x113   :  { %v6843_v58 = vld [vmem:[#allocation2 + $0x6c] sm:$0xf0] }
 0x114   :  { %2861 = vmatpush.bf16.msrb.mxu2 %v5240_v31  ;;  %2849 = vmatpush.bf16.msrb.mxu1 %v4952_v44  ;;  %v5431_v0 = vld [vmem:[#allocation2 + $0x690] sm:$0xf]  ;;  %v4632_v11 = vor.u32 %v6843_v58, %v4631_v56 }
 0x115   :  { %v7043_v6 = vld [vmem:[#allocation2 + $0x6ac] sm:$0xf0] }
 0x116   :  { %2874 = vmatpush.bf16.msra.mxu0 %v5496_v1  ;;  %v4887_v7 = vld [vmem:[#allocation2 + $0x250] sm:$0xf]  ;;  %2837 = vmatpush.bf16.msra.mxu3 %v4664_v52  ;;  %v5432_v18 = vor.u32 %v7043_v6, %v5431_v0 }
 0x117   :  { %v6907_v8 = vld [vmem:[#allocation2 + $0x26c] sm:$0xf0] }
 0x118   :  { %2862 = vmatpush.bf16.msrb.mxu2 %v5208_v47  ;;  %v5143_v12 = vld [vmem:[#allocation2 + $0x450] sm:$0xf]  ;;  %2850 = vmatpush.bf16.msrb.mxu1 %v4920_v63  ;;  %v4888_v19 = vor.u32 %v6907_v8, %v4887_v7  ;;  %v6879_v63 = vld [vmem:[#allocation2 + $0x194] sm:$0xf] }
 0x119   :  { %v6971_v13 = vld [vmem:[#allocation2 + $0x46c] sm:$0xf0] }
 0x11a   :  { %v4599_v15 = vld [vmem:[#allocation2 + $0x10] sm:$0xf]  ;;  %2875 = vmatpush.bf16.msra.mxu0 %v5464_v62  ;;  %v5144_v23 = vor.u32 %v6971_v13, %v5143_v12  ;;  %2838 = vmatpush.bf16.msra.mxu3 %v4632_v11  ;;  %v5084_v62 = vor.u32 %v6951_v50, %v5081_v51  ;;  %v4796_v12 = vor.u32 %v6879_v63, %v4793_v2 }
 0x11b   :  { %v6835_v16 = vld [vmem:[#allocation2 + $0x2c] sm:$0xf0] }
 0x11c   :  { %v5847_v17 = vld [vmem:[#allocation2 + $0x9d0] sm:$0xf]  ;;  %2863 = vmatpush.bf16.msrb.mxu2 %v5176_v5  ;;  %v4600_v27 = vor.u32 %v6835_v16, %v4599_v15  ;;  %2851 = vmatpush.bf16.msrb.mxu1 %v4888_v19  ;;  %v5049_v5 = vld [vmem:[#allocation2 + $0x3b0] sm:$0xf0] }
 0x11d   :  { %v7147_v20 = vld [vmem:[#allocation2 + $0x9ec] sm:$0xf0]  ;;  %v5052_v13 = vor.u32 %v6943_v4, %v5049_v5  ;;  %v6871_v15 = vld [vmem:[#allocation2 + $0x154] sm:$0xf] }
 0x11e   :  { %v5399_v21 = vld [vmem:[#allocation2 + $0x650] sm:$0xf]  ;;  %v5848_v31 = vor.u32 %v7147_v20, %v5847_v17  ;;  %2876 = vmatpush.bf16.msra.mxu0 %v5432_v18  ;;  %2839 = vmatpush.bf16.msra.mxu3 %v4600_v27  ;;  %v4761_v17 = vld [vmem:[#allocation2 + $0x170] sm:$0xf0] }
 0x11f   :  { %v7035_v22 = vld [vmem:[#allocation2 + $0x66c] sm:$0xf0]  ;;  %v6935_v18 = vld [vmem:[#allocation2 + $0x354] sm:$0xf] }
 0x120   :  { %v4855_v24 = vld [vmem:[#allocation2 + $0x210] sm:$0xf]  ;;  %v5400_v36 = vor.u32 %v7035_v22, %v5399_v21  ;;  %2864 = vmatpush.bf16.msrb.mxu2 %v5144_v23  ;;  %v5017_v19 = vld [vmem:[#allocation2 + $0x370] sm:$0xf0] }
 0x121   :  { %v6899_v25 = vld [vmem:[#allocation2 + $0x22c] sm:$0xf0]  ;;  %2840 = vmatmul.bf16.vlgmr.msra.gmra.mxu3 %v7549_v57  ;;  %v5020_v27 = vor.u32 %v6935_v18, %v5017_v19  ;;  %v2633_v2 = vpop.f32.mrf.mxu2  ;;  %v4665_v4 = vld [vmem:[#allocation2 + $0xb0] sm:$0xf0] }
 0x122   :  { %v5111_v26 = vld [vmem:[#allocation2 + $0x410] sm:$0xf]  ;;  %v4856_v37 = vor.u32 %v6899_v25, %v4855_v24  ;;  %2884 = vmatpush.bf16.msrb.mxu3 %v5848_v31  ;;  %2877 = vmatpush.bf16.msra.mxu0 %v5400_v36  ;;  %v2594_v25 = vpop.f32.mrf.mxu0  ;;  %v4729_v31 = vld [vmem:[#allocation2 + $0x130] sm:$0xf0] }
 0x123   :  { %v6963_v28 = vld [vmem:[#allocation2 + $0x42c] sm:$0xf0]  ;;  %v6911_v5 = vld [vmem:[#allocation2 + $0x294] sm:$0xf] }
 0x124   :  { %v6103_v29 = vld [vmem:[#allocation2 + $0xbd0] sm:$0xf]  ;;  %v5112_v41 = vor.u32 %v6963_v28, %v5111_v26  ;;  %2852 = vmatpush.bf16.msrb.mxu1 %v4856_v37  ;;  %v4764_v26 = vor.u32 %v6871_v15, %v4761_v17  ;;  %v6863_v28 = vld [vmem:[#allocation2 + $0x114] sm:$0xf] }
 0x125   :  { %v7211_v30 = vld [vmem:[#allocation2 + $0xbec] sm:$0xf0]  ;;  %v7015_v17 = vld [vmem:[#allocation2 + $0x5d4] sm:$0xf] }
 0x126   :  { %v6135_v32 = vld [vmem:[#allocation2 + $0xc10] sm:$0xf]  ;;  %v6104_v42 = vor.u32 %v7211_v30, %v6103_v29  ;;  %2865 = vmatpush.bf16.msrb.mxu2 %v5112_v41  ;;  %v2595_v29 = vadd.f32 %v2594_v25, %v7608_v14  ;;  %v4732_v41 = vor.u32 %v6863_v28, %v4729_v31  ;;  %v4697_v14 = vld [vmem:[#allocation2 + $0xf0] sm:$0xf0] }
 0x127   :  { %v7219_v33 = vld [vmem:[#allocation2 + $0xc2c] sm:$0xf0]  ;;  %2853 = vmatmul.bf16.vlgmr.msrb.gmra.mxu1 %v7555_v9  ;;  %v5337_v18 = vld [vmem:[#allocation2 + $0x5f0] sm:$0xf0] }
 0x128   :  { %v5815_v38 = vld [vmem:[#allocation2 + $0x990] sm:$0xf]  ;;  %v6136_v47 = vor.u32 %v7219_v33, %v6135_v32  ;;  %2897 = vmatpush.bf16.msra.mxu1 %v6104_v42  ;;  %v6927_v32 = vld [vmem:[#allocation2 + $0x314] sm:$0xf]  ;;  %v5340_v28 = vor.u32 %v7015_v17, %v5337_v18 }
 0x129   :  { %v7139_v40 = vld [vmem:[#allocation2 + $0x9ac] sm:$0xf0]  ;;  %2866 = vmatmul.bf16.vlgmr.msrb.gmra.mxu2 %v7547_v53  ;;  %v4985_v33 = vld [vmem:[#allocation2 + $0x330] sm:$0xf0] }
 0x12a   :  { %v5367_v1 = vld [vmem:[#allocation2 + $0x610] sm:$0xf]  ;;  %v5816_v52 = vor.u32 %v7139_v40, %v5815_v38  ;;  %2917 = vmatpush.bf16.msra.mxu2 %v6136_v47  ;;  %v4988_v42 = vor.u32 %v6927_v32, %v4985_v33  ;;  %v6919_v47 = vld [vmem:[#allocation2 + $0x2d4] sm:$0xf] }
 0x12b   :  { %v7027_v44 = vld [vmem:[#allocation2 + $0x62c] sm:$0xf0]  ;;  %v6839_v19 = vld [vmem:[#allocation2 + $0x54] sm:$0xf] }
 0x12c   :  { %v6071_v54 = vld [vmem:[#allocation2 + $0xb90] sm:$0xf]  ;;  %v5368_v56 = vor.u32 %v7027_v44, %v5367_v1  ;;  %2885 = vmatpush.bf16.msrb.mxu3 %v5816_v52  ;;  %v2607_v1 = vpop.f32.mrf.mxu1  ;;  %v6855_v44 = vld [vmem:[#allocation2 + $0xd4] sm:$0xf] }
 0x12d   :  { %v7203_v55 = vld [vmem:[#allocation2 + $0xbac] sm:$0xf0]  ;;  %v2608_v46 = vadd.f32 %v2607_v1, %v2595_v29  ;;  %v7079_v29 = vld [vmem:[#allocation2 + $0x7d4] sm:$0xf] }
 0x12e   :  { %v5783_v58 = vld [vmem:[#allocation2 + $0x950] sm:$0xf]  ;;  %v6072_v0 = vor.u32 %v7203_v55, %v6071_v54  ;;  %2878 = vmatpush.bf16.msra.mxu0 %v5368_v56  ;;  %2936 = vmatpush.bf16.msrb.mxu2 %v5084_v62  ;;  %v2596_v56 = vpop.f32.mrf.mxu0  ;;  %v6847_v62 = vld [vmem:[#allocation2 + $0x94] sm:$0xf] }
 0x12f   :  { %v7131_v59 = vld [vmem:[#allocation2 + $0x96c] sm:$0xf0]  ;;  %v4668_v15 = vor.u32 %v6847_v62, %v4665_v4  ;;  %v7007_v31 = vld [vmem:[#allocation2 + $0x594] sm:$0xf] }
 0x130   :  { %v5784_v6 = vor.u32 %v7131_v59, %v5783_v58  ;;  %v6039_v7 = vld [vmem:[#allocation2 + $0xb50] sm:$0xf]  ;;  %2898 = vmatpush.bf16.msra.mxu1 %v6072_v0  ;;  %v4700_v58 = vor.u32 %v6855_v44, %v4697_v14  ;;  %v4956_v59 = vor.u32 %v6919_v47, %v4953_v49  ;;  %v6895_v1 = vld [vmem:[#allocation2 + $0x214] sm:$0xf] }
 0x131   :  { %v7195_v8 = vld [vmem:[#allocation2 + $0xb6c] sm:$0xf0]  ;;  %2879 = vmatmul.bf16.vlgmr.msra.gmra.mxu0 %v7551_v60  ;;  %v4857_v44 = vld [vmem:[#allocation2 + $0x230] sm:$0xf0] }
 0x132   :  { %v5751_v10 = vld [vmem:[#allocation2 + $0x910] sm:$0xf]  ;;  %2923 = vmatpush.bf16.msrb.mxu0 %v4828_v61  ;;  %v6040_v16 = vor.u32 %v7195_v8, %v6039_v7  ;;  %2886 = vmatpush.bf16.msrb.mxu3 %v5784_v6  ;;  %v2620_v61 = vpop.f32.mrf.mxu3  ;;  %v4921_v6 = vld [vmem:[#allocation2 + $0x2b0] sm:$0xf0]  ;;  %v4860_v56 = vor.u32 %v6895_v1, %v4857_v44 }
 0x133   :  { %v7123_v11 = vld [vmem:[#allocation2 + $0x92c] sm:$0xf0]  ;;  %2937 = vmatpush.bf16.msrb.mxu2 %v5052_v13  ;;  %v2621_v0 = vadd.f32 %v2620_v61, %v2608_v46  ;;  %v2635_v46 = vpop.f32.mrf.mxu2  ;;  %v5849_v47 = vld [vmem:[#allocation2 + $0x9f0] sm:$0xf0] }
 0x134   :  { %v5752_v20 = vor.u32 %v7123_v11, %v5751_v10  ;;  %v6007_v21 = vld [vmem:[#allocation2 + $0xb10] sm:$0xf]  ;;  %2899 = vmatpush.bf16.msra.mxu1 %v6040_v16  ;;  %v4924_v16 = vor.u32 %v6911_v5, %v4921_v6  ;;  %v7207_v49 = vld [vmem:[#allocation2 + $0xbd4] sm:$0xf] }
 0x135   :  { %v7187_v22 = vld [vmem:[#allocation2 + $0xb2c] sm:$0xf0]  ;;  %v2634_v11 = vadd.f32 %v2633_v2, %v2621_v0  ;;  %v5817_v2 = vld [vmem:[#allocation2 + $0x9b0] sm:$0xf0] }
 0x136   :  { %v5719_v23 = vld [vmem:[#allocation2 + $0x8d0] sm:$0xf]  ;;  %2924 = vmatpush.bf16.msrb.mxu0 %v4796_v12  ;;  %v6008_v30 = vor.u32 %v7187_v22, %v6007_v21  ;;  %2887 = vmatpush.bf16.msrb.mxu3 %v5752_v20  ;;  %v2609_v20 = vpop.f32.mrf.mxu1  ;;  %v4633_v22 = vld [vmem:[#allocation2 + $0x70] sm:$0xf0]  ;;  %v2646_v32 = vpop.f32.mrf.mxu0 }
 0x137   :  { %v7115_v24 = vld [vmem:[#allocation2 + $0x8ec] sm:$0xf0]  ;;  %2938 = vmatpush.bf16.msrb.mxu2 %v5020_v27  ;;  %v4636_v33 = vor.u32 %v6839_v19, %v4633_v22  ;;  %v7199_v4 = vld [vmem:[#allocation2 + $0xb94] sm:$0xf] }
 0x138   :  { %v5720_v35 = vor.u32 %v7115_v24, %v5719_v23  ;;  %v5975_v36 = vld [vmem:[#allocation2 + $0xad0] sm:$0xf]  ;;  %2900 = vmatpush.bf16.msra.mxu1 %v6008_v30  ;;  %v6903_v23 = vld [vmem:[#allocation2 + $0x254] sm:$0xf] }
 0x139   :  { %v7179_v37 = vld [vmem:[#allocation2 + $0xaec] sm:$0xf0]  ;;  %6153 = vmatmul.msk.bf16.vlgmr.msra.gmra.mxu2 %vm2464_vm0, %v7562_v48  ;;  %v4889_v24 = vld [vmem:[#allocation2 + $0x270] sm:$0xf0] }
 0x13a   :  { %v5687_v38 = vld [vmem:[#allocation2 + $0x890] sm:$0xf]  ;;  %2925 = vmatpush.bf16.msrb.mxu0 %v4764_v26  ;;  %v5976_v45 = vor.u32 %v7179_v37, %v5975_v36  ;;  %2888 = vmatpush.bf16.msrb.mxu3 %v5720_v35  ;;  %v5593_v30 = vld [vmem:[#allocation2 + $0x7f0] sm:$0xf0]  ;;  %v4892_v35 = vor.u32 %v6903_v23, %v4889_v24 }
 0x13b   :  { %v7107_v40 = vld [vmem:[#allocation2 + $0x8ac] sm:$0xf0]  ;;  %2939 = vmatpush.bf16.msrb.mxu2 %v4988_v42  ;;  %v5305_v36 = vld [vmem:[#allocation2 + $0x5b0] sm:$0xf0]  ;;  %v5596_v14 = vor.u32 %v7079_v29, %v5593_v30 }
 0x13c   :  { %v5688_v50 = vor.u32 %v7107_v40, %v5687_v38  ;;  %v5943_v51 = vld [vmem:[#allocation2 + $0xa90] sm:$0xf]  ;;  %2901 = vmatpush.bf16.msra.mxu1 %v5976_v45  ;;  %v6831_v37 = vld [vmem:[#allocation2 + $0x14] sm:$0xf]  ;;  %v2622_v40 = vpop.f32.mrf.mxu3 }
 0x13d   :  { %v7171_v52 = vld [vmem:[#allocation2 + $0xaac] sm:$0xf0]  ;;  %v4601_v38 = vld [vmem:[#allocation2 + $0x30] sm:$0xf0] }
 0x13e   :  { %v5655_v54 = vld [vmem:[#allocation2 + $0x850] sm:$0xf]  ;;  %2926 = vmatpush.bf16.msrb.mxu0 %v4732_v41  ;;  %v5944_v63 = vor.u32 %v7171_v52, %v5943_v51  ;;  %2889 = vmatpush.bf16.msrb.mxu3 %v5688_v50  ;;  %v7617_v41 = vadd.f32 %v2646_v32, %v2634_v11  ;;  %v7143_v45 = vld [vmem:[#allocation2 + $0x9d4] sm:$0xf]  ;;  %v5308_v51 = vor.u32 %v7007_v31, %v5305_v36 }
 0x13f   :  { %v7099_v55 = vld [vmem:[#allocation2 + $0x86c] sm:$0xf0]  ;;  %2940 = vmatpush.bf16.msrb.mxu2 %v4956_v59  ;;  %v6105_v50 = vld [vmem:[#allocation2 + $0xbf0] sm:$0xf0]  ;;  %v5852_v61 = vor.u32 %v7143_v45, %v5849_v47  ;;  %v2659_v45 = vpop.f32.mrf.mxu1 }
 0x140   :  { %v5656_v7 = vor.u32 %v7099_v55, %v5655_v54  ;;  %v5911_v8 = vld [vmem:[#allocation2 + $0xa50] sm:$0xf]  ;;  %2902 = vmatpush.bf16.msra.mxu1 %v5944_v63  ;;  %v7071_v52 = vld [vmem:[#allocation2 + $0x794] sm:$0xf]  ;;  %v4604_v55 = vor.u32 %v6831_v37, %v4601_v38  ;;  %v6108_v62 = vor.u32 %v7207_v49, %v6105_v50 }
 0x141   :  { %v7163_v10 = vld [vmem:[#allocation2 + $0xa6c] sm:$0xf0]  ;;  %v5561_v54 = vld [vmem:[#allocation2 + $0x7b0] sm:$0xf0] }
 0x142   :  { %v5623_v12 = vld [vmem:[#allocation2 + $0x810] sm:$0xf]  ;;  %2927 = vmatpush.bf16.msrb.mxu0 %v4700_v58  ;;  %v5912_v21 = vor.u32 %v7163_v10, %v5911_v8  ;;  %2890 = vmatpush.bf16.msrb.mxu3 %v5656_v7  ;;  %v6999_v58 = vld [vmem:[#allocation2 + $0x554] sm:$0xf]  ;;  %v5564_v0 = vor.u32 %v7071_v52, %v5561_v54  ;;  %v2648_v10 = vpop.f32.mrf.mxu0 }
 0x143   :  { %v7091_v13 = vld [vmem:[#allocation2 + $0x82c] sm:$0xf0]  ;;  %2941 = vmatpush.bf16.msrb.mxu2 %v4924_v16  ;;  %v5273_v59 = vld [vmem:[#allocation2 + $0x570] sm:$0xf0] }
 0x144   :  { %v5624_v25 = vor.u32 %v7091_v13, %v5623_v12  ;;  %v5879_v26 = vld [vmem:[#allocation2 + $0xa10] sm:$0xf]  ;;  %2903 = vmatpush.bf16.msra.mxu1 %v5912_v21  ;;  %v7135_v63 = vld [vmem:[#allocation2 + $0x994] sm:$0xf]  ;;  %v5276_v6 = vor.u32 %v6999_v58, %v5273_v59  ;;  %v2672_v59 = vpop.f32.mrf.mxu3 }
 0x145   :  { %v7155_v27 = vld [vmem:[#allocation2 + $0xa2c] sm:$0xf0]  ;;  %v6073_v5 = vld [vmem:[#allocation2 + $0xbb0] sm:$0xf0]  ;;  %v5820_v13 = vor.u32 %v7135_v63, %v5817_v2 }
 0x146   :  { %2928 = vmatpush.bf16.msrb.mxu0 %v4668_v15  ;;  %v5880_v42 = vor.u32 %v7155_v27, %v5879_v26  ;;  %2891 = vmatpush.bf16.msrb.mxu3 %v5624_v25  ;;  %v7063_v7 = vld [vmem:[#allocation2 + $0x754] sm:$0xf]  ;;  %v6076_v15 = vor.u32 %v7199_v4, %v6073_v5 }
 0x147   :  { %2942 = vmatpush.bf16.msrb.mxu2 %v4892_v35  ;;  %v5529_v8 = vld [vmem:[#allocation2 + $0x770] sm:$0xf0] }
 0x148   :  { %2904 = vmatpush.bf16.msra.mxu1 %v5880_v42  ;;  %v6991_v11 = vld [vmem:[#allocation2 + $0x514] sm:$0xf]  ;;  %v5532_v17 = vor.u32 %v7063_v7, %v5529_v8 }
 0x149   :  { %2892 = vmatmul.bf16.vlgmr.msrb.gmra.mxu3 %v7569_v34  ;;  %v5241_v12 = vld [vmem:[#allocation2 + $0x530] sm:$0xf0] }
 0x14a   :  { %2949 = vmatpush.bf16.msra.mxu3 %v5340_v28  ;;  %2929 = vmatpush.bf16.msrb.mxu0 %v4636_v33  ;;  %v7127_v16 = vld [vmem:[#allocation2 + $0x954] sm:$0xf]  ;;  %v5244_v21 = vor.u32 %v6991_v11, %v5241_v12  ;;  %v466_v33 = vperm.slane %v7591_v3, 2  ;;  %v2685_v38 = vpop.f32.mrf.mxu0 }
 0x14b   :  { %2943 = vmatpush.bf16.msrb.mxu2 %v4860_v56  ;;  %v5785_v18 = vld [vmem:[#allocation2 + $0x970] sm:$0xf0]  ;;  %2905 = vmatmul.bf16.vlgmr.msra.gmra.mxu1 %v7571_v39 }
 0x14c   :  { %2962 = vmatpush.bf16.msrb.mxu1 %v5596_v14  ;;  %v7191_v19 = vld [vmem:[#allocation2 + $0xb54] sm:$0xf]  ;;  %v5788_v26 = vor.u32 %v7127_v16, %v5785_v18  ;;  %v2660_v14 = vadd.f32 %v2659_v45, %v466_v33  ;;  %v2698_v16 = vpop.f32.mrf.mxu2  ;;  %v6892_v33 = vld [vmem:[#allocation2 + $0x1f4] sm:$0xf0] }
 0x14d   :  { %v6041_v20 = vld [vmem:[#allocation2 + $0xb70] sm:$0xf0] }
 0x14e   :  { %2950 = vmatpush.bf16.msra.mxu3 %v5308_v51  ;;  %2930 = vmatpush.bf16.msrb.mxu0 %v4604_v55  ;;  %v7055_v22 = vld [vmem:[#allocation2 + $0x714] sm:$0xf]  ;;  %v6044_v27 = vor.u32 %v7191_v19, %v6041_v20 }
 0x14f   :  { %2988 = vmatpush.bf16.msra.mxu2 %v6108_v62  ;;  %v5497_v23 = vld [vmem:[#allocation2 + $0x730] sm:$0xf0] }
 0x150   :  { %2963 = vmatpush.bf16.msrb.mxu1 %v5564_v0  ;;  %v6983_v24 = vld [vmem:[#allocation2 + $0x4d4] sm:$0xf]  ;;  %2944 = vmatmul.bf16.vlgmr.msrb.gmra.mxu2 %v7555_v9  ;;  %v5500_v30 = vor.u32 %v7055_v22, %v5497_v23  ;;  %v2673_v0 = vadd.f32 %v2672_v59, %v2660_v14  ;;  %v2661_v22 = vpop.f32.mrf.mxu1  ;;  %v5343_v14 = vld [vmem:[#allocation2 + $0x5d8] sm:$0xf] }
 0x151   :  { %v5209_v25 = vld [vmem:[#allocation2 + $0x4f0] sm:$0xf0]  ;;  %2931 = vmatmul.bf16.vlgmr.msrb.gmra.mxu0 %v7549_v57  ;;  %v5535_v22 = vld [vmem:[#allocation2 + $0x758] sm:$0xf] }
 0x152   :  { %2975 = vmatpush.bf16.msra.mxu0 %v5852_v61  ;;  %2951 = vmatpush.bf16.msra.mxu3 %v5276_v6  ;;  %v7119_v28 = vld [vmem:[#allocation2 + $0x914] sm:$0xf]  ;;  %v5212_v35 = vor.u32 %v6983_v24, %v5209_v25  ;;  %v2687_v11 = vpop.f32.mrf.mxu0  ;;  %v2686_v12 = vadd.f32 %v2685_v38, %v2673_v0 }
 0x153   :  { %2989 = vmatpush.bf16.msra.mxu2 %v6076_v15  ;;  %v5753_v29 = vld [vmem:[#allocation2 + $0x930] sm:$0xf0]  ;;  %v4767_v11 = vld [vmem:[#allocation2 + $0x158] sm:$0xf] }
 0x154   :  { %2964 = vmatpush.bf16.msrb.mxu1 %v5532_v17  ;;  %v7183_v31 = vld [vmem:[#allocation2 + $0xb14] sm:$0xf]  ;;  %v5756_v1 = vor.u32 %v7119_v28, %v5753_v29  ;;  %v7624_v23 = vadd.f32 %v2698_v16, %v2686_v12  ;;  %v6876_v12 = vld [vmem:[#allocation2 + $0x174] sm:$0xf0] }
 0x155   :  { %v6009_v32 = vld [vmem:[#allocation2 + $0xb30] sm:$0xf0] }
 0x156   :  { %2976 = vmatpush.bf16.msra.mxu0 %v5820_v13  ;;  %2952 = vmatpush.bf16.msra.mxu3 %v5244_v21  ;;  %v7047_v36 = vld [vmem:[#allocation2 + $0x6d4] sm:$0xf]  ;;  %v6012_v44 = vor.u32 %v7183_v31, %v6009_v32  ;;  %v4831_v31 = vld [vmem:[#allocation2 + $0x1d8] sm:$0xf] }
 0x157   :  { %v5465_v37 = vld [vmem:[#allocation2 + $0x6f0] sm:$0xf0]  ;;  %2990 = vmatpush.bf16.msra.mxu2 %v6044_v27 }
 0x158   :  { %v6975_v40 = vld [vmem:[#allocation2 + $0x494] sm:$0xf]  ;;  %2965 = vmatpush.bf16.msrb.mxu1 %v5500_v30  ;;  %v5468_v47 = vor.u32 %v7047_v36, %v5465_v37  ;;  %v6956_v36 = vld [vmem:[#allocation2 + $0x3f4] sm:$0xf0] }
 0x159   :  { %v5177_v42 = vld [vmem:[#allocation2 + $0x4b0] sm:$0xf0] }
 0x15a   :  { %2977 = vmatpush.bf16.msra.mxu0 %v5788_v26  ;;  %v7111_v46 = vld [vmem:[#allocation2 + $0x8d4] sm:$0xf]  ;;  %2953 = vmatpush.bf16.msra.mxu3 %v5212_v35  ;;  %v5180_v52 = vor.u32 %v6975_v40, %v5177_v42  ;;  %v5087_v35 = vld [vmem:[#allocation2 + $0x3d8] sm:$0xf]  ;;  %v7626_v59 = vpop.f32.mrf.mxu0 }
 0x15b   :  { %v5721_v49 = vld [vmem:[#allocation2 + $0x8f0] sm:$0xf0]  ;;  %2991 = vmatpush.bf16.msra.mxu2 %v6012_v44  ;;  %v2674_v44 = vpop.f32.mrf.mxu3 }
 0x15c   :  { %v7175_v50 = vld [vmem:[#allocation2 + $0xad4] sm:$0xf]  ;;  %v5724_v61 = vor.u32 %v7111_v46, %v5721_v49  ;;  %2966 = vmatpush.bf16.msrb.mxu1 %v5468_v47  ;;  %v7020_v47 = vld [vmem:[#allocation2 + $0x5f4] sm:$0xf0]  ;;  %v4832_v49 = vor.u32 %v6892_v33, %v4831_v31 }
 0x15d   :  { %v5977_v51 = vld [vmem:[#allocation2 + $0xaf0] sm:$0xf0]  ;;  %v5344_v0 = vor.u32 %v7020_v47, %v5343_v14  ;;  %v6860_v44 = vld [vmem:[#allocation2 + $0xf4] sm:$0xf0] }
 0x15e   :  { %v7039_v54 = vld [vmem:[#allocation2 + $0x694] sm:$0xf]  ;;  %2978 = vmatpush.bf16.msra.mxu0 %v5756_v1  ;;  %v5980_v62 = vor.u32 %v7175_v50, %v5977_v51  ;;  %2954 = vmatpush.bf16.msra.mxu3 %v5180_v52  ;;  %v5088_v50 = vor.u32 %v6956_v36, %v5087_v35  ;;  %v5599_v51 = vld [vmem:[#allocation2 + $0x7d8] sm:$0xf] }
 0x15f   :  { %v5433_v55 = vld [vmem:[#allocation2 + $0x6b0] sm:$0xf0]  ;;  %v7084_v52 = vld [vmem:[#allocation2 + $0x7f4] sm:$0xf0] }
 0x160   :  { %v6967_v56 = vld [vmem:[#allocation2 + $0x454] sm:$0xf]  ;;  %v5436_v2 = vor.u32 %v7039_v54, %v5433_v55  ;;  %2992 = vmatpush.bf16.msra.mxu2 %v5980_v62  ;;  %v4799_v54 = vld [vmem:[#allocation2 + $0x198] sm:$0xf] }
 0x161   :  { %v5145_v58 = vld [vmem:[#allocation2 + $0x470] sm:$0xf0]  ;;  %v6884_v55 = vld [vmem:[#allocation2 + $0x1b4] sm:$0xf0] }
 0x162   :  { %v7103_v63 = vld [vmem:[#allocation2 + $0x894] sm:$0xf]  ;;  %v5148_v7 = vor.u32 %v6967_v56, %v5145_v58  ;;  %2979 = vmatpush.bf16.msra.mxu0 %v5724_v61  ;;  %2967 = vmatpush.bf16.msrb.mxu1 %v5436_v2  ;;  %v5055_v56 = vld [vmem:[#allocation2 + $0x398] sm:$0xf]  ;;  %v5600_v2 = vor.u32 %v7084_v52, %v5599_v51 }
 0x163   :  { %v5689_v4 = vld [vmem:[#allocation2 + $0x8b0] sm:$0xf0]  ;;  %v6948_v58 = vld [vmem:[#allocation2 + $0x3b4] sm:$0xf0] }
 0x164   :  { %v7167_v5 = vld [vmem:[#allocation2 + $0xa94] sm:$0xf]  ;;  %v5692_v17 = vor.u32 %v7103_v63, %v5689_v4  ;;  %2955 = vmatpush.bf16.msra.mxu3 %v5148_v7  ;;  %v2700_v63 = vpop.f32.mrf.mxu2  ;;  %v5311_v4 = vld [vmem:[#allocation2 + $0x598] sm:$0xf]  ;;  %v5056_v7 = vor.u32 %v6948_v58, %v5055_v56 }
 0x165   :  { %v5945_v6 = vld [vmem:[#allocation2 + $0xab0] sm:$0xf0]  ;;  %v5471_v51 = vld [vmem:[#allocation2 + $0x6d8] sm:$0xf] }
 0x166   :  { %v7031_v8 = vld [vmem:[#allocation2 + $0x654] sm:$0xf]  ;;  %v5948_v18 = vor.u32 %v7167_v5, %v5945_v6  ;;  %2980 = vmatpush.bf16.msra.mxu0 %v5692_v17  ;;  %v7012_v5 = vld [vmem:[#allocation2 + $0x5b4] sm:$0xf0]  ;;  %v4800_v6 = vor.u32 %v6884_v55, %v4799_v54 }
 0x167   :  { %v5401_v10 = vld [vmem:[#allocation2 + $0x670] sm:$0xf0]  ;;  %v5312_v16 = vor.u32 %v7012_v5, %v5311_v4  ;;  %v7052_v54 = vld [vmem:[#allocation2 + $0x6f4] sm:$0xf0] }
 0x168   :  { %v6959_v13 = vld [vmem:[#allocation2 + $0x414] sm:$0xf]  ;;  %v5404_v24 = vor.u32 %v7031_v8, %v5401_v10  ;;  %2993 = vmatpush.bf16.msra.mxu2 %v5948_v18  ;;  %v5567_v8 = vld [vmem:[#allocation2 + $0x798] sm:$0xf] }
 0x169   :  { %v5113_v15 = vld [vmem:[#allocation2 + $0x430] sm:$0xf0]  ;;  %v7076_v10 = vld [vmem:[#allocation2 + $0x7b4] sm:$0xf0] }
 0x16a   :  { %v7095_v19 = vld [vmem:[#allocation2 + $0x854] sm:$0xf]  ;;  %v5116_v28 = vor.u32 %v6959_v13, %v5113_v15  ;;  %2968 = vmatpush.bf16.msrb.mxu1 %v5404_v24  ;;  %v5023_v13 = vld [vmem:[#allocation2 + $0x358] sm:$0xf]  ;;  %v5568_v17 = vor.u32 %v7076_v10, %v5567_v8 }
 0x16b   :  { %v7215_v20 = vld [vmem:[#allocation2 + $0xc14] sm:$0xf]  ;;  %v6940_v15 = vld [vmem:[#allocation2 + $0x374] sm:$0xf0] }
 0x16c   :  { %v6137_v21 = vld [vmem:[#allocation2 + $0xc30] sm:$0xf0]  ;;  %2956 = vmatpush.bf16.msra.mxu3 %v5116_v28  ;;  %v5279_v18 = vld [vmem:[#allocation2 + $0x558] sm:$0xf] }
 0x16d   :  { %v5657_v25 = vld [vmem:[#allocation2 + $0x870] sm:$0xf0]  ;;  %v6140_v32 = vor.u32 %v7215_v20, %v6137_v21  ;;  %v4768_v20 = vor.u32 %v6876_v12, %v4767_v11  ;;  %v5024_v21 = vor.u32 %v6940_v15, %v5023_v13  ;;  %v7068_v24 = vld [vmem:[#allocation2 + $0x774] sm:$0xf0] }
 0x16e   :  { %v7159_v26 = vld [vmem:[#allocation2 + $0xa54] sm:$0xf]  ;;  %v5660_v37 = vor.u32 %v7095_v19, %v5657_v25  ;;  %v7004_v19 = vld [vmem:[#allocation2 + $0x574] sm:$0xf0] }
 0x16f   :  { %v5913_v27 = vld [vmem:[#allocation2 + $0xa70] sm:$0xf0]  ;;  %2957 = vmatmul.bf16.vlgmr.msra.gmra.mxu3 %v7547_v53  ;;  %v4735_v25 = vld [vmem:[#allocation2 + $0x118] sm:$0xf]  ;;  %v5280_v31 = vor.u32 %v7004_v19, %v5279_v18  ;;  %v2750_v18 = vpop.f32.mrf.mxu2 }
 0x170   :  { %v7023_v29 = vld [vmem:[#allocation2 + $0x614] sm:$0xf]  ;;  %v5916_v38 = vor.u32 %v7159_v26, %v5913_v27  ;;  %3008 = vmatpush.bf16.msrb.mxu3 %v6140_v32  ;;  %2981 = vmatpush.bf16.msra.mxu0 %v5660_v37  ;;  %v6868_v26 = vld [vmem:[#allocation2 + $0x134] sm:$0xf0]  ;;  %v5536_v32 = vor.u32 %v7068_v24, %v5535_v22 }
 0x171   :  { %v5369_v30 = vld [vmem:[#allocation2 + $0x630] sm:$0xf0]  ;;  %v4991_v27 = vld [vmem:[#allocation2 + $0x318] sm:$0xf]  ;;  %v4736_v35 = vor.u32 %v6868_v26, %v4735_v25 }
 0x172   :  { %v7087_v40 = vld [vmem:[#allocation2 + $0x814] sm:$0xf]  ;;  %v5372_v45 = vor.u32 %v7023_v29, %v5369_v30  ;;  %2994 = vmatpush.bf16.msra.mxu2 %v5916_v38  ;;  %v6932_v28 = vld [vmem:[#allocation2 + $0x334] sm:$0xf0]  ;;  %v2739_v29 = vpop.f32.mrf.mxu0  ;;  %v2711_v30 = vpop.f32.mrf.mxu1 }
 0x173   :  { %v5625_v42 = vld [vmem:[#allocation2 + $0x830] sm:$0xf0]  ;;  %v2712_v33 = vadd.f32 %v2711_v30, %v7624_v23  ;;  %v4992_v36 = vor.u32 %v6932_v28, %v4991_v27  ;;  %v5247_v37 = vld [vmem:[#allocation2 + $0x518] sm:$0xf] }
 0x174   :  { %v7151_v1 = vld [vmem:[#allocation2 + $0xa14] sm:$0xf]  ;;  %v5628_v61 = vor.u32 %v7087_v40, %v5625_v42  ;;  %2969 = vmatpush.bf16.msrb.mxu1 %v5372_v45  ;;  %3027 = vmatpush.bf16.msra.mxu3 %v5088_v50  ;;  %v6996_v38 = vld [vmem:[#allocation2 + $0x534] sm:$0xf0] }
 0x175   :  { %v5881_v46 = vld [vmem:[#allocation2 + $0xa30] sm:$0xf0]  ;;  %v5503_v40 = vld [vmem:[#allocation2 + $0x718] sm:$0xf]  ;;  %v5248_v14 = vor.u32 %v6996_v38, %v5247_v37 }
 0x176   :  { %v5884_v62 = vor.u32 %v7151_v1, %v5881_v46  ;;  %2982 = vmatpush.bf16.msra.mxu0 %v5628_v61  ;;  %v7060_v42 = vld [vmem:[#allocation2 + $0x734] sm:$0xf0]  ;;  %v2724_v61 = vpop.f32.mrf.mxu3 }
 0x177   :  { %2970 = vmatmul.bf16.vlgmr.msrb.gmra.mxu1 %v7551_v60  ;;  %v4703_v1 = vld [vmem:[#allocation2 + $0xd8] sm:$0xf]  ;;  %v5504_v47 = vor.u32 %v7060_v42, %v5503_v40 }
 0x178   :  { %3014 = vmatpush.bf16.msra.mxu1 %v4832_v49  ;;  %2995 = vmatpush.bf16.msra.mxu2 %v5884_v62  ;;  %v4959_v45 = vld [vmem:[#allocation2 + $0x2d8] sm:$0xf]  ;;  %v4704_v49 = vor.u32 %v6860_v44, %v4703_v1 }
 0x179   :  { %3028 = vmatpush.bf16.msra.mxu3 %v5056_v7  ;;  %2983 = vmatmul.bf16.vlgmr.msra.gmra.mxu0 %v7569_v34  ;;  %v6924_v46 = vld [vmem:[#allocation2 + $0x2f4] sm:$0xf0] }
 0x17a   :  { %3040 = vmatpush.bf16.msrb.mxu0 %v5344_v0  ;;  %v5215_v23 = vld [vmem:[#allocation2 + $0x4d8] sm:$0xf]  ;;  %v4960_v52 = vor.u32 %v6924_v46, %v4959_v45  ;;  %v2763_v58 = vpop.f32.mrf.mxu0  ;;  %v467_v0 = vperm.slane %v7591_v3, 3  ;;  %v2713_v5 = vpop.f32.mrf.mxu1 }
 0x17b   :  { %2996 = vmatmul.bf16.vlgmr.msra.gmra.mxu2 %v7571_v39  ;;  %v6988_v50 = vld [vmem:[#allocation2 + $0x4f4] sm:$0xf0] }
 0x17c   :  { %3053 = vmatpush.bf16.msrb.mxu2 %v5600_v2  ;;  %3015 = vmatpush.bf16.msra.mxu1 %v4800_v6  ;;  %v4671_v55 = vld [vmem:[#allocation2 + $0x98] sm:$0xf]  ;;  %v2725_v2 = vadd.f32 %v2724_v61, %v2712_v33  ;;  %v5216_v4 = vor.u32 %v6988_v50, %v5215_v23  ;;  %v5472_v6 = vor.u32 %v7052_v54, %v5471_v51  ;;  %v6888_v54 = vld [vmem:[#allocation2 + $0x1dc] sm:$0xf] }
 0x17d   :  { %3029 = vmatpush.bf16.msra.mxu3 %v5024_v21  ;;  %v6852_v56 = vld [vmem:[#allocation2 + $0xb4] sm:$0xf0]  ;;  %v2751_v21 = vadd.f32 %v2750_v18, %v467_v0 }
 0x17e   :  { %3041 = vmatpush.bf16.msrb.mxu0 %v5312_v16  ;;  %v4927_v62 = vld [vmem:[#allocation2 + $0x298] sm:$0xf]  ;;  %v4672_v7 = vor.u32 %v6852_v56, %v4671_v55  ;;  %v7637_v12 = vadd.f32 %v7626_v59, %v2725_v2  ;;  %v2726_v42 = vpop.f32.mrf.mxu3 }
 0x17f   :  { %v6916_v63 = vld [vmem:[#allocation2 + $0x2b4] sm:$0xf0]  ;;  %6154 = vmatmul.msk.bf16.vlgmr.msrb.gmra.mxu3 %vm2464_vm0, %v7562_v48  ;;  %v7641_v30 = vadd.f32 %v2763_v58, %v2751_v21  ;;  %v2752_v58 = vpop.f32.mrf.mxu2  ;;  %v5025_v42 = vld [vmem:[#allocation2 + $0x378] sm:$0xf0] }
 0x180   :  { %3054 = vmatpush.bf16.msrb.mxu2 %v5568_v17  ;;  %3016 = vmatpush.bf16.msra.mxu1 %v4768_v20  ;;  %v5183_v8 = vld [vmem:[#allocation2 + $0x498] sm:$0xf]  ;;  %v4928_v13 = vor.u32 %v6916_v63, %v4927_v62  ;;  %v3196_v22 = vmax.f32 %v7603_v43, %v7637_v12  ;;  %v4833_v62 = vld [vmem:[#allocation2 + $0x1f8] sm:$0xf0]  ;;  %v6257_v12 = vld [vmem:[#allocation5 + $0xd0] sm:$0xf0] }
 0x181   :  { %3030 = vmatpush.bf16.msra.mxu3 %v4992_v36  ;;  %v6980_v10 = vld [vmem:[#allocation2 + $0x4b4] sm:$0xf0] }
 0x182   :  { %3042 = vmatpush.bf16.msrb.mxu0 %v5280_v31  ;;  %v5439_v11 = vld [vmem:[#allocation2 + $0x698] sm:$0xf]  ;;  %v5184_v24 = vor.u32 %v6980_v10, %v5183_v8  ;;  %v2765_v36 = vpop.f32.mrf.mxu0  ;;  %v6952_v8 = vld [vmem:[#allocation2 + $0x3dc] sm:$0xf] }
 0x183   :  { %v7044_v15 = vld [vmem:[#allocation2 + $0x6b4] sm:$0xf0]  ;;  %v5089_v10 = vld [vmem:[#allocation2 + $0x3f8] sm:$0xf0] }
 0x184   :  { %3055 = vmatpush.bf16.msrb.mxu2 %v5536_v32  ;;  %3017 = vmatpush.bf16.msra.mxu1 %v4736_v35  ;;  %v4639_v16 = vld [vmem:[#allocation2 + $0x58] sm:$0xf]  ;;  %v5440_v26 = vor.u32 %v7044_v15, %v5439_v11  ;;  %v4836_v11 = vor.u32 %v6888_v54, %v4833_v62  ;;  %v6880_v15 = vld [vmem:[#allocation2 + $0x19c] sm:$0xf] }
 0x185   :  { %3031 = vmatpush.bf16.msra.mxu3 %v4960_v52  ;;  %v6844_v17 = vld [vmem:[#allocation2 + $0x74] sm:$0xf0]  ;;  %v6928_v54 = vld [vmem:[#allocation2 + $0x31c] sm:$0xf] }
 0x186   :  { %3043 = vmatpush.bf16.msrb.mxu0 %v5248_v14  ;;  %v4895_v19 = vld [vmem:[#allocation2 + $0x258] sm:$0xf]  ;;  %v4640_v59 = vor.u32 %v6844_v17, %v4639_v16  ;;  %v4801_v17 = vld [vmem:[#allocation2 + $0x1b8] sm:$0xf0] }
 0x187   :  { %v6908_v20 = vld [vmem:[#allocation2 + $0x274] sm:$0xf0]  ;;  %v4705_v62 = vld [vmem:[#allocation2 + $0xf8] sm:$0xf0] }
 0x188   :  { %3056 = vmatpush.bf16.msrb.mxu2 %v5504_v47  ;;  %3018 = vmatpush.bf16.msra.mxu1 %v4704_v49  ;;  %v5151_v25 = vld [vmem:[#allocation2 + $0x458] sm:$0xf]  ;;  %v4896_v31 = vor.u32 %v6908_v20, %v4895_v19  ;;  %v5092_v20 = vor.u32 %v6952_v8, %v5089_v10 }
 0x189   :  { %v6972_v27 = vld [vmem:[#allocation2 + $0x474] sm:$0xf0]  ;;  %3032 = vmatpush.bf16.msra.mxu3 %v4928_v13 }
 0x18a   :  { %3044 = vmatpush.bf16.msrb.mxu0 %v5216_v4  ;;  %v5407_v28 = vld [vmem:[#allocation2 + $0x658] sm:$0xf]  ;;  %v5152_v1 = vor.u32 %v6972_v27, %v5151_v25  ;;  %v6944_v25 = vld [vmem:[#allocation2 + $0x39c] sm:$0xf] }
 0x18b   :  { %v7036_v29 = vld [vmem:[#allocation2 + $0x674] sm:$0xf0] }
 0x18c   :  { %3057 = vmatpush.bf16.msrb.mxu2 %v5472_v6  ;;  %3019 = vmatpush.bf16.msra.mxu1 %v4672_v7  ;;  %v4607_v32 = vld [vmem:[#allocation2 + $0x18] sm:$0xf]  ;;  %v5408_v14 = vor.u32 %v7036_v29, %v5407_v28  ;;  %v6872_v28 = vld [vmem:[#allocation2 + $0x15c] sm:$0xf] }
 0x18d   :  { %v6836_v33 = vld [vmem:[#allocation2 + $0x34] sm:$0xf0]  ;;  %3033 = vmatpush.bf16.msra.mxu3 %v4896_v31  ;;  %v4769_v31 = vld [vmem:[#allocation2 + $0x178] sm:$0xf0] }
 0x18e   :  { %v4863_v35 = vld [vmem:[#allocation2 + $0x218] sm:$0xf]  ;;  %3045 = vmatpush.bf16.msrb.mxu0 %v5184_v24  ;;  %v4608_v47 = vor.u32 %v6836_v33, %v4607_v32 }
 0x18f   :  { %v6900_v37 = vld [vmem:[#allocation2 + $0x234] sm:$0xf0] }
 0x190   :  { %v5855_v38 = vld [vmem:[#allocation2 + $0x9d8] sm:$0xf]  ;;  %3058 = vmatpush.bf16.msrb.mxu2 %v5440_v26  ;;  %3020 = vmatpush.bf16.msra.mxu1 %v4640_v59  ;;  %v4864_v51 = vor.u32 %v6900_v37, %v4863_v35  ;;  %v5057_v26 = vld [vmem:[#allocation2 + $0x3b8] sm:$0xf0]  ;;  %v4804_v59 = vor.u32 %v6880_v15, %v4801_v17  ;;  %v2802_v15 = vpop.f32.mrf.mxu2 }
 0x191   :  { %v7148_v40 = vld [vmem:[#allocation2 + $0x9f4] sm:$0xf0]  ;;  %v5060_v35 = vor.u32 %v6944_v25, %v5057_v26 }
 0x192   :  { %v6111_v44 = vld [vmem:[#allocation2 + $0xbd8] sm:$0xf]  ;;  %v5856_v52 = vor.u32 %v7148_v40, %v5855_v38  ;;  %3046 = vmatpush.bf16.msrb.mxu0 %v5152_v1  ;;  %3034 = vmatpush.bf16.msra.mxu3 %v4864_v51  ;;  %v2776_v38 = vpop.f32.mrf.mxu1  ;;  %v6936_v40 = vld [vmem:[#allocation2 + $0x35c] sm:$0xf] }
 0x193   :  { %v7212_v45 = vld [vmem:[#allocation2 + $0xbf4] sm:$0xf0]  ;;  %v2777_v1 = vadd.f32 %v2776_v38, %v7641_v30  ;;  %v6856_v30 = vld [vmem:[#allocation2 + $0xdc] sm:$0xf] }
 0x194   :  { %v5119_v46 = vld [vmem:[#allocation2 + $0x418] sm:$0xf]  ;;  %v6112_v61 = vor.u32 %v7212_v45, %v6111_v44  ;;  %3059 = vmatpush.bf16.msrb.mxu2 %v5408_v14  ;;  %3021 = vmatpush.bf16.msra.mxu1 %v4608_v47  ;;  %v4772_v44 = vor.u32 %v6872_v28, %v4769_v31  ;;  %v4737_v47 = vld [vmem:[#allocation2 + $0x138] sm:$0xf0] }
 0x195   :  { %v6964_v49 = vld [vmem:[#allocation2 + $0x434] sm:$0xf0]  ;;  %3035 = vmatmul.bf16.vlgmr.msra.gmra.mxu3 %v7555_v9  ;;  %v4929_v31 = vld [vmem:[#allocation2 + $0x2b8] sm:$0xf0] }
 0x196   :  { %v5375_v23 = vld [vmem:[#allocation2 + $0x618] sm:$0xf]  ;;  %v5120_v2 = vor.u32 %v6964_v49, %v5119_v46  ;;  %3079 = vmatpush.bf16.msrb.mxu3 %v6112_v61  ;;  %v6864_v46 = vld [vmem:[#allocation2 + $0x11c] sm:$0xf] }
 0x197   :  { %v7028_v50 = vld [vmem:[#allocation2 + $0x634] sm:$0xf0]  ;;  %3022 = vmatmul.bf16.vlgmr.msra.gmra.mxu1 %v7549_v57 }
 0x198   :  { %v6143_v55 = vld [vmem:[#allocation2 + $0xc18] sm:$0xf]  ;;  %v5376_v6 = vor.u32 %v7028_v50, %v5375_v23  ;;  %3066 = vmatpush.bf16.msrb.mxu1 %v5856_v52  ;;  %3047 = vmatpush.bf16.msrb.mxu0 %v5120_v2  ;;  %v5028_v50 = vor.u32 %v6936_v40, %v5025_v42  ;;  %v2789_v2 = vpop.f32.mrf.mxu3 }
 0x199   :  { %v7220_v56 = vld [vmem:[#allocation2 + $0xc34] sm:$0xf0]  ;;  %v2790_v8 = vadd.f32 %v2789_v2, %v2777_v1  ;;  %v5857_v2 = vld [vmem:[#allocation2 + $0x9f8] sm:$0xf0] }
 0x19a   :  { %v5823_v63 = vld [vmem:[#allocation2 + $0x998] sm:$0xf]  ;;  %v6144_v7 = vor.u32 %v7220_v56, %v6143_v55  ;;  %3060 = vmatpush.bf16.msrb.mxu2 %v5376_v6  ;;  %v4993_v55 = vld [vmem:[#allocation2 + $0x338] sm:$0xf0]  ;;  %v4740_v56 = vor.u32 %v6864_v46, %v4737_v47  ;;  %v2778_v10 = vpop.f32.mrf.mxu1 }
 0x19b   :  { %v7140_v0 = vld [vmem:[#allocation2 + $0x9b4] sm:$0xf0]  ;;  %3048 = vmatmul.bf16.vlgmr.msrb.gmra.mxu0 %v7547_v53  ;;  %v5345_v46 = vld [vmem:[#allocation2 + $0x5f8] sm:$0xf0] }
 0x19c   :  { %v6079_v4 = vld [vmem:[#allocation2 + $0xb98] sm:$0xf]  ;;  %v5824_v13 = vor.u32 %v7140_v0, %v5823_v63  ;;  %3099 = vmatpush.bf16.msra.mxu0 %v6144_v7  ;;  %v7072_v10 = vld [vmem:[#allocation2 + $0x79c] sm:$0xf] }
 0x19d   :  { %v7204_v5 = vld [vmem:[#allocation2 + $0xbb4] sm:$0xf0]  ;;  %3061 = vmatmul.bf16.vlgmr.msrb.gmra.mxu2 %v7551_v60 }
 0x19e   :  { %v6080_v16 = vor.u32 %v7204_v5, %v6079_v4  ;;  %v5791_v18 = vld [vmem:[#allocation2 + $0x958] sm:$0xf]  ;;  %3105 = vmatpush.bf16.msra.mxu2 %v4836_v11  ;;  %3067 = vmatpush.bf16.msrb.mxu1 %v5824_v13  ;;  %v4996_v4 = vor.u32 %v6928_v54, %v4993_v55  ;;  %v2815_v5 = vpop.f32.mrf.mxu0  ;;  %v6920_v11 = vld [vmem:[#allocation2 + $0x2dc] sm:$0xf] }
 0x19f   :  { %v7132_v19 = vld [vmem:[#allocation2 + $0x974] sm:$0xf0]  ;;  %v4961_v13 = vld [vmem:[#allocation2 + $0x2f8] sm:$0xf0] }
 0x1a0   :  { %v6047_v21 = vld [vmem:[#allocation2 + $0xb58] sm:$0xf]  ;;  %v5792_v27 = vor.u32 %v7132_v19, %v5791_v18  ;;  %3080 = vmatpush.bf16.msrb.mxu3 %v6080_v16  ;;  %3118 = vmatpush.bf16.msrb.mxu0 %v5092_v20  ;;  %v4708_v16 = vor.u32 %v6856_v30, %v4705_v62  ;;  %v6848_v18 = vld [vmem:[#allocation2 + $0x9c] sm:$0xf]  ;;  %v2803_v19 = vadd.f32 %v2802_v15, %v2790_v8  ;;  %v2791_v47 = vpop.f32.mrf.mxu3  ;;  %v2804_v30 = vpop.f32.mrf.mxu2 }
 0x1a1   :  { %v7196_v24 = vld [vmem:[#allocation2 + $0xb74] sm:$0xf0]  ;;  %v4964_v26 = vor.u32 %v6920_v11, %v4961_v13  ;;  %v5313_v8 = vld [vmem:[#allocation2 + $0x5b8] sm:$0xf0] }
 0x1a2   :  { %v6048_v29 = vor.u32 %v7196_v24, %v6047_v21  ;;  %v5759_v32 = vld [vmem:[#allocation2 + $0x918] sm:$0xf]  ;;  %3106 = vmatpush.bf16.msra.mxu2 %v4804_v59  ;;  %3068 = vmatpush.bf16.msrb.mxu1 %v5792_v27  ;;  %v4673_v21 = vld [vmem:[#allocation2 + $0xb8] sm:$0xf0]  ;;  %v2816_v28 = vadd.f32 %v2815_v5, %v2803_v19 }
 0x1a3   :  { %v7124_v33 = vld [vmem:[#allocation2 + $0x934] sm:$0xf0]  ;;  %v5569_v11 = vld [vmem:[#allocation2 + $0x7b8] sm:$0xf0] }
 0x1a4   :  { %v6015_v36 = vld [vmem:[#allocation2 + $0xb18] sm:$0xf]  ;;  %v5760_v45 = vor.u32 %v7124_v33, %v5759_v32  ;;  %3081 = vmatpush.bf16.msrb.mxu3 %v6048_v29  ;;  %3119 = vmatpush.bf16.msrb.mxu0 %v5060_v35  ;;  %v6912_v29 = vld [vmem:[#allocation2 + $0x29c] sm:$0xf]  ;;  %v4676_v32 = vor.u32 %v6848_v18, %v4673_v21 }
 0x1a5   :  { %v7188_v37 = vld [vmem:[#allocation2 + $0xb34] sm:$0xf0]  ;;  %v6840_v35 = vld [vmem:[#allocation2 + $0x5c] sm:$0xf] }
 0x1a6   :  { %v6016_v14 = vor.u32 %v7188_v37, %v6015_v36  ;;  %v5727_v49 = vld [vmem:[#allocation2 + $0x8d8] sm:$0xf]  ;;  %3107 = vmatpush.bf16.msra.mxu2 %v4772_v44  ;;  %3069 = vmatpush.bf16.msrb.mxu1 %v5760_v45  ;;  %v4641_v36 = vld [vmem:[#allocation2 + $0x78] sm:$0xf0]  ;;  %v4932_v44 = vor.u32 %v6912_v29, %v4929_v31 }
 0x1a7   :  { %v7116_v23 = vld [vmem:[#allocation2 + $0x8f4] sm:$0xf0]  ;;  %v7016_v45 = vld [vmem:[#allocation2 + $0x5dc] sm:$0xf]  ;;  %v4644_v55 = vor.u32 %v6840_v35, %v4641_v36 }
 0x1a8   :  { %v5983_v51 = vld [vmem:[#allocation2 + $0xad8] sm:$0xf]  ;;  %v5728_v58 = vor.u32 %v7116_v23, %v5727_v49  ;;  %3082 = vmatpush.bf16.msrb.mxu3 %v6016_v14  ;;  %3120 = vmatpush.bf16.msrb.mxu0 %v5028_v50  ;;  %v7080_v14 = vld [vmem:[#allocation2 + $0x7dc] sm:$0xf]  ;;  %v2817_v49 = vpop.f32.mrf.mxu0  ;;  %v2828_v23 = vpop.f32.mrf.mxu1  ;;  %v5348_v62 = vor.u32 %v7016_v45, %v5345_v46 }
 0x1a9   :  { %v7180_v52 = vld [vmem:[#allocation2 + $0xaf4] sm:$0xf0]  ;;  %v5601_v50 = vld [vmem:[#allocation2 + $0x7f8] sm:$0xf0]  ;;  %v7650_v54 = vadd.f32 %v2828_v23, %v2816_v28 }
 0x1aa   :  { %v5984_v61 = vor.u32 %v7180_v52, %v5983_v51  ;;  %v5695_v63 = vld [vmem:[#allocation2 + $0x898] sm:$0xf]  ;;  %3108 = vmatpush.bf16.msra.mxu2 %v4740_v56  ;;  %3070 = vmatpush.bf16.msrb.mxu1 %v5728_v58  ;;  %v6904_v51 = vld [vmem:[#allocation2 + $0x25c] sm:$0xf]  ;;  %v5604_v5 = vor.u32 %v7080_v14, %v5601_v50 }
 0x1ab   :  { %v7108_v0 = vld [vmem:[#allocation2 + $0x8b4] sm:$0xf0]  ;;  %6155 = vmatmul.msk.bf16.vlgmr.msra.gmra.mxu0 %vm2464_vm0, %v7562_v48  ;;  %v4897_v52 = vld [vmem:[#allocation2 + $0x278] sm:$0xf0] }
 0x1ac   :  { %v5951_v6 = vld [vmem:[#allocation2 + $0xa98] sm:$0xf]  ;;  %v5696_v17 = vor.u32 %v7108_v0, %v5695_v63  ;;  %3083 = vmatpush.bf16.msrb.mxu3 %v5984_v61  ;;  %3121 = vmatpush.bf16.msrb.mxu0 %v4996_v4  ;;  %v6832_v58 = vld [vmem:[#allocation2 + $0x1c] sm:$0xf]  ;;  %v3197_v4 = vmax.f32 %v7617_v41, %v7650_v54 }
 0x1ad   :  { %v7172_v7 = vld [vmem:[#allocation2 + $0xab4] sm:$0xf0]  ;;  %v4609_v63 = vld [vmem:[#allocation2 + $0x38] sm:$0xf0] }
 0x1ae   :  { %v5952_v20 = vor.u32 %v7172_v7, %v5951_v6  ;;  %v5663_v24 = vld [vmem:[#allocation2 + $0x858] sm:$0xf]  ;;  %3109 = vmatpush.bf16.msra.mxu2 %v4708_v16  ;;  %3071 = vmatpush.bf16.msrb.mxu1 %v5696_v17  ;;  %v7144_v0 = vld [vmem:[#allocation2 + $0x9dc] sm:$0xf]  ;;  %v4900_v6 = vor.u32 %v6904_v51, %v4897_v52  ;;  %v4612_v16 = vor.u32 %v6832_v58, %v4609_v63 }
 0x1af   :  { %v7100_v25 = vld [vmem:[#allocation2 + $0x874] sm:$0xf0]  ;;  %v7008_v7 = vld [vmem:[#allocation2 + $0x59c] sm:$0xf]  ;;  %v5860_v19 = vor.u32 %v7144_v0, %v5857_v2 }
 0x1b0   :  { %v5919_v59 = vld [vmem:[#allocation2 + $0xa58] sm:$0xf]  ;;  %v5664_v33 = vor.u32 %v7100_v25, %v5663_v24  ;;  %3084 = vmatpush.bf16.msrb.mxu3 %v5952_v20  ;;  %3122 = vmatpush.bf16.msrb.mxu0 %v4964_v26  ;;  %v6896_v13 = vld [vmem:[#allocation2 + $0x21c] sm:$0xf]  ;;  %v5316_v20 = vor.u32 %v7008_v7, %v5313_v8  ;;  %v5572_v24 = vor.u32 %v7072_v10, %v5569_v11 }
 0x1b1   :  { %v7164_v27 = vld [vmem:[#allocation2 + $0xa74] sm:$0xf0]  ;;  %v4865_v15 = vld [vmem:[#allocation2 + $0x238] sm:$0xf0] }
 0x1b2   :  { %v5631_v37 = vld [vmem:[#allocation2 + $0x818] sm:$0xf]  ;;  %v5920_v38 = vor.u32 %v7164_v27, %v5919_v59  ;;  %3110 = vmatpush.bf16.msra.mxu2 %v4676_v32  ;;  %3072 = vmatpush.bf16.msrb.mxu1 %v5664_v33  ;;  %v7208_v17 = vld [vmem:[#allocation2 + $0xbdc] sm:$0xf]  ;;  %v4868_v25 = vor.u32 %v6896_v13, %v4865_v15  ;;  %v2830_v32 = vpop.f32.mrf.mxu1 }
 0x1b3   :  { %v7092_v40 = vld [vmem:[#allocation2 + $0x834] sm:$0xf0]  ;;  %v6113_v18 = vld [vmem:[#allocation2 + $0xbf8] sm:$0xf0] }
 0x1b4   :  { %v5887_v42 = vld [vmem:[#allocation2 + $0xa18] sm:$0xf]  ;;  %v5632_v56 = vor.u32 %v7092_v40, %v5631_v37  ;;  %3085 = vmatpush.bf16.msrb.mxu3 %v5920_v38  ;;  %3123 = vmatpush.bf16.msrb.mxu0 %v4932_v44  ;;  %v7136_v21 = vld [vmem:[#allocation2 + $0x99c] sm:$0xf]  ;;  %v6116_v28 = vor.u32 %v7208_v17, %v6113_v18  ;;  %v2880_v17 = vpop.f32.mrf.mxu0  ;;  %v2841_v18 = vpop.f32.mrf.mxu3 }
 0x1b5   :  { %v7156_v1 = vld [vmem:[#allocation2 + $0xa34] sm:$0xf0]  ;;  %v5825_v26 = vld [vmem:[#allocation2 + $0x9b8] sm:$0xf0] }
 0x1b6   :  { %v5888_v61 = vor.u32 %v7156_v1, %v5887_v42  ;;  %3111 = vmatpush.bf16.msra.mxu2 %v4644_v55  ;;  %3073 = vmatpush.bf16.msrb.mxu1 %v5632_v56  ;;  %v7000_v59 = vld [vmem:[#allocation2 + $0x55c] sm:$0xf]  ;;  %v5828_v36 = vor.u32 %v7136_v21, %v5825_v26 }
 0x1b7   :  { %v5281_v27 = vld [vmem:[#allocation2 + $0x578] sm:$0xf0] }
 0x1b8   :  { %3086 = vmatpush.bf16.msrb.mxu3 %v5888_v61  ;;  %3124 = vmatpush.bf16.msrb.mxu0 %v4900_v6  ;;  %v7064_v29 = vld [vmem:[#allocation2 + $0x75c] sm:$0xf]  ;;  %v5284_v37 = vor.u32 %v7000_v59, %v5281_v27  ;;  %v468_v6 = vperm.slane %v7591_v3, 4  ;;  %v2867_v59 = vpop.f32.mrf.mxu2 }
 0x1b9   :  { %3074 = vmatmul.bf16.vlgmr.msrb.gmra.mxu1 %v7569_v34  ;;  %v5537_v31 = vld [vmem:[#allocation2 + $0x778] sm:$0xf0] }
 0x1ba   :  { %3131 = vmatpush.bf16.msra.mxu1 %v5348_v62  ;;  %3112 = vmatpush.bf16.msra.mxu2 %v4612_v16  ;;  %v7200_v33 = vld [vmem:[#allocation2 + $0xb9c] sm:$0xf]  ;;  %v5540_v40 = vor.u32 %v7064_v29, %v5537_v31  ;;  %v2854_v63 = vpop.f32.mrf.mxu1  ;;  %v2842_v21 = vadd.f32 %v2841_v18, %v468_v6 }
 0x1bb   :  { %3087 = vmatmul.bf16.vlgmr.msrb.gmra.mxu3 %v7571_v39  ;;  %v6081_v35 = vld [vmem:[#allocation2 + $0xbb8] sm:$0xf0] }
 0x1bc   :  { %3144 = vmatpush.bf16.msra.mxu3 %v5604_v5  ;;  %v7128_v38 = vld [vmem:[#allocation2 + $0x95c] sm:$0xf]  ;;  %3125 = vmatpush.bf16.msrb.mxu0 %v4868_v25  ;;  %v6084_v45 = vor.u32 %v7200_v33, %v6081_v35  ;;  %v2855_v32 = vadd.f32 %v2854_v63, %v2842_v21 }
 0x1bd   :  { %v5793_v42 = vld [vmem:[#allocation2 + $0x978] sm:$0xf0]  ;;  %3113 = vmatmul.bf16.vlgmr.msra.gmra.mxu2 %v7549_v57 }
 0x1be   :  { %3157 = vmatpush.bf16.msrb.mxu2 %v5860_v19  ;;  %3132 = vmatpush.bf16.msra.mxu1 %v5316_v20  ;;  %v6992_v1 = vld [vmem:[#allocation2 + $0x51c] sm:$0xf]  ;;  %v5796_v23 = vor.u32 %v7128_v38, %v5793_v42  ;;  %v2868_v42 = vadd.f32 %v2867_v59, %v2855_v32  ;;  %v7249_v32 = vld [vmem:[#allocation5 + $0xe4] sm:$0xf] }
 0x1bf   :  { %v5249_v44 = vld [vmem:[#allocation2 + $0x538] sm:$0xf0]  ;;  %3126 = vmatmul.bf16.vlgmr.msrb.gmra.mxu0 %v7555_v9 }
 0x1c0   :  { %3145 = vmatpush.bf16.msra.mxu3 %v5572_v24  ;;  %3170 = vmatpush.bf16.msra.mxu0 %v6116_v28  ;;  %v7056_v46 = vld [vmem:[#allocation2 + $0x71c] sm:$0xf]  ;;  %v5252_v50 = vor.u32 %v6992_v1, %v5249_v44 }
 0x1c1   :  { %v5505_v14 = vld [vmem:[#allocation2 + $0x738] sm:$0xf0] }
 0x1c2   :  { %v7192_v47 = vld [vmem:[#allocation2 + $0xb5c] sm:$0xf]  ;;  %3158 = vmatpush.bf16.msrb.mxu2 %v5828_v36  ;;  %3133 = vmatpush.bf16.msra.mxu1 %v5284_v37  ;;  %v5508_v52 = vor.u32 %v7056_v46, %v5505_v14  ;;  %v2856_v37 = vpop.f32.mrf.mxu1 }
 0x1c3   :  { %v6049_v49 = vld [vmem:[#allocation2 + $0xb78] sm:$0xf0]  ;;  %v7247_v37 = vld [vmem:[#allocation5 + $0xcc] sm:$0xf0] }
 0x1c4   :  { %v7120_v51 = vld [vmem:[#allocation2 + $0x91c] sm:$0xf]  ;;  %3146 = vmatpush.bf16.msra.mxu3 %v5540_v40  ;;  %3171 = vmatpush.bf16.msra.mxu0 %v6084_v45  ;;  %v6052_v30 = vor.u32 %v7192_v47, %v6049_v49 }
 0x1c5   :  { %v5761_v55 = vld [vmem:[#allocation2 + $0x938] sm:$0xf0] }
 0x1c6   :  { %v6984_v56 = vld [vmem:[#allocation2 + $0x4dc] sm:$0xf]  ;;  %3159 = vmatpush.bf16.msrb.mxu2 %v5796_v23  ;;  %3134 = vmatpush.bf16.msra.mxu1 %v5252_v50  ;;  %v5764_v2 = vor.u32 %v7120_v51, %v5761_v55  ;;  %v2881_v50 = vadd.f32 %v2880_v17, %v2868_v42  ;;  %v7243_v42 = vld [vmem:[#allocation5 + $0xac] sm:$0xf0] }
 0x1c7   :  { %v5217_v58 = vld [vmem:[#allocation2 + $0x4f8] sm:$0xf0] }
 0x1c8   :  { %v7048_v61 = vld [vmem:[#allocation2 + $0x6dc] sm:$0xf]  ;;  %v5220_v5 = vor.u32 %v6984_v56, %v5217_v58  ;;  %3147 = vmatpush.bf16.msra.mxu3 %v5508_v52  ;;  %3172 = vmatpush.bf16.msra.mxu0 %v6052_v30  ;;  %v2882_v58 = vpop.f32.mrf.mxu0 }
 0x1c9   :  { %v5473_v62 = vld [vmem:[#allocation2 + $0x6f8] sm:$0xf0] }
 0x1ca   :  { %v7184_v57 = vld [vmem:[#allocation2 + $0xb1c] sm:$0xf]  ;;  %v5476_v8 = vor.u32 %v7048_v61, %v5473_v62  ;;  %3160 = vmatpush.bf16.msrb.mxu2 %v5764_v2  ;;  %3135 = vmatpush.bf16.msra.mxu1 %v5220_v5  ;;  %v2843_v62 = vpop.f32.mrf.mxu3  ;;  %v2906_v18 = vpop.f32.mrf.mxu1 }
 0x1cb   :  { %v6017_v0 = vld [vmem:[#allocation2 + $0xb38] sm:$0xf0] }
 0x1cc   :  { %v7112_v7 = vld [vmem:[#allocation2 + $0x8dc] sm:$0xf]  ;;  %v6020_v9 = vor.u32 %v7184_v57, %v6017_v0  ;;  %3148 = vmatpush.bf16.msra.mxu3 %v5476_v8  ;;  %v2869_v0 = vpop.f32.mrf.mxu2 }
 0x1cd   :  { %v5729_v10 = vld [vmem:[#allocation2 + $0x8f8] sm:$0xf0] }
 0x1ce   :  { %v6976_v11 = vld [vmem:[#allocation2 + $0x49c] sm:$0xf]  ;;  %v5732_v24 = vor.u32 %v7112_v7, %v5729_v10  ;;  %3173 = vmatpush.bf16.msra.mxu0 %v6020_v9 }
 0x1cf   :  { %v5185_v13 = vld [vmem:[#allocation2 + $0x4b8] sm:$0xf0] }
 0x1d0   :  { %v7040_v15 = vld [vmem:[#allocation2 + $0x69c] sm:$0xf]  ;;  %v5188_v25 = vor.u32 %v6976_v11, %v5185_v13  ;;  %3161 = vmatpush.bf16.msrb.mxu2 %v5732_v24  ;;  %v2932_v21 = vpop.f32.mrf.mxu0 }
 0x1d1   :  { %v5441_v16 = vld [vmem:[#allocation2 + $0x6b8] sm:$0xf0] }
 0x1d2   :  { %v7176_v19 = vld [vmem:[#allocation2 + $0xadc] sm:$0xf]  ;;  %v5444_v27 = vor.u32 %v7040_v15, %v5441_v16  ;;  %3136 = vmatpush.bf16.msra.mxu1 %v5188_v25  ;;  %v2893_v17 = vpop.f32.mrf.mxu3 }
 0x1d3   :  { %v5985_v20 = vld [vmem:[#allocation2 + $0xaf8] sm:$0xf0] }
 0x1d4   :  { %v7104_v26 = vld [vmem:[#allocation2 + $0x89c] sm:$0xf]  ;;  %v5988_v33 = vor.u32 %v7176_v19, %v5985_v20  ;;  %3149 = vmatpush.bf16.msra.mxu3 %v5444_v27  ;;  %v2919_v15 = vpop.f32.mrf.mxu2  ;;  %v469_v19 = vperm.slane %v7591_v3, 5  ;;  %v2894_v20 = vadd.f32 %v2893_v17, %v2881_v50 }
 0x1d5   :  { %v5697_v28 = vld [vmem:[#allocation2 + $0x8b8] sm:$0xf0] }
 0x1d6   :  { %v6968_v29 = vld [vmem:[#allocation2 + $0x45c] sm:$0xf]  ;;  %v5700_v1 = vor.u32 %v7104_v26, %v5697_v28  ;;  %3174 = vmatpush.bf16.msra.mxu0 %v5988_v33  ;;  %v2907_v24 = vadd.f32 %v2906_v18, %v2894_v20  ;;  %v2908_v26 = vpop.f32.mrf.mxu1  ;;  %v7227_v20 = vld [vmem:[#allocation5 + $0x2c] sm:$0xf0] }
 0x1d7   :  { %v5153_v31 = vld [vmem:[#allocation2 + $0x478] sm:$0xf0]  ;;  %v6159_v26 = vld [vmem:[#allocation5] sm:$0xf] }
 0x1d8   :  { %v7032_v35 = vld [vmem:[#allocation2 + $0x65c] sm:$0xf]  ;;  %v5156_v44 = vor.u32 %v6968_v29, %v5153_v31  ;;  %3162 = vmatpush.bf16.msrb.mxu2 %v5700_v1  ;;  %v2934_v27 = vpop.f32.mrf.mxu0  ;;  %v6271_v29 = vld [vmem:[#allocation5 + $0xe0] sm:$0xf]  ;;  %v7251_v31 = vld [vmem:[#allocation5 + $0xec] sm:$0xf0] }
 0x1d9   :  { %v5409_v36 = vld [vmem:[#allocation2 + $0x678] sm:$0xf0]  ;;  %v6272_v33 = vor.u32 %v7251_v31, %v6271_v29  ;;  %v7241_v1 = vld [vmem:[#allocation5 + $0xa4] sm:$0xf]  ;;  %v6161_v29 = vld [vmem:[#allocation5 + $0x10] sm:$0xf0] }
 0x1da   :  { %v7168_v38 = vld [vmem:[#allocation2 + $0xa9c] sm:$0xf]  ;;  %v5412_v14 = vor.u32 %v7032_v35, %v5409_v36  ;;  %3137 = vmatpush.bf16.msra.mxu1 %v5156_v44  ;;  %v6273_v35 = vld [vmem:[#allocation5 + $0xf0] sm:$0xf0] }
 0x1db   :  { %v5953_v40 = vld [vmem:[#allocation2 + $0xab8] sm:$0xf0]  ;;  %v6276_v36 = vor.u32 %v7249_v32, %v6273_v35  ;;  %v6241_v44 = vld [vmem:[#allocation5 + $0xb0] sm:$0xf0]  ;;  %v6279_v35 = vld [vmem:[#allocation5 + $0xe8] sm:$0xf] }
 0x1dc   :  { %v7096_v45 = vld [vmem:[#allocation2 + $0x85c] sm:$0xf]  ;;  %v5956_v51 = vor.u32 %v7168_v38, %v5953_v40  ;;  %3150 = vmatpush.bf16.msra.mxu3 %v5412_v14  ;;  %v2921_v16 = vpop.f32.mrf.mxu2  ;;  %v7245_v38 = vld [vmem:[#allocation5 + $0xc4] sm:$0xf] }
 0x1dd   :  { %v5665_v46 = vld [vmem:[#allocation2 + $0x878] sm:$0xf0]  ;;  %v6260_v40 = vor.u32 %v7245_v38, %v6257_v12  ;;  %v6193_v16 = vld [vmem:[#allocation5 + $0x50] sm:$0xf0] }
 0x1de   :  { %v6960_v47 = vld [vmem:[#allocation2 + $0x41c] sm:$0xf]  ;;  %v5668_v63 = vor.u32 %v7096_v45, %v5665_v46  ;;  %3175 = vmatpush.bf16.msra.mxu0 %v5956_v51  ;;  %v6223_v51 = vld [vmem:[#allocation5 + $0x80] sm:$0xf] }
 0x1df   :  { %v5121_v49 = vld [vmem:[#allocation2 + $0x438] sm:$0xf0] }
 0x1e0   :  { %v7024_v23 = vld [vmem:[#allocation2 + $0x61c] sm:$0xf]  ;;  %v5124_v57 = vor.u32 %v6960_v47, %v5121_v49  ;;  %3163 = vmatpush.bf16.msrb.mxu2 %v5668_v63  ;;  %v6244_v47 = vor.u32 %v7241_v1, %v6241_v44 }
 0x1e1   :  { %v5377_v52 = vld [vmem:[#allocation2 + $0x638] sm:$0xf0] }
 0x1e2   :  { %v7216_v55 = vld [vmem:[#allocation2 + $0xc1c] sm:$0xf]  ;;  %v5380_v2 = vor.u32 %v7024_v23, %v5377_v52  ;;  %3138 = vmatpush.bf16.msra.mxu1 %v5124_v57  ;;  %v7239_v52 = vld [vmem:[#allocation5 + $0x8c] sm:$0xf0] }
 0x1e3   :  { %v6145_v56 = vld [vmem:[#allocation2 + $0xc38] sm:$0xf0]  ;;  %v6224_v58 = vor.u32 %v7239_v52, %v6223_v51 }
 0x1e4   :  { %v7160_v30 = vld [vmem:[#allocation2 + $0xa5c] sm:$0xf]  ;;  %v6148_v7 = vor.u32 %v7216_v55, %v6145_v56  ;;  %3151 = vmatpush.bf16.msra.mxu3 %v5380_v2  ;;  %v7237_v55 = vld [vmem:[#allocation5 + $0x84] sm:$0xf]  ;;  %v6207_v2 = vld [vmem:[#allocation5 + $0x60] sm:$0xf] }
 0x1e5   :  { %v5921_v61 = vld [vmem:[#allocation2 + $0xa78] sm:$0xf0]  ;;  %3139 = vmatmul.bf16.vlgmr.msra.gmra.mxu1 %v7547_v53  ;;  %v2933_v53 = vadd.f32 %v2932_v21, %v469_v19  ;;  %v6175_v19 = vld [vmem:[#allocation5 + $0x20] sm:$0xf]  ;;  %v7225_v21 = vld [vmem:[#allocation5 + $0x24] sm:$0xf] }
 0x1e6   :  { %v7088_v5 = vld [vmem:[#allocation2 + $0x81c] sm:$0xf]  ;;  %v5924_v8 = vor.u32 %v7160_v30, %v5921_v61  ;;  %3190 = vmatpush.bf16.msrb.mxu1 %v6148_v7  ;;  %v6225_v30 = vld [vmem:[#allocation5 + $0x90] sm:$0xf0] }
 0x1e7   :  { %v5633_v6 = vld [vmem:[#allocation2 + $0x838] sm:$0xf0]  ;;  %3152 = vmatmul.bf16.vlgmr.msra.gmra.mxu3 %v7551_v60  ;;  %v2920_v60 = vadd.f32 %v2919_v15, %v2907_v24  ;;  %v6228_v62 = vor.u32 %v7237_v55, %v6225_v30  ;;  %v7229_v15 = vld [vmem:[#allocation5 + $0x44] sm:$0xf]  ;;  %v6177_v24 = vld [vmem:[#allocation5 + $0x30] sm:$0xf0] }
 0x1e8   :  { %v7152_v10 = vld [vmem:[#allocation2 + $0xa1c] sm:$0xf]  ;;  %v5636_v13 = vor.u32 %v7088_v5, %v5633_v6  ;;  %3176 = vmatpush.bf16.msra.mxu0 %v5924_v8  ;;  %3599 = vmatpush.bf16.msrb.mxu3 %v6272_v33  ;;  %v7235_v5 = vld [vmem:[#allocation5 + $0x6c] sm:$0xf0]  ;;  %v7233_v6 = vld [vmem:[#allocation5 + $0x64] sm:$0xf]  ;;  %v6196_v18 = vor.u32 %v7229_v15, %v6193_v16 }
 0x1e9   :  { %v5889_v11 = vld [vmem:[#allocation2 + $0xa38] sm:$0xf0]  ;;  %v7669_v25 = vmax.f32 %v3196_v22, %v2920_v60  ;;  %v6239_v22 = vld [vmem:[#allocation5 + $0xa0] sm:$0xf]  ;;  %v6208_v8 = vor.u32 %v7235_v5, %v6207_v2  ;;  %v6176_v60 = vor.u32 %v7227_v20, %v6175_v19  ;;  %v7242_v55 = vld [vmem:[#allocation5 + $0xac] sm:$0xf] }
 0x1ea   :  { %v5892_v9 = vor.u32 %v7152_v10, %v5889_v11  ;;  %3164 = vmatpush.bf16.msrb.mxu2 %v5636_v13  ;;  %v6240_v45 = vor.u32 %v7243_v42, %v6239_v22  ;;  %v6209_v10 = vld [vmem:[#allocation5 + $0x70] sm:$0xf0]  ;;  %v6191_v11 = vld [vmem:[#allocation5 + $0x40] sm:$0xf]  ;;  %v7231_v13 = vld [vmem:[#allocation5 + $0x4c] sm:$0xf0] }
 0x1eb   :  { %v6192_v17 = vor.u32 %v7231_v13, %v6191_v11  ;;  %v6281_v38 = vld [vmem:[#allocation5 + $0xf8] sm:$0xf0]  ;;  %v6263_v22 = vld [vmem:[#allocation5 + $0xc8] sm:$0xf]  ;;  %v7246_v42 = vld [vmem:[#allocation5 + $0xcc] sm:$0xf] }
 0x1ec   :  { %3177 = vmatpush.bf16.msra.mxu0 %v5892_v9  ;;  %v6212_v9 = vor.u32 %v7233_v6, %v6209_v10  ;;  %v6265_v54 = vld [vmem:[#allocation5 + $0xd8] sm:$0xf0]  ;;  %v6383_v30 = vld [vmem:[#allocation5 + $0x1c0] sm:$0xf]  ;;  %v6231_v2 = vld [vmem:[#allocation5 + $0x88] sm:$0xf] }
 0x1ed   :  { %3165 = vmatmul.bf16.vlgmr.msrb.gmra.mxu2 %v7569_v34  ;;  %v2945_v34 = vpop.f32.mrf.mxu2  ;;  %v6268_v1 = vor.u32 %v7246_v42, %v6265_v54  ;;  %v7240_v5 = vld [vmem:[#allocation5 + $0x94] sm:$0xf0]  ;;  %v6233_v10 = vld [vmem:[#allocation5 + $0x98] sm:$0xf0]  ;;  %v6367_v16 = vld [vmem:[#allocation5 + $0x1a0] sm:$0xf] }
 0x1ee   :  { %v2946_v59 = vadd.f32 %v2945_v34, %v2933_v53  ;;  %3625 = vmatpush.bf16.msra.mxu2 %v6276_v36  ;;  %v7252_v36 = vld [vmem:[#allocation5 + $0xf4] sm:$0xf0]  ;;  %v6369_v20 = vld [vmem:[#allocation5 + $0x1b0] sm:$0xf0]  ;;  %v7265_v42 = vld [vmem:[#allocation5 + $0x164] sm:$0xf] }
 0x1ef   :  { %3178 = vmatmul.bf16.vlgmr.msra.gmra.mxu0 %v7571_v39  ;;  %v2895_v39 = vpop.f32.mrf.mxu3 }
 0x1f0   :  { %v6180_v39 = vor.u32 %v7225_v21, %v6177_v24  ;;  %v6215_v21 = vld [vmem:[#allocation5 + $0x68] sm:$0xf]  ;;  %v7236_v24 = vld [vmem:[#allocation5 + $0x74] sm:$0xf0] }
 0x1f2   :  { %3626 = vmatpush.bf16.msra.mxu2 %v6260_v40  ;;  %v7248_v40 = vld [vmem:[#allocation5 + $0xd4] sm:$0xf0] }
 0x1f3   :  { %v6264_v41 = vor.u32 %v7248_v40, %v6263_v22  ;;  %v7267_v40 = vld [vmem:[#allocation5 + $0x16c] sm:$0xf0] }
 0x1f4   :  { %v2971_v14 = vpop.f32.mrf.mxu1 }
 0x1f5   :  { %6156 = vmatmul.msk.bf16.vlgmr.msrb.gmra.mxu1 %vm2464_vm0, %v7562_v48  ;;  %v2947_v28 = vpop.f32.mrf.mxu2  ;;  %v6255_v48 = vld [vmem:[#allocation5 + $0xc0] sm:$0xf] }
 0x1f6   :  { %v6256_v43 = vor.u32 %v7247_v37, %v6255_v48  ;;  %v2984_v23 = vpop.f32.mrf.mxu0  ;;  %3627 = vmatpush.bf16.msra.mxu2 %v6244_v47  ;;  %v7221_v28 = vld [vmem:[#allocation5 + $0x4] sm:$0xf]  ;;  %v7250_v48 = vld [vmem:[#allocation5 + $0xec] sm:$0xf]  ;;  %v6280_v37 = vor.u32 %v7252_v36, %v6279_v35  ;;  %v6199_v35 = vld [vmem:[#allocation5 + $0x48] sm:$0xf] }
 0x1f7   :  { %v2958_v46 = vpop.f32.mrf.mxu3  ;;  %v6164_v33 = vor.u32 %v7221_v28, %v6161_v29  ;;  %v7271_v28 = vld [vmem:[#allocation5 + $0x18c] sm:$0xf0]  ;;  %v7269_v29 = vld [vmem:[#allocation5 + $0x184] sm:$0xf]  ;;  %v7232_v36 = vld [vmem:[#allocation5 + $0x54] sm:$0xf0] }
 0x1f8   :  { %3600 = vmatpush.bf16.msrb.mxu3 %v6256_v43  ;;  %v2959_v49 = vadd.f32 %v2958_v46, %v2946_v59  ;;  %v7223_v59 = vld [vmem:[#allocation5 + $0xc] sm:$0xf0]  ;;  %v6284_v43 = vor.u32 %v7250_v48, %v6281_v38  ;;  %v7230_v38 = vld [vmem:[#allocation5 + $0x4c] sm:$0xf] }
 0x1f9   :  { %v6160_v32 = vor.u32 %v7223_v59, %v6159_v26  ;;  %v7283_v46 = vld [vmem:[#allocation5 + $0x1ec] sm:$0xf0]  ;;  %v6217_v26 = vld [vmem:[#allocation5 + $0x78] sm:$0xf0] }
 0x1fa   :  { %v2972_v50 = vadd.f32 %v2971_v14, %v2959_v49  ;;  %3628 = vmatpush.bf16.msra.mxu2 %v6228_v62  ;;  %v7281_v14 = vld [vmem:[#allocation5 + $0x1e4] sm:$0xf]  ;;  %v6401_v49 = vld [vmem:[#allocation5 + $0x1f0] sm:$0xf0] }
 0x1fb   :  { %v6404_v51 = vor.u32 %v7281_v14, %v6401_v49  ;;  %v7277_v62 = vld [vmem:[#allocation5 + $0x1c4] sm:$0xf]  ;;  %v7226_v14 = vld [vmem:[#allocation5 + $0x2c] sm:$0xf] }
 0x1fc   :  { %3601 = vmatpush.bf16.msrb.mxu3 %v6240_v45  ;;  %v2985_v56 = vadd.f32 %v2984_v23, %v2972_v50  ;;  %v2973_v0 = vpop.f32.mrf.mxu1  ;;  %v6399_v45 = vld [vmem:[#allocation5 + $0x1e0] sm:$0xf]  ;;  %v6247_v23 = vld [vmem:[#allocation5 + $0xa8] sm:$0xf]  ;;  %v7244_v50 = vld [vmem:[#allocation5 + $0xb4] sm:$0xf0] }
 0x1fd   :  { %v6400_v47 = vor.u32 %v7283_v46, %v6399_v45  ;;  %v6248_v52 = vor.u32 %v7244_v50, %v6247_v23  ;;  %3638 = vmatpush.bf16.msrb.mxu0 %v6404_v51  ;;  %v6385_v0 = vld [vmem:[#allocation5 + $0x1d0] sm:$0xf0]  ;;  %v6183_v45 = vld [vmem:[#allocation5 + $0x28] sm:$0xf]  ;;  %v7228_v46 = vld [vmem:[#allocation5 + $0x34] sm:$0xf0] }
 0x1fe   :  { %v2997_v61 = vpop.f32.mrf.mxu2  ;;  %v2986_v7 = vpop.f32.mrf.mxu0  ;;  %3629 = vmatpush.bf16.msra.mxu2 %v6212_v9  ;;  %v6388_v6 = vor.u32 %v7277_v62, %v6385_v0  ;;  %v6184_v50 = vor.u32 %v7228_v46, %v6183_v45  ;;  %v6185_v51 = vld [vmem:[#allocation5 + $0x38] sm:$0xf0] }
 0x1ff   :  { %v2998_v63 = vadd.f32 %v2997_v61, %v2985_v56  ;;  %v2960_v57 = vpop.f32.mrf.mxu3  ;;  %v6249_v56 = vld [vmem:[#allocation5 + $0xb8] sm:$0xf0]  ;;  %3612 = vmatpush.bf16.msra.mxu1 %v6400_v47  ;;  %v7279_v61 = vld [vmem:[#allocation5 + $0x1cc] sm:$0xf0]  ;;  %v6232_v7 = vor.u32 %v7240_v5, %v6231_v2 }
 0x200   :  { %3602 = vmatpush.bf16.msrb.mxu3 %v6224_v58  ;;  %v6252_v58 = vor.u32 %v7242_v55, %v6249_v56  ;;  %v6384_v57 = vor.u32 %v7279_v61, %v6383_v30  ;;  %v7263_v55 = vld [vmem:[#allocation5 + $0x14c] sm:$0xf0]  ;;  %v6188_v56 = vor.u32 %v7226_v14, %v6185_v51  ;;  %v6321_v30 = vld [vmem:[#allocation5 + $0x150] sm:$0xf0]  ;;  %v6167_v61 = vld [vmem:[#allocation5 + $0x8] sm:$0xf] }
 0x201   :  { %3639 = vmatpush.bf16.msrb.mxu0 %v6388_v6  ;;  %v6169_v0 = vld [vmem:[#allocation5 + $0x18] sm:$0xf0] }
 0x202   :  { %3630 = vmatpush.bf16.msra.mxu2 %v6196_v18  ;;  %v7273_v18 = vld [vmem:[#allocation5 + $0x1a4] sm:$0xf]  ;;  %v6377_v14 = vld [vmem:[#allocation5 + $0x1b8] sm:$0xf0] }
 0x203   :  { %3613 = vmatpush.bf16.msra.mxu1 %v6384_v57  ;;  %v7222_v57 = vld [vmem:[#allocation5 + $0xc] sm:$0xf] }
 0x204   :  { %3603 = vmatpush.bf16.msrb.mxu3 %v6208_v8  ;;  %v7238_v8 = vld [vmem:[#allocation5 + $0x8c] sm:$0xf] }
 0x205   :  { %v6236_v13 = vor.u32 %v7238_v8, %v6233_v10 }
 0x206   :  { %v2999_v53 = vpop.f32.mrf.mxu2  ;;  %3631 = vmatpush.bf16.msra.mxu2 %v6180_v39  ;;  %v7234_v39 = vld [vmem:[#allocation5 + $0x6c] sm:$0xf] }
 0x207   :  { %v3010_v34 = vpop.f32.mrf.mxu3  ;;  %v470_v53 = vperm.slane %v7591_v3, 6  ;;  %v6220_v59 = vor.u32 %v7234_v39, %v6217_v26  ;;  %v7284_v39 = vld [vmem:[#allocation5 + $0x1f4] sm:$0xf0] }
 0x208   :  { %3604 = vmatpush.bf16.msrb.mxu3 %v6192_v17  ;;  %v3011_v27 = vadd.f32 %v3010_v34, %v2998_v63  ;;  %v7275_v17 = vld [vmem:[#allocation5 + $0x1ac] sm:$0xf0]  ;;  %v6216_v34 = vor.u32 %v7236_v24, %v6215_v21  ;;  %v6287_v21 = vld [vmem:[#allocation5 + $0x100] sm:$0xf] }
 0x209   :  { %v6368_v19 = vor.u32 %v7275_v17, %v6367_v16  ;;  %v6305_v17 = vld [vmem:[#allocation5 + $0x130] sm:$0xf0]  ;;  %v7255_v24 = vld [vmem:[#allocation5 + $0x10c] sm:$0xf0] }
 0x20a   :  { %v7674_v31 = vmax.f32 %v3197_v4, %v3011_v27  ;;  %3632 = vmatpush.bf16.msra.mxu2 %v6164_v33  ;;  %v6351_v27 = vld [vmem:[#allocation5 + $0x180] sm:$0xf]  ;;  %v6353_v33 = vld [vmem:[#allocation5 + $0x190] sm:$0xf0] }
 0x20b   :  { %3614 = vmatpush.bf16.msra.mxu1 %v6368_v19  ;;  %v6356_v48 = vor.u32 %v7269_v29, %v6353_v33  ;;  %v6409_v29 = vld [vmem:[#allocation5 + $0x1f8] sm:$0xf0] }
 0x20c   :  { %3605 = vmatpush.bf16.msrb.mxu3 %v6176_v60  ;;  %v6372_v60 = vor.u32 %v7273_v18, %v6369_v20 }
 0x20e   :  { %3677 = vmatpush.bf16.msrb.mxu2 %v6284_v43  ;;  %3640 = vmatpush.bf16.msrb.mxu0 %v6372_v60  ;;  %v6201_v43 = vld [vmem:[#allocation5 + $0x58] sm:$0xf0]  ;;  %v6289_v60 = vld [vmem:[#allocation5 + $0x110] sm:$0xf0] }
 0x20f   :  { %v3012_v12 = vpop.f32.mrf.mxu3  ;;  %v6204_v22 = vor.u32 %v7230_v38, %v6201_v43 }
 0x210   :  { %3606 = vmatpush.bf16.msrb.mxu3 %v6160_v32  ;;  %v6352_v32 = vor.u32 %v7271_v28, %v6351_v27  ;;  %v6335_v12 = vld [vmem:[#allocation5 + $0x160] sm:$0xf]  ;;  %v7282_v28 = vld [vmem:[#allocation5 + $0x1ec] sm:$0xf] }
 0x212   :  { %3678 = vmatpush.bf16.msrb.mxu2 %v6268_v1  ;;  %3615 = vmatpush.bf16.msra.mxu1 %v6352_v32  ;;  %v6336_v1 = vor.u32 %v7267_v40, %v6335_v12  ;;  %v6412_v32 = vor.u32 %v7282_v28, %v6409_v29 }
 0x213   :  { %3641 = vmatpush.bf16.msrb.mxu0 %v6356_v48  ;;  %v7280_v48 = vld [vmem:[#allocation5 + $0x1d4] sm:$0xf0] }
 0x214   :  { %3651 = vmatpush.bf16.msra.mxu3 %v6280_v37  ;;  %v7676_v4 = vpop.f32.mrf.mxu1  ;;  %v6200_v37 = vor.u32 %v7232_v36, %v6199_v35  ;;  %v6391_v36 = vld [vmem:[#allocation5 + $0x1c8] sm:$0xf] }
 0x215   :  { %v3024_v62 = vadd.f32 %v7676_v4, %v470_v53  ;;  %v7257_v4 = vld [vmem:[#allocation5 + $0x124] sm:$0xf]  ;;  %v6392_v12 = vor.u32 %v7280_v48, %v6391_v36 }
 0x216   :  { %3679 = vmatpush.bf16.msrb.mxu2 %v6252_v58  ;;  %v7261_v58 = vld [vmem:[#allocation5 + $0x144] sm:$0xf]  ;;  %3616 = vmatpush.bf16.msra.mxu1 %v6336_v1  ;;  %v6308_v20 = vor.u32 %v7257_v4, %v6305_v17  ;;  %v7274_v1 = vld [vmem:[#allocation5 + $0x1ac] sm:$0xf]  ;;  %v6311_v4 = vld [vmem:[#allocation5 + $0x128] sm:$0xf] }
 0x217   :  { %v6324_v5 = vor.u32 %v7261_v58, %v6321_v30  ;;  %v7253_v53 = vld [vmem:[#allocation5 + $0x104] sm:$0xf]  ;;  %v6361_v58 = vld [vmem:[#allocation5 + $0x198] sm:$0xf0]  ;;  %v7258_v17 = vld [vmem:[#allocation5 + $0x12c] sm:$0xf] }
 0x218   :  { %3652 = vmatpush.bf16.msra.mxu3 %v6264_v41  ;;  %v7678_v44 = vpop.f32.mrf.mxu0  ;;  %v7680_v11 = vpop.f32.mrf.mxu3  ;;  %v6337_v41 = vld [vmem:[#allocation5 + $0x170] sm:$0xf0] }
 0x219   :  { %v6340_v23 = vor.u32 %v7265_v42, %v6337_v41  ;;  %v3037_v8 = vadd.f32 %v7680_v11, %v3024_v62  ;;  %v6288_v11 = vor.u32 %v7255_v24, %v6287_v21  ;;  %v6375_v41 = vld [vmem:[#allocation5 + $0x1a8] sm:$0xf]  ;;  %v7268_v62 = vld [vmem:[#allocation5 + $0x174] sm:$0xf0] }
 0x21a   :  { %3680 = vmatpush.bf16.msrb.mxu2 %v6236_v13  ;;  %v6303_v13 = vld [vmem:[#allocation5 + $0x120] sm:$0xf]  ;;  %v6295_v24 = vld [vmem:[#allocation5 + $0x108] sm:$0xf] }
 0x21b   :  { %3642 = vmatpush.bf16.msrb.mxu0 %v6340_v23  ;;  %v3050_v18 = vadd.f32 %v7678_v44, %v3037_v8 }
 0x21c   :  { %3653 = vmatpush.bf16.msra.mxu3 %v6248_v52  ;;  %v3025_v63 = vpop.f32.mrf.mxu1  ;;  %v6319_v52 = vld [vmem:[#allocation5 + $0x140] sm:$0xf] }
 0x21d   :  { %v7224_v63 = vld [vmem:[#allocation5 + $0x14] sm:$0xf0]  ;;  %v6320_v2 = vor.u32 %v7263_v55, %v6319_v52  ;;  %v6359_v52 = vld [vmem:[#allocation5 + $0x188] sm:$0xf] }
 0x21e   :  { %3681 = vmatpush.bf16.msrb.mxu2 %v6220_v59  ;;  %v6168_v6 = vor.u32 %v7224_v63, %v6167_v61  ;;  %v6292_v59 = vor.u32 %v7253_v53, %v6289_v60  ;;  %v7272_v55 = vld [vmem:[#allocation5 + $0x194] sm:$0xf0]  ;;  %v7266_v63 = vld [vmem:[#allocation5 + $0x16c] sm:$0xf]  ;;  %v6297_v60 = vld [vmem:[#allocation5 + $0x118] sm:$0xf0] }
 0x21f   :  { %3617 = vmatpush.bf16.msra.mxu1 %v6320_v2  ;;  %3643 = vmatpush.bf16.msrb.mxu0 %v6324_v5  ;;  %v6327_v5 = vld [vmem:[#allocation5 + $0x148] sm:$0xf]  ;;  %v7256_v53 = vld [vmem:[#allocation5 + $0x114] sm:$0xf0] }
 0x220   :  { %v3051_v9 = vpop.f32.mrf.mxu0  ;;  %v7682_v15 = vpop.f32.mrf.mxu2  ;;  %3654 = vmatpush.bf16.msra.mxu3 %v6232_v7  ;;  %v6172_v7 = vor.u32 %v7222_v57, %v6169_v0  ;;  %v6345_v0 = vld [vmem:[#allocation5 + $0x178] sm:$0xf0] }
 0x221   :  { %v3038_v54 = vpop.f32.mrf.mxu3  ;;  %v7259_v9 = vld [vmem:[#allocation5 + $0x12c] sm:$0xf0]  ;;  %v3063_v26 = vadd.f32 %v7682_v15, %v3050_v18  ;;  %v6393_v15 = vld [vmem:[#allocation5 + $0x1d8] sm:$0xf0]  ;;  %v6348_v2 = vor.u32 %v7266_v63, %v6345_v0  ;;  %v6495_v0 = vld [vmem:[#allocation5 + $0x2a0] sm:$0xf] }
 0x222   :  { %3682 = vmatpush.bf16.msrb.mxu2 %v6204_v22  ;;  %v6304_v16 = vor.u32 %v7259_v9, %v6303_v13  ;;  %v7276_v54 = vld [vmem:[#allocation5 + $0x1b4] sm:$0xf0]  ;;  %v471_v13 = vperm.slane %v7591_v3, 7  ;;  %v6313_v18 = vld [vmem:[#allocation5 + $0x138] sm:$0xf0] }
 0x223   :  { %3644 = vmatpush.bf16.msrb.mxu0 %v6308_v20  ;;  %v6376_v46 = vor.u32 %v7276_v54, %v6375_v41  ;;  %v6316_v21 = vor.u32 %v7258_v17, %v6313_v18  ;;  %v7313_v41 = vld [vmem:[#allocation5 + $0x2e4] sm:$0xf]  ;;  %v6521_v63 = vld [vmem:[#allocation5 + $0x2d8] sm:$0xf0]  ;;  %v7306_v17 = vld [vmem:[#allocation5 + $0x2ac] sm:$0xf] }
 0x224   :  { %3655 = vmatpush.bf16.msra.mxu3 %v6216_v34  ;;  %3618 = vmatpush.bf16.msra.mxu1 %v6304_v16  ;;  %v6407_v34 = vld [vmem:[#allocation5 + $0x1e8] sm:$0xf]  ;;  %v7260_v16 = vld [vmem:[#allocation5 + $0x134] sm:$0xf0]  ;;  %v6505_v18 = vld [vmem:[#allocation5 + $0x2b8] sm:$0xf0] }
 0x225   :  { %v6408_v27 = vor.u32 %v7284_v39, %v6407_v34  ;;  %v6296_v39 = vor.u32 %v7256_v53, %v6295_v24  ;;  %v7301_v24 = vld [vmem:[#allocation5 + $0x284] sm:$0xf] }
 0x226   :  { %3683 = vmatpush.bf16.msrb.mxu2 %v6188_v56  ;;  %v7270_v56 = vld [vmem:[#allocation5 + $0x18c] sm:$0xf] }
 0x227   :  { %3645 = vmatpush.bf16.msrb.mxu0 %v6292_v59  ;;  %v6364_v30 = vor.u32 %v7270_v56, %v6361_v58  ;;  %v6513_v56 = vld [vmem:[#allocation5 + $0x2d0] sm:$0xf0] }
 0x228   :  { %v7685_v47 = vpop.f32.mrf.mxu0  ;;  %v3064_v49 = vpop.f32.mrf.mxu2  ;;  %3656 = vmatpush.bf16.msra.mxu3 %v6200_v37  ;;  %3619 = vmatpush.bf16.msra.mxu1 %v6288_v11  ;;  %v7278_v37 = vld [vmem:[#allocation5 + $0x1cc] sm:$0xf] }
 0x229   :  { %v6396_v22 = vor.u32 %v7278_v37, %v6393_v15  ;;  %v6380_v49 = vor.u32 %v7274_v1, %v6377_v14  ;;  %v7254_v11 = vld [vmem:[#allocation5 + $0x10c] sm:$0xf]  ;;  %v6529_v1 = vld [vmem:[#allocation5 + $0x2f0] sm:$0xf0] }
 0x22a   :  { %3684 = vmatpush.bf16.msrb.mxu2 %v6172_v7  ;;  %v7262_v7 = vld [vmem:[#allocation5 + $0x14c] sm:$0xf]  ;;  %v6532_v14 = vor.u32 %v7313_v41, %v6529_v1  ;;  %v7293_v41 = vld [vmem:[#allocation5 + $0x244] sm:$0xf] }
 0x22b   :  { %3690 = vmatpush.bf16.msra.mxu0 %v6412_v32 }
 0x22c   :  { %3657 = vmatpush.bf16.msra.mxu3 %v6184_v50  ;;  %3664 = vmatpush.bf16.msrb.mxu1 %v6408_v27 }
 0x22f   :  { %3691 = vmatpush.bf16.msra.mxu0 %v6396_v22 }
 0x230   :  { %v3103_v10 = vpop.f32.mrf.mxu0  ;;  %3658 = vmatpush.bf16.msra.mxu3 %v6168_v6  ;;  %3665 = vmatpush.bf16.msrb.mxu1 %v6392_v12  ;;  %v7264_v6 = vld [vmem:[#allocation5 + $0x154] sm:$0xf0] }
 0x231   :  { %v6328_v8 = vor.u32 %v7264_v6, %v6327_v5  ;;  %v6329_v10 = vld [vmem:[#allocation5 + $0x158] sm:$0xf0]  ;;  %v7305_v5 = vld [vmem:[#allocation5 + $0x2a4] sm:$0xf] }
 0x232   :  { %v6332_v9 = vor.u32 %v7262_v7, %v6329_v10  ;;  %v6497_v7 = vld [vmem:[#allocation5 + $0x2b0] sm:$0xf0]  ;;  %v7308_v10 = vld [vmem:[#allocation5 + $0x2b4] sm:$0xf0] }
 0x233   :  { %3692 = vmatpush.bf16.msra.mxu0 %v6380_v49 }
 0x234   :  { %3666 = vmatpush.bf16.msrb.mxu1 %v6376_v46  ;;  %v7316_v46 = vld [vmem:[#allocation5 + $0x2f4] sm:$0xf0] }
 0x236   :  { %v3075_v19 = vpop.f32.mrf.mxu1 }
 0x237   :  { %v3076_v44 = vadd.f32 %v3075_v19, %v3063_v26  ;;  %3693 = vmatpush.bf16.msra.mxu0 %v6364_v30  ;;  %v6312_v19 = vor.u32 %v7260_v16, %v6311_v4  ;;  %v6300_v26 = vor.u32 %v7254_v11, %v6297_v60  ;;  %v6519_v30 = vld [vmem:[#allocation5 + $0x2c8] sm:$0xf]  ;;  %v6500_v4 = vor.u32 %v7305_v5, %v6497_v7  ;;  %v6481_v11 = vld [vmem:[#allocation5 + $0x290] sm:$0xf0]  ;;  %v6415_v5 = vld [vmem:[#allocation5 + $0x200] sm:$0xf] }
 0x238   :  { %v6487_v60 = vld [vmem:[#allocation5 + $0x288] sm:$0xf]  ;;  %v7285_v7 = vld [vmem:[#allocation5 + $0x204] sm:$0xf] }
 0x23b   :  { %3694 = vmatpush.bf16.msra.mxu0 %v6348_v2  ;;  %v7307_v2 = vld [vmem:[#allocation5 + $0x2ac] sm:$0xf0] }
 0x23c   :  { %v7691_v35 = vpop.f32.mrf.mxu0  ;;  %v6496_v6 = vor.u32 %v7307_v2, %v6495_v0  ;;  %v6441_v0 = vld [vmem:[#allocation5 + $0x238] sm:$0xf0] }
 0x23e   :  { %v3088_v33 = vpop.f32.mrf.mxu3  ;;  %v3077_v43 = vpop.f32.mrf.mxu1 }
 0x23f   :  { %v3089_v38 = vadd.f32 %v3088_v33, %v3076_v44  ;;  %3695 = vmatpush.bf16.msra.mxu0 %v6332_v9 }
 0x240   :  { %v3114_v42 = vpop.f32.mrf.mxu2 }
 0x241   :  { %v3102_v40 = vadd.f32 %v7685_v47, %v3089_v38  ;;  %v6360_v47 = vor.u32 %v7272_v55, %v6359_v52  ;;  %v3115_v20 = vadd.f32 %v3114_v42, %v471_v13  ;;  %v7315_v42 = vld [vmem:[#allocation5 + $0x2ec] sm:$0xf0]  ;;  %v7309_v55 = vld [vmem:[#allocation5 + $0x2c4] sm:$0xf] }
 0x242   :  { %v7311_v52 = vld [vmem:[#allocation5 + $0x2cc] sm:$0xf0]  ;;  %v6516_v58 = vor.u32 %v7309_v55, %v6513_v56  ;;  %v7289_v55 = vld [vmem:[#allocation5 + $0x224] sm:$0xf] }
 0x243   :  { %v3200_v45 = vmax.f32 %v7669_v25, %v3102_v40  ;;  %3667 = vmatpush.bf16.msrb.mxu1 %v6360_v47  ;;  %v6343_v25 = vld [vmem:[#allocation5 + $0x168] sm:$0xf]  ;;  %v3128_v3 = vadd.f32 %v7691_v35, %v3115_v20  ;;  %3696 = vmatpush.bf16.msra.mxu0 %v6316_v21  ;;  %v6527_v40 = vld [vmem:[#allocation5 + $0x2e0] sm:$0xf]  ;;  %v7303_v21 = vld [vmem:[#allocation5 + $0x28c] sm:$0xf0] }
 0x244   :  { %v3129_v51 = vpop.f32.mrf.mxu0  ;;  %v6344_v57 = vor.u32 %v7268_v62, %v6343_v25  ;;  %v6528_v54 = vor.u32 %v7315_v42, %v6527_v40  ;;  %v7310_v25 = vld [vmem:[#allocation5 + $0x2cc] sm:$0xf]  ;;  %v6479_v20 = vld [vmem:[#allocation5 + $0x280] sm:$0xf]  ;;  %v7295_v42 = vld [vmem:[#allocation5 + $0x24c] sm:$0xf0] }
 0x245   :  { %v3202_v23 = vpack.c.bf16 %v3200_v45, %v3200_v45  ;;  %v6535_v45 = vld [vmem:[#allocation5 + $0x2e8] sm:$0xf]  ;;  %v6511_v51 = vld [vmem:[#allocation5 + $0x2c0] sm:$0xf]  ;;  %v6480_v53 = vor.u32 %v7303_v21, %v6479_v20  ;;  %v6425_v20 = vld [vmem:[#allocation5 + $0x218] sm:$0xf0] }
 0x246   :  { %v3090_v50 = vpop.f32.mrf.mxu3  ;;  %v6536_v49 = vor.u32 %v7316_v46, %v6535_v45  ;;  %v6512_v47 = vor.u32 %v7311_v52, %v6511_v51  ;;  %v6455_v46 = vld [vmem:[#allocation5 + $0x248] sm:$0xf]  ;;  %v7291_v52 = vld [vmem:[#allocation5 + $0x22c] sm:$0xf0] }
 0x247   :  { %3607 = vmatmul.bf16.vlgmr.msrb.gmra.mxu3 %v3202_v23  ;;  %3633 = vmatmul.bf16.vlgmr.msra.gmra.mxu2 %v3202_v23  ;;  %v6537_v50 = vld [vmem:[#allocation5 + $0x2f8] sm:$0xf0] }
 0x248   :  { %v3116_v61 = vpop.f32.mrf.mxu2  ;;  %3668 = vmatpush.bf16.msrb.mxu1 %v6344_v57  ;;  %3697 = vmatpush.bf16.msra.mxu0 %v6300_v26  ;;  %v6524_v57 = vor.u32 %v7310_v25, %v6521_v63  ;;  %v7302_v26 = vld [vmem:[#allocation5 + $0x28c] sm:$0xf] }
 0x249   :  { %3910 = vmatpush.bf16.msrb.mxu3 %v6528_v54  ;;  %3936 = vmatpush.bf16.msra.mxu2 %v6536_v49  ;;  %v7312_v61 = vld [vmem:[#allocation5 + $0x2d4] sm:$0xf0]  ;;  %v6449_v54 = vld [vmem:[#allocation5 + $0x250] sm:$0xf0]  ;;  %v7294_v49 = vld [vmem:[#allocation5 + $0x24c] sm:$0xf] }
 0x24a   :  { %v6520_v62 = vor.u32 %v7312_v61, %v6519_v30  ;;  %v6452_v45 = vor.u32 %v7293_v41, %v6449_v54  ;;  %v7292_v30 = vld [vmem:[#allocation5 + $0x234] sm:$0xf0]  ;;  %v7339_v41 = vld [vmem:[#allocation5 + $0x3ac] sm:$0xf0] }
 0x24c   :  { %3669 = vmatpush.bf16.msrb.mxu1 %v6328_v8  ;;  %v6503_v8 = vld [vmem:[#allocation5 + $0x2a8] sm:$0xf] }
 0x24d   :  { %3911 = vmatpush.bf16.msrb.mxu3 %v6512_v47  ;;  %3937 = vmatpush.bf16.msra.mxu2 %v6520_v62  ;;  %v6504_v16 = vor.u32 %v7308_v10, %v6503_v8  ;;  %v6433_v47 = vld [vmem:[#allocation5 + $0x230] sm:$0xf0] }
 0x24e   :  { %v6436_v62 = vor.u32 %v7289_v55, %v6433_v47  ;;  %v6417_v10 = vld [vmem:[#allocation5 + $0x210] sm:$0xf0]  ;;  %v6607_v47 = vld [vmem:[#allocation5 + $0x380] sm:$0xf] }
 0x250   :  { %3670 = vmatpush.bf16.msrb.mxu1 %v6312_v19  ;;  %v6508_v19 = vor.u32 %v7306_v17, %v6505_v18  ;;  %v6420_v17 = vor.u32 %v7285_v7, %v6417_v10 }
 0x251   :  { %3912 = vmatpush.bf16.msrb.mxu3 %v6496_v6  ;;  %3938 = vmatpush.bf16.msra.mxu2 %v6504_v16  ;;  %v7287_v6 = vld [vmem:[#allocation5 + $0x20c] sm:$0xf0]  ;;  %v7288_v16 = vld [vmem:[#allocation5 + $0x214] sm:$0xf0] }
 0x252   :  { %v6416_v8 = vor.u32 %v7287_v6, %v6415_v5  ;;  %v6617_v5 = vld [vmem:[#allocation5 + $0x398] sm:$0xf0] }
 0x254   :  { %3671 = vmatpush.bf16.msrb.mxu1 %v6296_v39  ;;  %v6484_v39 = vor.u32 %v7301_v24, %v6481_v11  ;;  %v6655_v11 = vld [vmem:[#allocation5 + $0x3e0] sm:$0xf] }
 0x255   :  { %3913 = vmatpush.bf16.msrb.mxu3 %v6480_v53 }
 0x257   :  { %3659 = vmatmul.bf16.vlgmr.msra.gmra.mxu3 %v3202_v23  ;;  %3685 = vmatmul.bf16.vlgmr.msrb.gmra.mxu2 %v3202_v23  ;;  %v7314_v23 = vld [vmem:[#allocation5 + $0x2ec] sm:$0xf] }
 0x262   :  { %v3140_v34 = vpop.f32.mrf.mxu1 }
 0x263   :  { %v3141_v59 = vadd.f32 %v3140_v34, %v3128_v3  ;;  %v7304_v34 = vld [vmem:[#allocation5 + $0x294] sm:$0xf0] }
 0x264   :  { %v6488_v3 = vor.u32 %v7304_v34, %v6487_v60  ;;  %v7347_v60 = vld [vmem:[#allocation5 + $0x3ec] sm:$0xf0]  ;;  %v7345_v34 = vld [vmem:[#allocation5 + $0x3e4] sm:$0xf] }
 0x266   :  { %3939 = vmatpush.bf16.msra.mxu2 %v6488_v3  ;;  %v6657_v3 = vld [vmem:[#allocation5 + $0x3f0] sm:$0xf0] }
 0x26a   :  { %v3153_v28 = vpop.f32.mrf.mxu3  ;;  %v3142_v32 = vpop.f32.mrf.mxu1 }
 0x26b   :  { %v3154_v29 = vadd.f32 %v3153_v28, %v3141_v59  ;;  %v6489_v59 = vld [vmem:[#allocation5 + $0x298] sm:$0xf0]  ;;  %v6463_v28 = vld [vmem:[#allocation5 + $0x260] sm:$0xf]  ;;  %v7297_v32 = vld [vmem:[#allocation5 + $0x264] sm:$0xf] }
 0x26c   :  { %v3179_v27 = vpop.f32.mrf.mxu0 }
 0x270   :  { %v3166_v44 = vpop.f32.mrf.mxu2 }
 0x271   :  { %v3167_v33 = vadd.f32 %v3166_v44, %v3154_v29  ;;  %v7299_v29 = vld [vmem:[#allocation5 + $0x26c] sm:$0xf0] }
 0x272   :  { %v3155_v48 = vpop.f32.mrf.mxu3  ;;  %v3192_v38 = vpop.f32.mrf.mxu1  ;;  %v6464_v44 = vor.u32 %v7299_v29, %v6463_v28  ;;  %v7346_v29 = vld [vmem:[#allocation5 + $0x3ec] sm:$0xf] }
 0x273   :  { %v3180_v37 = vadd.f32 %v3179_v27, %v3167_v33  ;;  %v6492_v27 = vor.u32 %v7302_v26, %v6489_v59  ;;  %v6465_v33 = vld [vmem:[#allocation5 + $0x270] sm:$0xf0]  ;;  %v7300_v48 = vld [vmem:[#allocation5 + $0x274] sm:$0xf0]  ;;  %v6663_v26 = vld [vmem:[#allocation5 + $0x3e8] sm:$0xf] }
 0x274   :  { %v3181_v36 = vpop.f32.mrf.mxu0  ;;  %3914 = vmatpush.bf16.msrb.mxu3 %v6464_v44  ;;  %v7348_v59 = vld [vmem:[#allocation5 + $0x3f4] sm:$0xf0]  ;;  %v6639_v44 = vld [vmem:[#allocation5 + $0x3c0] sm:$0xf] }
 0x275   :  { %v3193_v43 = vadd.f32 %v3192_v38, %v3180_v37  ;;  %v6471_v36 = vld [vmem:[#allocation5 + $0x268] sm:$0xf]  ;;  %v6664_v28 = vor.u32 %v7348_v59, %v6663_v26 }
 0x277   :  { %v3201_v35 = vmax.f32 %v7674_v31, %v3193_v43  ;;  %v6540_v31 = vor.u32 %v7314_v23, %v6537_v50  ;;  %v6468_v43 = vor.u32 %v7297_v32, %v6465_v33  ;;  %v6457_v50 = vld [vmem:[#allocation5 + $0x258] sm:$0xf0] }
 0x278   :  { %v3168_v12 = vpop.f32.mrf.mxu2  ;;  %v6460_v51 = vor.u32 %v7294_v49, %v6457_v50  ;;  %v6665_v32 = vld [vmem:[#allocation5 + $0x3f8] sm:$0xf0]  ;;  %v6631_v49 = vld [vmem:[#allocation5 + $0x3a8] sm:$0xf]  ;;  %v7340_v50 = vld [vmem:[#allocation5 + $0x3b4] sm:$0xf0] }
 0x279   :  { %v3203_v15 = vpack.c.bf16 %v3201_v35, %v3201_v35  ;;  %v6472_v12 = vor.u32 %v7300_v48, %v6471_v36  ;;  %v7298_v35 = vld [vmem:[#allocation5 + $0x26c] sm:$0xf]  ;;  %v6668_v33 = vor.u32 %v7346_v29, %v6665_v32  ;;  %v7343_v36 = vld [vmem:[#allocation5 + $0x3cc] sm:$0xf0]  ;;  %v7341_v48 = vld [vmem:[#allocation5 + $0x3c4] sm:$0xf] }
 0x27a   :  { %v3194_v22 = vpop.f32.mrf.mxu1 }
 0x27b   :  { %3620 = vmatmul.bf16.vlgmr.msra.gmra.mxu1 %v3203_v15  ;;  %3646 = vmatmul.bf16.vlgmr.msrb.gmra.mxu0 %v3203_v15  ;;  %v6447_v22 = vld [vmem:[#allocation5 + $0x240] sm:$0xf] }
 0x27c   :  { %3923 = vmatpush.bf16.msra.mxu1 %v6532_v14  ;;  %3949 = vmatpush.bf16.msrb.mxu0 %v6540_v31  ;;  %v6448_v1 = vor.u32 %v7295_v42, %v6447_v22  ;;  %v7296_v14 = vld [vmem:[#allocation5 + $0x254] sm:$0xf0]  ;;  %v6431_v31 = vld [vmem:[#allocation5 + $0x220] sm:$0xf] }
 0x27d   :  { %3940 = vmatpush.bf16.msra.mxu2 %v6472_v12  ;;  %v6456_v23 = vor.u32 %v7296_v14, %v6455_v46  ;;  %v6432_v56 = vor.u32 %v7291_v52, %v6431_v31  ;;  %v6647_v12 = vld [vmem:[#allocation5 + $0x3c8] sm:$0xf]  ;;  %v6623_v42 = vld [vmem:[#allocation5 + $0x3a0] sm:$0xf]  ;;  %v7337_v46 = vld [vmem:[#allocation5 + $0x3a4] sm:$0xf] }
 0x27e   :  { %3915 = vmatpush.bf16.msrb.mxu3 %v6448_v1  ;;  %v6625_v14 = vld [vmem:[#allocation5 + $0x3b0] sm:$0xf0]  ;;  %v6633_v31 = vld [vmem:[#allocation5 + $0x3b8] sm:$0xf0] }
 0x27f   :  { %v3269_v52 = vld [vmem:[#allocation7 + $0x1] ss:$8 sm:$0xf]  ;;  %v6628_v55 = vor.u32 %v7337_v46, %v6625_v14 }
 0x280   :  { %3924 = vmatpush.bf16.msra.mxu1 %v6516_v58  ;;  %3950 = vmatpush.bf16.msrb.mxu0 %v6524_v57  ;;  %v6439_v58 = vld [vmem:[#allocation5 + $0x228] sm:$0xf]  ;;  %v7290_v57 = vld [vmem:[#allocation5 + $0x22c] sm:$0xf]  ;;  %v3271_v10 = vperm.slane %v3269_v52, 0 }
 0x281   :  { %3941 = vmatpush.bf16.msra.mxu2 %v6456_v23  ;;  %v6440_v63 = vor.u32 %v7292_v30, %v6439_v58  ;;  %v6444_v2 = vor.u32 %v7290_v57, %v6441_v0  ;;  %v6624_v23 = vor.u32 %v7339_v41, %v6623_v42  ;;  %v7335_v58 = vld [vmem:[#allocation5 + $0x38c] sm:$0xf0]  ;;  %v7333_v30 = vld [vmem:[#allocation5 + $0x384] sm:$0xf]  ;;  %v6615_v57 = vld [vmem:[#allocation5 + $0x388] sm:$0xf] }
 0x282   :  { %3916 = vmatpush.bf16.msrb.mxu3 %v6432_v56  ;;  %v6632_v56 = vor.u32 %v7340_v50, %v6631_v49  ;;  %v7336_v0 = vld [vmem:[#allocation5 + $0x394] sm:$0xf0]  ;;  %v6608_v6 = vor.u32 %v7335_v58, %v6607_v47  ;;  %v7325_v42 = vld [vmem:[#allocation5 + $0x344] sm:$0xf]  ;;  %v7326_v49 = vld [vmem:[#allocation5 + $0x34c] sm:$0xf] }
 0x283   :  { %v6567_v47 = vld [vmem:[#allocation5 + $0x328] sm:$0xf]  ;;  %v7324_v58 = vld [vmem:[#allocation5 + $0x334] sm:$0xf0] }
 0x284   :  { %3925 = vmatpush.bf16.msra.mxu1 %v6500_v4  ;;  %3951 = vmatpush.bf16.msrb.mxu0 %v6508_v19  ;;  %v6423_v4 = vld [vmem:[#allocation5 + $0x208] sm:$0xf]  ;;  %v7286_v19 = vld [vmem:[#allocation5 + $0x20c] sm:$0xf] }
 0x285   :  { %3942 = vmatpush.bf16.msra.mxu2 %v6440_v63  ;;  %v6424_v18 = vor.u32 %v7288_v16, %v6423_v4  ;;  %v6428_v21 = vor.u32 %v7286_v19, %v6425_v20  ;;  %v6609_v63 = vld [vmem:[#allocation5 + $0x390] sm:$0xf0]  ;;  %v3272_v4 = vperm.slane %v3269_v52, 1 }
 0x286   :  { %3917 = vmatpush.bf16.msrb.mxu3 %v6416_v8  ;;  %v6612_v7 = vor.u32 %v7333_v30, %v6609_v63  ;;  %v6616_v8 = vor.u32 %v7336_v0, %v6615_v57  ;;  %v7322_v63 = vld [vmem:[#allocation5 + $0x32c] sm:$0xf]  ;;  %v6569_v57 = vld [vmem:[#allocation5 + $0x338] sm:$0xf0] }
 0x287   :  { %v6572_v0 = vor.u32 %v7322_v63, %v6569_v57 }
 0x288   :  { %3926 = vmatpush.bf16.msra.mxu1 %v6484_v39  ;;  %3952 = vmatpush.bf16.msrb.mxu0 %v6492_v27  ;;  %v6656_v39 = vor.u32 %v7347_v60, %v6655_v11  ;;  %v6660_v27 = vor.u32 %v7345_v34, %v6657_v3 }
 0x289   :  { %3943 = vmatpush.bf16.msra.mxu2 %v6424_v18 }
 0x28a   :  { %4169 = vmatpush.bf16.msra.mxu3 %v6656_v39 }
 0x28b   :  { %3672 = vmatmul.bf16.vlgmr.msrb.gmra.mxu1 %v3203_v15  ;;  %3698 = vmatmul.bf16.vlgmr.msra.gmra.mxu0 %v3203_v15  ;;  %v6473_v15 = vld [vmem:[#allocation5 + $0x278] sm:$0xf0] }
 0x28c   :  { %v6476_v40 = vor.u32 %v7298_v35, %v6473_v15  ;;  %3927 = vmatpush.bf16.msra.mxu1 %v6468_v43  ;;  %v7344_v35 = vld [vmem:[#allocation5 + $0x3d4] sm:$0xf0]  ;;  %v7342_v15 = vld [vmem:[#allocation5 + $0x3cc] sm:$0xf] }
 0x28d   :  { %4195 = vmatpush.bf16.msrb.mxu2 %v6664_v28  ;;  %v6648_v22 = vor.u32 %v7344_v35, %v6647_v12  ;;  %v6601_v12 = vld [vmem:[#allocation5 + $0x378] sm:$0xf0] }
 0x28e   :  { %3953 = vmatpush.bf16.msrb.mxu0 %v6476_v40  ;;  %v6649_v40 = vld [vmem:[#allocation5 + $0x3d8] sm:$0xf0] }
 0x290   :  { %3928 = vmatpush.bf16.msra.mxu1 %v6452_v45  ;;  %v6652_v45 = vor.u32 %v7342_v15, %v6649_v40  ;;  %v7327_v40 = vld [vmem:[#allocation5 + $0x34c] sm:$0xf0] }
 0x291   :  { %4196 = vmatpush.bf16.msrb.mxu2 %v6648_v22  ;;  %v6575_v22 = vld [vmem:[#allocation5 + $0x340] sm:$0xf] }
 0x292   :  { %3954 = vmatpush.bf16.msrb.mxu0 %v6460_v51  ;;  %v7338_v51 = vld [vmem:[#allocation5 + $0x3ac] sm:$0xf]  ;;  %v6576_v41 = vor.u32 %v7327_v40, %v6575_v22  ;;  %v6759_v22 = vld [vmem:[#allocation5 + $0x4a8] sm:$0xf] }
 0x294   :  { %3929 = vmatpush.bf16.msra.mxu1 %v6436_v62  ;;  %v6636_v62 = vor.u32 %v7338_v51, %v6633_v31  ;;  %v6559_v51 = vld [vmem:[#allocation5 + $0x320] sm:$0xf]  ;;  %v7323_v31 = vld [vmem:[#allocation5 + $0x32c] sm:$0xf0] }
 0x295   :  { %4197 = vmatpush.bf16.msrb.mxu2 %v6632_v56  ;;  %v6561_v56 = vld [vmem:[#allocation5 + $0x330] sm:$0xf0] }
 0x296   :  { %3955 = vmatpush.bf16.msrb.mxu0 %v6444_v2  ;;  %v7334_v2 = vld [vmem:[#allocation5 + $0x38c] sm:$0xf] }
 0x297   :  { %v6620_v16 = vor.u32 %v7334_v2, %v6617_v5  ;;  %v6543_v2 = vld [vmem:[#allocation5 + $0x300] sm:$0xf]  ;;  %v7319_v5 = vld [vmem:[#allocation5 + $0x30c] sm:$0xf0] }
 0x298   :  { %3930 = vmatpush.bf16.msra.mxu1 %v6420_v17 }
 0x299   :  { %4198 = vmatpush.bf16.msrb.mxu2 %v6616_v8  ;;  %v6545_v8 = vld [vmem:[#allocation5 + $0x310] sm:$0xf0] }
 0x29a   :  { %3956 = vmatpush.bf16.msrb.mxu0 %v6428_v21  ;;  %v3273_v21 = vperm.slane %v3269_v52, 2 }
 0x29c   :  { %4182 = vmatpush.bf16.msrb.mxu1 %v6660_v27 }
 0x29e   :  { %4208 = vmatpush.bf16.msra.mxu0 %v6668_v33  ;;  %v7331_v33 = vld [vmem:[#allocation5 + $0x36c] sm:$0xf0] }
 0x2a2   :  { %4209 = vmatpush.bf16.msra.mxu0 %v6652_v45  ;;  %v7328_v45 = vld [vmem:[#allocation5 + $0x354] sm:$0xf0] }
 0x2a6   :  { %4210 = vmatpush.bf16.msra.mxu0 %v6636_v62  ;;  %v6568_v62 = vor.u32 %v7324_v58, %v6567_v47 }
 0x2aa   :  { %4211 = vmatpush.bf16.msra.mxu0 %v6620_v16 }
 0x2ca   :  { %v7698_v13 = vpop.f32.mrf.mxu3  ;;  %v7700_v9 = vpop.f32.mrf.mxu2 }
 0x2cb   :  { %v3609_v19 = vadd.f32 %v7698_v13, %v3271_v10  ;;  %v3635_v20 = vadd.f32 %v7700_v9, %v3272_v4  ;;  %v6591_v9 = vld [vmem:[#allocation5 + $0x360] sm:$0xf]  ;;  %v6551_v10 = vld [vmem:[#allocation5 + $0x308] sm:$0xf]  ;;  %v7320_v4 = vld [vmem:[#allocation5 + $0x314] sm:$0xf0] }
 0x2d2   :  { %v3610_v37 = vpop.f32.mrf.mxu3  ;;  %v3636_v38 = vpop.f32.mrf.mxu2 }
 0x2d3   :  { %v6641_v37 = vld [vmem:[#allocation5 + $0x3d0] sm:$0xf0]  ;;  %v6640_v38 = vor.u32 %v7343_v36, %v6639_v44  ;;  %v6592_v36 = vor.u32 %v7331_v33, %v6591_v9 }
 0x2d4   :  { %v6644_v43 = vor.u32 %v7341_v48, %v6641_v37  ;;  %v6593_v48 = vld [vmem:[#allocation5 + $0x370] sm:$0xf0]  ;;  %v6599_v37 = vld [vmem:[#allocation5 + $0x368] sm:$0xf] }
 0x2d5   :  { %4170 = vmatpush.bf16.msra.mxu3 %v6640_v38 }
 0x2d6   :  { %4183 = vmatpush.bf16.msrb.mxu1 %v6644_v43  ;;  %v7330_v43 = vld [vmem:[#allocation5 + $0x36c] sm:$0xf] }
 0x2d7   :  { %v6604_v15 = vor.u32 %v7330_v43, %v6601_v12  ;;  %v7371_v43 = vld [vmem:[#allocation5 + $0x4ac] sm:$0xf0] }
 0x2d9   :  { %4171 = vmatpush.bf16.msra.mxu3 %v6624_v23  ;;  %4212 = vmatpush.bf16.msra.mxu0 %v6604_v15  ;;  %v6585_v23 = vld [vmem:[#allocation5 + $0x358] sm:$0xf0]  ;;  %v6753_v15 = vld [vmem:[#allocation5 + $0x4b0] sm:$0xf0] }
 0x2da   :  { %v7702_v61 = vpop.f32.mrf.mxu3  ;;  %v7704_v25 = vpop.f32.mrf.mxu2  ;;  %4184 = vmatpush.bf16.msrb.mxu1 %v6628_v55  ;;  %v6588_v50 = vor.u32 %v7326_v49, %v6585_v23  ;;  %v6560_v55 = vor.u32 %v7323_v31, %v6559_v51  ;;  %v7365_v49 = vld [vmem:[#allocation5 + $0x484] sm:$0xf]  ;;  %v6743_v51 = vld [vmem:[#allocation5 + $0x488] sm:$0xf]  ;;  %v7368_v31 = vld [vmem:[#allocation5 + $0x494] sm:$0xf0] }
 0x2db   :  { %v3661_v60 = vadd.f32 %v7702_v61, %v3273_v21  ;;  %v7329_v61 = vld [vmem:[#allocation5 + $0x364] sm:$0xf]  ;;  %v6783_v21 = vld [vmem:[#allocation5 + $0x4e0] sm:$0xf]  ;;  %v6744_v58 = vor.u32 %v7368_v31, %v6743_v51 }
 0x2dc   :  { %v6596_v38 = vor.u32 %v7329_v61, %v6593_v48  ;;  %v7376_v61 = vld [vmem:[#allocation5 + $0x4d4] sm:$0xf0]  ;;  %v7374_v48 = vld [vmem:[#allocation5 + $0x4cc] sm:$0xf]  ;;  %v6671_v31 = vld [vmem:[#allocation5 + $0x400] sm:$0xf] }
 0x2dd   :  { %4172 = vmatpush.bf16.msra.mxu3 %v6608_v6  ;;  %4213 = vmatpush.bf16.msra.mxu0 %v6588_v50  ;;  %v7317_v6 = vld [vmem:[#allocation5 + $0x304] sm:$0xf]  ;;  %v6737_v50 = vld [vmem:[#allocation5 + $0x490] sm:$0xf0] }
 0x2de   :  { %4185 = vmatpush.bf16.msrb.mxu1 %v6612_v7  ;;  %v6544_v7 = vor.u32 %v7319_v5, %v6543_v2  ;;  %v6548_v16 = vor.u32 %v7317_v6, %v6545_v8  ;;  %v6740_v47 = vor.u32 %v7365_v49, %v6737_v50  ;;  %v6697_v50 = vld [vmem:[#allocation5 + $0x438] sm:$0xf0] }
 0x2e1   :  { %4173 = vmatpush.bf16.msra.mxu3 %v6592_v36  ;;  %4214 = vmatpush.bf16.msra.mxu0 %v6572_v0  ;;  %v6775_v36 = vld [vmem:[#allocation5 + $0x4c8] sm:$0xf] }
 0x2e2   :  { %v3662_v24 = vpop.f32.mrf.mxu3  ;;  %v3688_v53 = vpop.f32.mrf.mxu2  ;;  %4186 = vmatpush.bf16.msrb.mxu1 %v6596_v38  ;;  %v6777_v38 = vld [vmem:[#allocation5 + $0x4d8] sm:$0xf0] }
 0x2e3   :  { %v3274_v24 = vperm.slane %v3269_v52, 3  ;;  %v7321_v52 = vld [vmem:[#allocation5 + $0x324] sm:$0xf]  ;;  %v6780_v12 = vor.u32 %v7374_v48, %v6777_v38  ;;  %v6711_v38 = vld [vmem:[#allocation5 + $0x448] sm:$0xf] }
 0x2e4   :  { %v6564_v30 = vor.u32 %v7321_v52, %v6561_v56  ;;  %v7366_v52 = vld [vmem:[#allocation5 + $0x48c] sm:$0xf] }
 0x2e5   :  { %v3687_v3 = vadd.f32 %v7704_v25, %v3274_v24  ;;  %v7332_v25 = vld [vmem:[#allocation5 + $0x374] sm:$0xf0]  ;;  %4174 = vmatpush.bf16.msra.mxu3 %v6576_v41  ;;  %v7379_v24 = vld [vmem:[#allocation5 + $0x4ec] sm:$0xf0]  ;;  %v7370_v41 = vld [vmem:[#allocation5 + $0x4ac] sm:$0xf] }
 0x2e6   :  { %v6600_v35 = vor.u32 %v7332_v25, %v6599_v37  ;;  %v6776_v37 = vor.u32 %v7376_v61, %v6775_v36  ;;  %v6751_v25 = vld [vmem:[#allocation5 + $0x4a0] sm:$0xf]  ;;  %v7359_v36 = vld [vmem:[#allocation5 + $0x44c] sm:$0xf0]  ;;  %v7357_v61 = vld [vmem:[#allocation5 + $0x444] sm:$0xf] }
 0x2e7   :  { %v6752_v40 = vor.u32 %v7371_v43, %v6751_v25  ;;  %v7360_v25 = vld [vmem:[#allocation5 + $0x454] sm:$0xf0] }
 0x2e8   :  { %4199 = vmatpush.bf16.msrb.mxu2 %v6600_v35  ;;  %v7369_v35 = vld [vmem:[#allocation5 + $0x4a4] sm:$0xf] }
 0x2e9   :  { %4175 = vmatpush.bf16.msra.mxu3 %v6560_v55  ;;  %v6745_v55 = vld [vmem:[#allocation5 + $0x498] sm:$0xf0] }
 0x2ed   :  { %4176 = vmatpush.bf16.msra.mxu3 %v6544_v7 }
 0x2f8   :  { %v3621_v54 = vpop.f32.mrf.mxu1  ;;  %v3647_v1 = vpop.f32.mrf.mxu0 }
 0x2f9   :  { %v3622_v53 = vadd.f32 %v3621_v54, %v3609_v19  ;;  %v3648_v11 = vadd.f32 %v3647_v1, %v3635_v20  ;;  %v6577_v54 = vld [vmem:[#allocation5 + $0x350] sm:$0xf0]  ;;  %v6583_v1 = vld [vmem:[#allocation5 + $0x348] sm:$0xf]  ;;  %v6553_v19 = vld [vmem:[#allocation5 + $0x318] sm:$0xf0] }
 0x2fa   :  { %v6580_v46 = vor.u32 %v7325_v42, %v6577_v54  ;;  %v6584_v14 = vor.u32 %v7328_v45, %v6583_v1  ;;  %v7372_v42 = vld [vmem:[#allocation5 + $0x4b4] sm:$0xf0]  ;;  %v6761_v54 = vld [vmem:[#allocation5 + $0x4b8] sm:$0xf0]  ;;  %v6756_v1 = vor.u32 %v7369_v35, %v6753_v15  ;;  %v7358_v35 = vld [vmem:[#allocation5 + $0x44c] sm:$0xf] }
 0x2fb   :  { %v3703_v26 = vmax.f32 %v3622_v53, %v3648_v11  ;;  %v7377_v53 = vld [vmem:[#allocation5 + $0x4e4] sm:$0xf]  ;;  %v6784_v11 = vor.u32 %v7379_v24, %v6783_v21  ;;  %v6760_v45 = vor.u32 %v7372_v42, %v6759_v22  ;;  %v6764_v23 = vor.u32 %v7370_v41, %v6761_v54  ;;  %v6713_v15 = vld [vmem:[#allocation5 + $0x458] sm:$0xf0]  ;;  %v7355_v42 = vld [vmem:[#allocation5 + $0x42c] sm:$0xf0] }
 0x2fc   :  { %4187 = vmatpush.bf16.msrb.mxu1 %v6580_v46  ;;  %4200 = vmatpush.bf16.msrb.mxu2 %v6584_v14  ;;  %v6735_v46 = vld [vmem:[#allocation5 + $0x480] sm:$0xf]  ;;  %v7367_v14 = vld [vmem:[#allocation5 + $0x48c] sm:$0xf0]  ;;  %v6716_v22 = vor.u32 %v7358_v35, %v6713_v15  ;;  %v7353_v41 = vld [vmem:[#allocation5 + $0x424] sm:$0xf] }
 0x2fd   :  { %v6736_v56 = vor.u32 %v7367_v14, %v6735_v46  ;;  %v7356_v46 = vld [vmem:[#allocation5 + $0x434] sm:$0xf0]  ;;  %v7383_v35 = vld [vmem:[#allocation5 + $0x54c] sm:$0xf0] }
 0x300   :  { %v3623_v17 = vpop.f32.mrf.mxu1  ;;  %v3649_v18 = vpop.f32.mrf.mxu0  ;;  %4188 = vmatpush.bf16.msrb.mxu1 %v6564_v30  ;;  %4201 = vmatpush.bf16.msrb.mxu2 %v6568_v62  ;;  %v6748_v30 = vor.u32 %v7366_v52, %v6745_v55  ;;  %v3740_v62 = vld [vmem:[#allocation7 + $0x2] ss:$8 sm:$0xf]  ;;  %v7349_v55 = vld [vmem:[#allocation5 + $0x404] sm:$0xf] }
 0x301   :  { %v6552_v17 = vor.u32 %v7320_v4, %v6551_v10  ;;  %v7318_v18 = vld [vmem:[#allocation5 + $0x30c] sm:$0xf]  ;;  %v3743_v0 = vperm.slane %v3740_v62, 1  ;;  %v3742_v2 = vperm.slane %v3740_v62, 0  ;;  %v3744_v5 = vperm.slane %v3740_v62, 2 }
 0x302   :  { %v6556_v20 = vor.u32 %v7318_v18, %v6553_v19  ;;  %v3745_v8 = vperm.slane %v3740_v62, 3  ;;  %v7351_v52 = vld [vmem:[#allocation5 + $0x40c] sm:$0xf0] }
 0x304   :  { %4189 = vmatpush.bf16.msrb.mxu1 %v6548_v16  ;;  %4202 = vmatpush.bf16.msrb.mxu2 %v6552_v17 }
 0x305   :  { %4215 = vmatpush.bf16.msra.mxu0 %v6556_v20 }
 0x308   :  { %v3673_v34 = vpop.f32.mrf.mxu1  ;;  %v3699_v39 = vpop.f32.mrf.mxu0 }
 0x309   :  { %v3674_v59 = vadd.f32 %v3673_v34, %v3661_v60  ;;  %v3700_v28 = vadd.f32 %v3699_v39, %v3687_v3  ;;  %v6785_v60 = vld [vmem:[#allocation5 + $0x4f0] sm:$0xf0]  ;;  %v6791_v34 = vld [vmem:[#allocation5 + $0x4e8] sm:$0xf]  ;;  %v7380_v39 = vld [vmem:[#allocation5 + $0x4f4] sm:$0xf0] }
 0x30a   :  { %v6788_v3 = vor.u32 %v7377_v53, %v6785_v60 }
 0x30b   :  { %v3704_v27 = vmax.f32 %v3703_v26, %v3674_v59  ;;  %v6792_v26 = vor.u32 %v7380_v39, %v6791_v34  ;;  %v7378_v59 = vld [vmem:[#allocation5 + $0x4ec] sm:$0xf]  ;;  %v6719_v34 = vld [vmem:[#allocation5 + $0x460] sm:$0xf]  ;;  %v7363_v39 = vld [vmem:[#allocation5 + $0x46c] sm:$0xf0] }
 0x30d   :  { %v3705_v29 = vmax.f32 %v3704_v27, %v3700_v28  ;;  %v6793_v27 = vld [vmem:[#allocation5 + $0x4f8] sm:$0xf0]  ;;  %v6767_v28 = vld [vmem:[#allocation5 + $0x4c0] sm:$0xf] }
 0x30f   :  { %v3706_v32 = vpack.c.bf16 %v3705_v29, %v3705_v29  ;;  %v6796_v29 = vor.u32 %v7378_v59, %v6793_v27  ;;  %v6721_v59 = vld [vmem:[#allocation5 + $0x470] sm:$0xf0]  ;;  %v6727_v27 = vld [vmem:[#allocation5 + $0x468] sm:$0xf] }
 0x310   :  { %v3675_v13 = vpop.f32.mrf.mxu1  ;;  %v3701_v44 = vpop.f32.mrf.mxu0 }
 0x311   :  { %3918 = vmatmul.bf16.vlgmr.msrb.gmra.mxu3 %v3706_v32  ;;  %3931 = vmatmul.bf16.vlgmr.msra.gmra.mxu1 %v3706_v32  ;;  %v7373_v13 = vld [vmem:[#allocation5 + $0x4c4] sm:$0xf]  ;;  %v6769_v44 = vld [vmem:[#allocation5 + $0x4d0] sm:$0xf0] }
 0x312   :  { %3944 = vmatmul.bf16.vlgmr.msra.gmra.mxu2 %v3706_v32  ;;  %3957 = vmatmul.bf16.vlgmr.msrb.gmra.mxu0 %v3706_v32  ;;  %v7375_v32 = vld [vmem:[#allocation5 + $0x4cc] sm:$0xf0]  ;;  %v6772_v33 = vor.u32 %v7373_v13, %v6769_v44  ;;  %v6729_v13 = vld [vmem:[#allocation5 + $0x478] sm:$0xf0] }
 0x313   :  { %4428 = vmatpush.bf16.msrb.mxu3 %v6784_v11  ;;  %4441 = vmatpush.bf16.msra.mxu1 %v6788_v3  ;;  %v6768_v9 = vor.u32 %v7375_v32, %v6767_v28  ;;  %v6720_v3 = vor.u32 %v7363_v39, %v6719_v34  ;;  %v7362_v32 = vld [vmem:[#allocation5 + $0x46c] sm:$0xf] }
 0x314   :  { %4454 = vmatpush.bf16.msra.mxu2 %v6792_v26  ;;  %4467 = vmatpush.bf16.msrb.mxu0 %v6796_v29  ;;  %v7361_v26 = vld [vmem:[#allocation5 + $0x464] sm:$0xf]  ;;  %v7364_v29 = vld [vmem:[#allocation5 + $0x474] sm:$0xf0] }
 0x315   :  { %v6724_v28 = vor.u32 %v7361_v26, %v6721_v59  ;;  %v6728_v44 = vor.u32 %v7364_v29, %v6727_v27 }
 0x317   :  { %4429 = vmatpush.bf16.msrb.mxu3 %v6768_v9  ;;  %4442 = vmatpush.bf16.msra.mxu1 %v6772_v33  ;;  %v6732_v9 = vor.u32 %v7362_v32, %v6729_v13  ;;  %v6703_v33 = vld [vmem:[#allocation5 + $0x440] sm:$0xf] }
 0x318   :  { %4455 = vmatpush.bf16.msra.mxu2 %v6776_v37  ;;  %4468 = vmatpush.bf16.msrb.mxu0 %v6780_v12  ;;  %v6704_v48 = vor.u32 %v7359_v36, %v6703_v33  ;;  %v6705_v37 = vld [vmem:[#allocation5 + $0x450] sm:$0xf0]  ;;  %v6712_v12 = vor.u32 %v7360_v25, %v6711_v38  ;;  %v6811_v38 = vld [vmem:[#allocation5 + $0x560] sm:$0xf]  ;;  %v7384_v25 = vld [vmem:[#allocation5 + $0x56c] sm:$0xf0] }
 0x319   :  { %v6708_v43 = vor.u32 %v7357_v61, %v6705_v37 }
 0x31b   :  { %4430 = vmatpush.bf16.msrb.mxu3 %v6752_v40  ;;  %4443 = vmatpush.bf16.msra.mxu1 %v6756_v1  ;;  %v6687_v40 = vld [vmem:[#allocation5 + $0x420] sm:$0xf]  ;;  %v6689_v1 = vld [vmem:[#allocation5 + $0x430] sm:$0xf0] }
 0x31c   :  { %4456 = vmatpush.bf16.msra.mxu2 %v6760_v45  ;;  %4469 = vmatpush.bf16.msrb.mxu0 %v6764_v23  ;;  %v6688_v54 = vor.u32 %v7355_v42, %v6687_v40  ;;  %v6695_v45 = vld [vmem:[#allocation5 + $0x428] sm:$0xf]  ;;  %v6692_v14 = vor.u32 %v7353_v41, %v6689_v1  ;;  %v7354_v23 = vld [vmem:[#allocation5 + $0x42c] sm:$0xf]  ;;  %v7382_v40 = vld [vmem:[#allocation5 + $0x52c] sm:$0xf0] }
 0x31d   :  { %v6696_v49 = vor.u32 %v7356_v46, %v6695_v45  ;;  %v6700_v51 = vor.u32 %v7354_v23, %v6697_v50  ;;  %v6799_v41 = vld [vmem:[#allocation5 + $0x500] sm:$0xf]  ;;  %v4258_v45 = vld [vmem:[#allocation7 + $0x4] ss:$8 sm:$0xf] }
 0x31e   :  { %v4260_v23 = vperm.slane %v4258_v45, 0  ;;  %v4262_v50 = vperm.slane %v4258_v45, 2 }
 0x31f   :  { %4431 = vmatpush.bf16.msrb.mxu3 %v6736_v56  ;;  %4444 = vmatpush.bf16.msra.mxu1 %v6740_v47  ;;  %v6672_v56 = vor.u32 %v7351_v52, %v6671_v31  ;;  %v6673_v47 = vld [vmem:[#allocation5 + $0x410] sm:$0xf0]  ;;  %v4263_v52 = vperm.slane %v4258_v45, 3 }
 0x320   :  { %4457 = vmatpush.bf16.msra.mxu2 %v6744_v58  ;;  %4470 = vmatpush.bf16.msrb.mxu0 %v6748_v30  ;;  %v6679_v58 = vld [vmem:[#allocation5 + $0x408] sm:$0xf]  ;;  %v7352_v30 = vld [vmem:[#allocation5 + $0x414] sm:$0xf0]  ;;  %v6676_v62 = vor.u32 %v7349_v55, %v6673_v47 }
 0x323   :  { %4432 = vmatpush.bf16.msrb.mxu3 %v6720_v3  ;;  %4445 = vmatpush.bf16.msra.mxu1 %v6724_v28 }
 0x324   :  { %4458 = vmatpush.bf16.msra.mxu2 %v6728_v44  ;;  %4471 = vmatpush.bf16.msrb.mxu0 %v6732_v9 }
 0x327   :  { %4433 = vmatpush.bf16.msrb.mxu3 %v6704_v48  ;;  %4446 = vmatpush.bf16.msra.mxu1 %v6708_v43  ;;  %v6812_v43 = vor.u32 %v7384_v25, %v6811_v38 }
 0x328   :  { %4459 = vmatpush.bf16.msra.mxu2 %v6712_v12  ;;  %4472 = vmatpush.bf16.msrb.mxu0 %v6716_v22  ;;  %v6807_v12 = vld [vmem:[#allocation5 + $0x540] sm:$0xf] }
 0x329   :  { %v6808_v15 = vor.u32 %v7383_v35, %v6807_v12  ;;  %v6803_v22 = vld [vmem:[#allocation5 + $0x520] sm:$0xf] }
 0x32a   :  { %v6804_v42 = vor.u32 %v7382_v40, %v6803_v22 }
 0x32b   :  { %4434 = vmatpush.bf16.msrb.mxu3 %v6688_v54  ;;  %4447 = vmatpush.bf16.msra.mxu1 %v6692_v14  ;;  %v7381_v54 = vld [vmem:[#allocation5 + $0x50c] sm:$0xf0] }
 0x32c   :  { %4460 = vmatpush.bf16.msra.mxu2 %v6696_v49  ;;  %4473 = vmatpush.bf16.msrb.mxu0 %v6700_v51  ;;  %v6800_v1 = vor.u32 %v7381_v54, %v6799_v41  ;;  %v4261_v49 = vperm.slane %v4258_v45, 1 }
 0x32f   :  { %4435 = vmatpush.bf16.msrb.mxu3 %v6672_v56  ;;  %4448 = vmatpush.bf16.msra.mxu1 %v6676_v62 }
 0x38e   :  { %v3932_v63 = vpop.f32.mrf.mxu1 }
 0x38f   :  { %v3958_v57 = vpop.f32.mrf.mxu0  ;;  %v3933_v7 = vadd.f32 %v3932_v63, %v3743_v0  ;;  %v6680_v63 = vor.u32 %v7352_v30, %v6679_v58  ;;  %v6681_v0 = vld [vmem:[#allocation5 + $0x418] sm:$0xf0] }
 0x390   :  { %v3959_v20 = vadd.f32 %v3958_v57, %v3745_v8  ;;  %v7350_v57 = vld [vmem:[#allocation5 + $0x40c] sm:$0xf] }
 0x391   :  { %4461 = vmatpush.bf16.msra.mxu2 %v6680_v63 }
 0x394   :  { %v3919_v6 = vpop.f32.mrf.mxu3 }
 0x395   :  { %v3920_v10 = vadd.f32 %v3919_v6, %v3742_v2  ;;  %v3945_v4 = vpop.f32.mrf.mxu2  ;;  %v6684_v2 = vor.u32 %v7350_v57, %v6681_v0  ;;  %v7388_v6 = vld [vmem:[#allocation5 + $0x5ec] sm:$0xf0] }
 0x396   :  { %v3934_v16 = vpop.f32.mrf.mxu1  ;;  %v3946_v18 = vadd.f32 %v3945_v4, %v3744_v5  ;;  %v6827_v5 = vld [vmem:[#allocation5 + $0x5e0] sm:$0xf] }
 0x397   :  { %v3962_v17 = vmax.f32 %v3920_v10, %v3933_v7  ;;  %v3960_v19 = vpop.f32.mrf.mxu0  ;;  %4474 = vmatpush.bf16.msrb.mxu0 %v6684_v2  ;;  %v6823_v7 = vld [vmem:[#allocation5 + $0x5c0] sm:$0xf]  ;;  %v6828_v8 = vor.u32 %v7388_v6, %v6827_v5  ;;  %v7387_v10 = vld [vmem:[#allocation5 + $0x5cc] sm:$0xf0] }
 0x398   :  { %v6824_v4 = vor.u32 %v7387_v10, %v6823_v7  ;;  %v6819_v16 = vld [vmem:[#allocation5 + $0x5a0] sm:$0xf]  ;;  %v4500_v7 = vld [vmem:[#allocation7 + $0x5] ss:$0 sm:$0xff] }
 0x399   :  { %v3963_v21 = vmax.f32 %v3962_v17, %v3946_v18  ;;  %v7386_v17 = vld [vmem:[#allocation5 + $0x5ac] sm:$0xf0]  ;;  %v6815_v19 = vld [vmem:[#allocation5 + $0x580] sm:$0xf] }
 0x39a   :  { %v6820_v18 = vor.u32 %v7386_v17, %v6819_v16 }
 0x39b   :  { %v3964_v24 = vmax.f32 %v3963_v21, %v3959_v20  ;;  %v7385_v20 = vld [vmem:[#allocation5 + $0x58c] sm:$0xf0] }
 0x39c   :  { %v3921_v53 = vpop.f32.mrf.mxu3  ;;  %v6816_v21 = vor.u32 %v7385_v20, %v6815_v19 }
 0x39d   :  { %v3965_v11 = vpack.c.bf16 %v3964_v24, %v3964_v24  ;;  %v3947_v60 = vpop.f32.mrf.mxu2  ;;  %v3999_v24 = vld [vmem:[#allocation7 + $0x3] ss:$8 sm:$0xf] }
 0x39e   :  { %v4002_v60 = vperm.slane %v3999_v24, 1  ;;  %v4001_v34 = vperm.slane %v3999_v24, 0  ;;  %v4003_v39 = vperm.slane %v3999_v24, 2  ;;  %v4004_v59 = vperm.slane %v3999_v24, 3 }
 0x39f   :  { %4177 = vmatmul.bf16.vlgmr.msra.gmra.mxu3 %v3965_v11  ;;  %4190 = vmatmul.bf16.vlgmr.msrb.gmra.mxu1 %v3965_v11 }
 0x3a0   :  { %4203 = vmatmul.bf16.vlgmr.msrb.gmra.mxu2 %v3965_v11  ;;  %4216 = vmatmul.bf16.vlgmr.msra.gmra.mxu0 %v3965_v11 }
 0x3a1   :  { %4549 = vmatpush.bf16.msra.mxu3 %v6828_v8 }
 0x3a5   :  { %4550 = vmatpush.bf16.msra.mxu3 %v6824_v4 }
 0x3a9   :  { %4551 = vmatpush.bf16.msra.mxu3 %v6820_v18 }
 0x3ad   :  { %4552 = vmatpush.bf16.msra.mxu3 %v6816_v21 }
 0x3b1   :  { %4553 = vmatpush.bf16.msra.mxu3 %v6812_v43 }
 0x3b5   :  { %4554 = vmatpush.bf16.msra.mxu3 %v6808_v15 }
 0x3b9   :  { %4555 = vmatpush.bf16.msra.mxu3 %v6804_v42 }
 0x3bd   :  { %4556 = vmatpush.bf16.msra.mxu3 %v6800_v1 }
 0x41c   :  { %v4191_v53 = vpop.f32.mrf.mxu1 }
 0x41d   :  { %v4217_v11 = vpop.f32.mrf.mxu0  ;;  %v4192_v26 = vadd.f32 %v4191_v53, %v4002_v60 }
 0x41e   :  { %v4218_v9 = vadd.f32 %v4217_v11, %v4004_v59 }
 0x422   :  { %v4178_v3 = vpop.f32.mrf.mxu3 }
 0x423   :  { %v4179_v27 = vadd.f32 %v4178_v3, %v4001_v34  ;;  %v4204_v28 = vpop.f32.mrf.mxu2 }
 0x424   :  { %v4193_v29 = vpop.f32.mrf.mxu1  ;;  %v4205_v13 = vadd.f32 %v4204_v28, %v4003_v39 }
 0x425   :  { %v4221_v32 = vmax.f32 %v4179_v27, %v4192_v26  ;;  %v4219_v44 = vpop.f32.mrf.mxu0 }
 0x427   :  { %v4222_v33 = vmax.f32 %v4221_v32, %v4205_v13 }
 0x429   :  { %v4223_v36 = vmax.f32 %v4222_v33, %v4218_v9 }
 0x42a   :  { %v4180_v61 = vpop.f32.mrf.mxu3 }
 0x42b   :  { %v4224_v48 = vpack.c.bf16 %v4223_v36, %v4223_v36  ;;  %v4206_v37 = vpop.f32.mrf.mxu2 }
 0x42d   :  { %4436 = vmatmul.bf16.vlgmr.msrb.gmra.mxu3 %v4224_v48  ;;  %4449 = vmatmul.bf16.vlgmr.msra.gmra.mxu1 %v4224_v48 }
 0x42e   :  { %4462 = vmatmul.bf16.vlgmr.msra.gmra.mxu2 %v4224_v48  ;;  %4475 = vmatmul.bf16.vlgmr.msrb.gmra.mxu0 %v4224_v48 }
 0x4aa   :  { %v4450_v46 = vpop.f32.mrf.mxu1 }
 0x4ab   :  { %v4476_v14 = vpop.f32.mrf.mxu0  ;;  %v4451_v31 = vadd.f32 %v4450_v46, %v4261_v49 }
 0x4ac   :  { %v4477_v63 = vadd.f32 %v4476_v14, %v4263_v52 }
 0x4b0   :  { %v4437_v51 = vpop.f32.mrf.mxu3 }
 0x4b1   :  { %v4438_v55 = vadd.f32 %v4437_v51, %v4260_v23  ;;  %v4463_v56 = vpop.f32.mrf.mxu2 }
 0x4b2   :  { %v4452_v47 = vpop.f32.mrf.mxu1  ;;  %v4464_v30 = vadd.f32 %v4463_v56, %v4262_v50 }
 0x4b3   :  { %v4480_v58 = vmax.f32 %v4438_v55, %v4451_v31  ;;  %v4478_v62 = vpop.f32.mrf.mxu0 }
 0x4b5   :  { %v4481_v57 = vmax.f32 %v4480_v58, %v4464_v30 }
 0x4b7   :  { %v4482_v0 = vmax.f32 %v4481_v57, %v4477_v63 }
 0x4b8   :  { %v4439_v2 = vpop.f32.mrf.mxu3 }
 0x4b9   :  { %v4483_v5 = vpack.c.bf16 %v4482_v0, %v4482_v0  ;;  %v4465_v6 = vpop.f32.mrf.mxu2 }
 0x4bb   :  { %4557 = vmatmul.bf16.vlgmr.msra.gmra.mxu3 %v4483_v5 }
 0x53e   :  { %v4558_v8 = vpop.f32.mrf.mxu3 }
 0x53f   :  { %v4559_v10 = vadd.f32 %v4558_v8, %v4500_v7 }
 0x541   :  { %4562 = vst [vmem:[#allocation8] sm:$0xff] %v4559_v10 }
 0x542   :  { %4573 = dma.vmem_to_hbm [thread:$0]  %s4569_s13, 128, %s4571_s16, [#allocation4]  }
 0x546   :  { %v4560_v4 = vpop.f32.mrf.mxu3 }
 0x547   :  { %7497 = dma.done.wait [#allocation4], 128  }
 0x548   :  { %7498 = vsyncadd [#allocation4], 4294967168 }
 0x549   :  { %4578 = vsyncpa [#allocation3], 1 }
 0x54a   :  { %4579 = vsyncpa [#allocation6], 1 }
 0x54b   :  { %4580 = vsyncpa [#allocation4], 1 }

</bundles_post_ra>
